<compile_context>
chip_gen: v6e
topology: v6e:2x2x1
jax: 0.10.0
libtpu: 0.0.40
codegen_flags: <defaults>
</compile_context>

<pallas_src>
import random

import jax
import jax.numpy as jnp
from jax.experimental import pallas as pl
from jax.experimental.pallas import tpu as pltpu

# ----------------------------- hyper-parameters -----------------------------
INPUT_DIM = 20      # src vocab
OUTPUT_DIM = 18     # trg vocab
ENC_EMB = 16
DEC_EMB = 16
ENC_HID = 16
DEC_HID = 32
SRC_PAD_IDX = 0


# ------------------------- fused bi-directional encoder ----------------------
def _bigru_encoder_kernel(x_ref, wi_ref, wh_ref, bi_ref, bh_ref, out_ref):
    """Whole GRU time sweep for one direction.  grid = (direction,).
    The embedded sequence is resident in VMEM; indices are fully static."""
    d = pl.program_id(0)
    S, B, _E = x_ref.shape
    H = wh_ref.shape[1]

    wi = wi_ref[0]          # (E, 3H)   packed gates (r | z | n)
    wh = wh_ref[0]          # (H, 3H)
    bi = bi_ref[0]          # (1, 3H)
    bh = bh_ref[0]          # (1, 3H)

    def cell(x, h):
        gi = jnp.dot(x, wi, preferred_element_type=jnp.float32) + bi
        gh = jnp.dot(h, wh, preferred_element_type=jnp.float32) + bh
        r = jax.nn.sigmoid(gi[:, :H] + gh[:, :H])
        z = jax.nn.sigmoid(gi[:, H:2 * H] + gh[:, H:2 * H])
        n = jnp.tanh(gi[:, 2 * H:] + r * gh[:, 2 * H:])
        return (1.0 - z) * n + z * h

    def sweep(reverse):
        h = jnp.zeros((B, H), jnp.float32)
        order = range(S - 1, -1, -1) if reverse else range(S)
        for t in order:                       # static unroll (small S)
            h = cell(x_ref[t], h)
            out_ref[0, t] = h                 # stored at ORIGINAL time position

    @pl.when(d == 0)
    def _fwd():
        sweep(False)

    @pl.when(d == 1)
    def _bwd():
        sweep(True)


def bigru_encode(emb, wi2, wh2, bi2, bh2):
    """emb: (S, B, E).  Returns (2, S, B, ENC_HID) — direction-major outputs,
    backward outputs already at their original time positions."""
    S, B, E = emb.shape
    H = wh2.shape[1]
    G = wh2.shape[2]                          # 3 * H

    return pl.pallas_call(
        _bigru_encoder_kernel,
        out_shape=jax.ShapeDtypeStruct((2, S, B, H), jnp.float32),
        grid=(2,),
        in_specs=[
            pl.BlockSpec((S, B, E), lambda d: (0, 0, 0)),      # resident, 1 DMA
            pl.BlockSpec((1, E, G), lambda d: (d, 0, 0)),
            pl.BlockSpec((1, H, G), lambda d: (d, 0, 0)),
            pl.BlockSpec((1, 1, G), lambda d: (d, 0, 0)),
            pl.BlockSpec((1, 1, G), lambda d: (d, 0, 0)),
        ],
        out_specs=pl.BlockSpec((1, S, B, H), lambda d: (d, 0, 0, 0)),
        compiler_params=pltpu.CompilerParams(
            dimension_semantics=("parallel",)),
    )(emb, wi2, wh2, bi2, bh2)


# ------------------------------- fused decoder -------------------------------
def _decoder_fused_kernel(tf_ref,                                   # SMEM (T-1,)
                          trg_ref, h0_ref, encfc_w_ref, encfc_b_ref,
                          enc_ref, mask_ref, emb_tbl_ref,
                          wa_h_ref, wa_e_ref, ba_ref, va_ref,
                          wie_ref, wiw_ref, wh_ref, bi_ref, bh_ref,
                          woh_ref, wow_ref, woe_ref, bo_ref,
                          out_ref):
    B, S, H2 = enc_ref.shape
    DH = wh_ref.shape[0]
    T, _B, V = out_ref.shape
    ODIM = emb_tbl_ref.shape[0]

    # encoder fc folded in: hidden0 = tanh([h_fwd ; h_bwd] @ W + b)
    h = jnp.tanh(jnp.dot(h0_ref[...], encfc_w_ref[...],
                         preferred_element_type=jnp.float32) + encfc_b_ref[...])
    enc = enc_ref[...]                                               # (B, S, 2H)
    # loop-invariant attention term enc @ W_e — hoisted out of the time loop
    ee = jnp.dot(enc.reshape(B * S, H2), wa_e_ref[...],
                 preferred_element_type=jnp.float32).reshape(B, S, DH)
    mask3 = mask_ref[...][:, None, :]                                # (B, 1, S)
    v_b = jnp.broadcast_to(va_ref[...][None, :, :], (B, 1, DH))      # hoisted
    lane = jax.lax.broadcasted_iota(jnp.int32, (B, V), 1)
    viota = jax.lax.broadcasted_iota(jnp.int32, (B, ODIM), 1)

    out_ref[0] = jnp.zeros((B, V), jnp.float32)    # outputs[0] stays zero
    prev = jnp.zeros((B, V), jnp.float32)          # previous-step logits

    for g in range(T - 1):                         # static unroll (small T)
        # ---- input token: teacher forcing vs argmax(prev logits)
        vmax = jnp.max(prev, axis=-1, keepdims=True)
        top1 = jnp.min(jnp.where(prev == vmax, lane, V),
                       axis=-1, keepdims=True)                       # (B, 1)
        tok = jnp.where(tf_ref[g] != 0, trg_ref[g], top1)            # (B, 1)

        # ---- embedding lookup as one-hot matmul (table resident in VMEM)
        onehot = (viota == tok).astype(jnp.float32)                  # (B, ODIM)
        emb = jnp.dot(onehot, emb_tbl_ref[...],
                      preferred_element_type=jnp.float32)            # (B, DEC_EMB)
        # TODO(synk): decoder dropout treated as identity (eval mode).

        # ---- Bahdanau attention (MXU-formulated, batched einsums)
        e_h = jnp.dot(h, wa_h_ref[...], preferred_element_type=jnp.float32)
        energy = jnp.tanh(ee + e_h[:, None, :] + ba_ref[...])        # (B, S, DH)
        scores = jnp.einsum('bvh,bsh->bvs', v_b, energy,
                            preferred_element_type=jnp.float32)      # (B, 1, S)
        # masked softmax over source positions (masked_fill(-1e10) + softmax)
        scores = jnp.where(mask3 > 0.0, scores, -1e10)
        scores = scores - jnp.max(scores, axis=-1, keepdims=True)
        ex = jnp.exp(scores)
        attn = ex / jnp.sum(ex, axis=-1, keepdims=True)              # (B, 1, S)
        weighted = jnp.einsum('bvs,bsh->bvh', attn, enc,
                              preferred_element_type=jnp.float32).reshape(B, H2)

        # ---- GRU cell: input = [emb ; weighted] via row-split matmuls
        gi = (jnp.dot(emb, wie_ref[...], preferred_element_type=jnp.float32)
              + jnp.dot(weighted, wiw_ref[...], preferred_element_type=jnp.float32)
              + bi_ref[...])
        gh = jnp.dot(h, wh_ref[...], preferred_element_type=jnp.float32) + bh_ref[...]
        r = jax.nn.sigmoid(gi[:, :DH] + gh[:, :DH])
        z = jax.nn.sigmoid(gi[:, DH:2 * DH] + gh[:, DH:2 * DH])
        n = jnp.tanh(gi[:, 2 * DH:] + r * gh[:, 2 * DH:])
        h = (1.0 - z) * n + z * h

        # ---- fc_out([h ; weighted ; emb]) via row-split matmuls
        pred = (jnp.dot(h, woh_ref[...], preferred_element_type=jnp.float32)
                + jnp.dot(weighted, wow_ref[...], preferred_element_type=jnp.float32)
                + jnp.dot(emb, woe_ref[...], preferred_element_type=jnp.float32)
                + bo_ref[...])

        out_ref[g + 1] = pred        # resident output slab, one HBM writeback
        prev = pred


def decoder_fused(tf_flags, trg3, h0cat, enc_bsd, mask, p):
    T, B, _ = trg3.shape
    V = p['fc_out_b'].shape[1]

    args = (trg3, h0cat, p['enc_fc_w'], p['enc_fc_b'],
            enc_bsd, mask, p['dec_emb'],
            p['attn_wh'], p['attn_we'], p['attn_b'], p['attn_v'],
            p['dec_wi_e'], p['dec_wi_w'], p['dec_wh'], p['dec_bi'], p['dec_bh'],
            p['fc_out_wh'], p['fc_out_ww'], p['fc_out_we'], p['fc_out_b'])

    def const_spec(shape):
        nd = len(shape)
        return pl.BlockSpec(shape, lambda g, tf, _n=nd: (0,) * _n)

    in_specs = [const_spec(a.shape) for a in args]      # everything resident in VMEM

    grid_spec = pltpu.PrefetchScalarGridSpec(
        num_scalar_prefetch=1,                 # teacher-forcing flags -> SMEM
        grid=(1,),
        in_specs=in_specs,
        out_specs=pl.BlockSpec((T, B, V), lambda g, tf: (0, 0, 0)),
    )

    return pl.pallas_call(
        _decoder_fused_kernel,
        out_shape=jax.ShapeDtypeStruct((T, B, V), jnp.float32),
        grid_spec=grid_spec,
        compiler_params=pltpu.CompilerParams(dimension_semantics=("arbitrary",)),
    )(tf_flags, *args)


# ----------------------------- model (forward) --------------------------------
def encoder_forward(src, params):
    # src: (S, B) int32
    emb = jnp.take(params['enc_emb'], src, axis=0)       # (S, B, ENC_EMB); dropout = identity
    enc_out = bigru_encode(emb, params['enc_wi'], params['enc_wh'],
                           params['enc_bi'], params['enc_bh'])   # (2, S, B, H)
    S, B = src.shape
    H = enc_out.shape[-1]
    # (B, S, 2H) lane-dense layout consumed as-is by the fused decoder kernel.
    enc_bsd = jnp.transpose(enc_out, (2, 1, 0, 3)).reshape(B, S, 2 * H)
    h_fwd = enc_out[0, S - 1]                            # forward final hidden
    h_bwd = enc_out[1, 0]                                # backward final hidden
    h0cat = jnp.concatenate([h_fwd, h_bwd], axis=-1)     # (B, 2H); tanh(fc) done in-kernel
    return enc_bsd, h0cat


@jax.jit
def _forward_impl(src, trg3, tf_flags, params, src_pad_idx):
    enc_bsd, h0cat = encoder_forward(src, params)
    mask = (src != src_pad_idx).T.astype(jnp.float32)    # (B, S)
    return decoder_fused(tf_flags, trg3, h0cat, enc_bsd, mask, params)


def seq2seq_forward(src, src_len, trg, params, src_pad_idx=SRC_PAD_IDX,
                    teacher_forcing_ratio=0.5, seed=0):
    del src_len  # TODO(synk): pack_padded_sequence semantics not implemented
    T = trg.shape[0]

    # deterministic teacher-forcing schedule, precomputed on host (same RNG
    # usage as the reference loop: one draw per decode step, last draw unused)
    rng = random.Random(seed)
    flags = [1]                                          # step 1 always consumes trg[0]
    for t in range(1, T):
        f = 1 if rng.random() < teacher_forcing_ratio else 0
        if t <= T - 2:
            flags.append(f)
    tf_flags = jnp.asarray(flags, dtype=jnp.int32)       # (T-1,)

    trg3 = trg[:, :, None].astype(jnp.int32)             # (T, B, 1)
    return _forward_impl(src, trg3, tf_flags, params,
                         jnp.int32(src_pad_idx))         # (T, B, OUTPUT_DIM)


# ------------------------------- param init -----------------------------------
def _nrm(key, shape, scale=0.1):
    return (scale * jax.random.normal(key, shape)).astype(jnp.float32)


def init_params(key):
    ks = jax.random.split(key, 20)
    G_e = 3 * ENC_HID
    G_d = 3 * DEC_HID
    return {
        'enc_emb': _nrm(ks[0], (INPUT_DIM, ENC_EMB)),
        # bidirectional encoder GRU: gates packed (r|z|n), directions stacked
        'enc_wi': _nrm(ks[1], (2, ENC_EMB, G_e)),
        'enc_wh': _nrm(ks[2], (2, ENC_HID, G_e)),
        'enc_bi': _nrm(ks[3], (2, 1, G_e)),
        'enc_bh': _nrm(ks[4], (2, 1, G_e)),
        'enc_fc_w': _nrm(ks[5], (2 * ENC_HID, DEC_HID)),
        'enc_fc_b': _nrm(ks[6], (1, DEC_HID)),
        'dec_emb': _nrm(ks[7], (OUTPUT_DIM, DEC_EMB)),
        'attn_wh': _nrm(ks[8], (DEC_HID, DEC_HID)),
        'attn_we': _nrm(ks[9], (2 * ENC_HID, DEC_HID)),
        'attn_b': _nrm(ks[10], (1, DEC_HID)),
        'attn_v': _nrm(ks[11], (1, DEC_HID)),
        # decoder GRU: gates packed; input weights row-split over [emb ; weighted]
        'dec_wi_e': _nrm(ks[12], (DEC_EMB, G_d)),
        'dec_wi_w': _nrm(ks[13], (2 * ENC_HID, G_d)),
        'dec_wh': _nrm(ks[14], (DEC_HID, G_d)),
        'dec_bi': _nrm(ks[15], (1, G_d)),
        'dec_bh': _nrm(ks[16], (1, G_d)),
        # fc_out: row-split over [h_new ; weighted ; emb]
        'fc_out_wh': _nrm(ks[17], (DEC_HID, OUTPUT_DIM)),
        'fc_out_ww': _nrm(ks[18], (2 * ENC_HID, OUTPUT_DIM)),
        'fc_out_we': _nrm(ks[19], (DEC_EMB, OUTPUT_DIM)),
        'fc_out_b': jnp.zeros((1, OUTPUT_DIM), jnp.float32),
    }


# ----------------------------------- main --------------------------------------
if __name__ == "__main__":
    key = jax.random.PRNGKey(0)
    kp, ksrc, ktrg = jax.random.split(key, 3)
    params = init_params(kp)

    S, B, T = 8, 2, 6
    src = jax.random.randint(ksrc, (S, B), 1, INPUT_DIM, dtype=jnp.int32)  # no PAD tokens
    src_len = jnp.full((B,), S, dtype=jnp.int32)
    trg = jax.random.randint(ktrg, (T, B), 0, OUTPUT_DIM, dtype=jnp.int32)

    outputs = seq2seq_forward(src, src_len, trg, params,
                              src_pad_idx=SRC_PAD_IDX,
                              teacher_forcing_ratio=0.5, seed=0)
    jax.block_until_ready(outputs)
    assert outputs.shape == (T, B, OUTPUT_DIM)
    assert bool(jnp.all(jnp.isfinite(outputs)))
    assert bool(jnp.all(outputs[0] == 0.0))
    print("KERNEL_OK")
</pallas_src>

<mosaic_0001>
module attributes {stable_mosaic.version = 11 : i64} {
  func.func @_decoder_fused_kernel(%arg0: i32, %arg1: memref<5xi32, #tpu.memory_space<smem>>, %arg2: memref<6x2x1xi32, #tpu.memory_space<vmem>>, %arg3: memref<2x32xf32, #tpu.memory_space<vmem>>, %arg4: memref<32x32xf32, #tpu.memory_space<vmem>>, %arg5: memref<1x32xf32, #tpu.memory_space<vmem>>, %arg6: memref<2x8x32xf32, #tpu.memory_space<vmem>>, %arg7: memref<2x8xf32, #tpu.memory_space<vmem>>, %arg8: memref<18x16xf32, #tpu.memory_space<vmem>>, %arg9: memref<32x32xf32, #tpu.memory_space<vmem>>, %arg10: memref<32x32xf32, #tpu.memory_space<vmem>>, %arg11: memref<1x32xf32, #tpu.memory_space<vmem>>, %arg12: memref<1x32xf32, #tpu.memory_space<vmem>>, %arg13: memref<16x96xf32, #tpu.memory_space<vmem>>, %arg14: memref<32x96xf32, #tpu.memory_space<vmem>>, %arg15: memref<32x96xf32, #tpu.memory_space<vmem>>, %arg16: memref<1x96xf32, #tpu.memory_space<vmem>>, %arg17: memref<1x96xf32, #tpu.memory_space<vmem>>, %arg18: memref<32x18xf32, #tpu.memory_space<vmem>>, %arg19: memref<32x18xf32, #tpu.memory_space<vmem>>, %arg20: memref<16x18xf32, #tpu.memory_space<vmem>>, %arg21: memref<1x18xf32, #tpu.memory_space<vmem>>, %arg22: memref<6x2x18xf32, #tpu.memory_space<vmem>>) attributes {dimension_semantics = [#tpu.dimension_semantics<arbitrary>], iteration_bounds = array<i64: 1>, scalar_prefetch = 1 : i64, scratch_operands = 0 : i64, tpu.core_type = #tpu.core_type<tc>, window_params = [{pipeline_mode = #tpu.pipeline_mode<synchronous>, transform_indices = @transform_0, window_bounds = array<i64: 6, 2, 1>}, {pipeline_mode = #tpu.pipeline_mode<synchronous>, transform_indices = @transform_1, window_bounds = array<i64: 2, 32>}, {pipeline_mode = #tpu.pipeline_mode<synchronous>, transform_indices = @transform_2, window_bounds = array<i64: 32, 32>}, {pipeline_mode = #tpu.pipeline_mode<synchronous>, transform_indices = @transform_3, window_bounds = array<i64: 1, 32>}, {pipeline_mode = #tpu.pipeline_mode<synchronous>, transform_indices = @transform_4, window_bounds = array<i64: 2, 8, 32>}, {pipeline_mode = #tpu.pipeline_mode<synchronous>, transform_indices = @transform_5, window_bounds = array<i64: 2, 8>}, {pipeline_mode = #tpu.pipeline_mode<synchronous>, transform_indices = @transform_6, window_bounds = array<i64: 18, 16>}, {pipeline_mode = #tpu.pipeline_mode<synchronous>, transform_indices = @transform_7, window_bounds = array<i64: 32, 32>}, {pipeline_mode = #tpu.pipeline_mode<synchronous>, transform_indices = @transform_8, window_bounds = array<i64: 32, 32>}, {pipeline_mode = #tpu.pipeline_mode<synchronous>, transform_indices = @transform_9, window_bounds = array<i64: 1, 32>}, {pipeline_mode = #tpu.pipeline_mode<synchronous>, transform_indices = @transform_10, window_bounds = array<i64: 1, 32>}, {pipeline_mode = #tpu.pipeline_mode<synchronous>, transform_indices = @transform_11, window_bounds = array<i64: 16, 96>}, {pipeline_mode = #tpu.pipeline_mode<synchronous>, transform_indices = @transform_12, window_bounds = array<i64: 32, 96>}, {pipeline_mode = #tpu.pipeline_mode<synchronous>, transform_indices = @transform_13, window_bounds = array<i64: 32, 96>}, {pipeline_mode = #tpu.pipeline_mode<synchronous>, transform_indices = @transform_14, window_bounds = array<i64: 1, 96>}, {pipeline_mode = #tpu.pipeline_mode<synchronous>, transform_indices = @transform_15, window_bounds = array<i64: 1, 96>}, {pipeline_mode = #tpu.pipeline_mode<synchronous>, transform_indices = @transform_16, window_bounds = array<i64: 32, 18>}, {pipeline_mode = #tpu.pipeline_mode<synchronous>, transform_indices = @transform_17, window_bounds = array<i64: 32, 18>}, {pipeline_mode = #tpu.pipeline_mode<synchronous>, transform_indices = @transform_18, window_bounds = array<i64: 16, 18>}, {pipeline_mode = #tpu.pipeline_mode<synchronous>, transform_indices = @transform_19, window_bounds = array<i64: 1, 18>}, {pipeline_mode = #tpu.pipeline_mode<synchronous>, transform_indices = @transform_20, window_bounds = array<i64: 6, 2, 18>}]} {
    %c0 = arith.constant 0 : index
    %c0_0 = arith.constant 0 : index
    %0 = vector.load %arg3[%c0, %c0_0] : memref<2x32xf32, #tpu.memory_space<vmem>>, vector<2x32xf32>
    %c0_1 = arith.constant 0 : index
    %c0_2 = arith.constant 0 : index
    %1 = vector.load %arg4[%c0_1, %c0_2] : memref<32x32xf32, #tpu.memory_space<vmem>>, vector<32x32xf32>
    %cst = arith.constant dense<0.000000e+00> : vector<2x32xf32>
    %2 = tpu.matmul %0, %1, %cst {dimension_numbers = #tpu.dot_dimension_numbers<[1], [0], [0], [1], [0, 0, 1, 1], [], []>} : vector<2x32xf32>, vector<32x32xf32>, vector<2x32xf32> -> vector<2x32xf32>
    %c0_3 = arith.constant 0 : index
    %c0_4 = arith.constant 0 : index
    %3 = vector.load %arg5[%c0_3, %c0_4] : memref<1x32xf32, #tpu.memory_space<vmem>>, vector<1x32xf32>
    %4 = vector.broadcast %3 : vector<1x32xf32> to vector<2x32xf32>
    %5 = arith.addf %2, %4 : vector<2x32xf32>
    %6 = math.tanh %5 : vector<2x32xf32>
    %c0_5 = arith.constant 0 : index
    %c0_6 = arith.constant 0 : index
    %c0_7 = arith.constant 0 : index
    %7 = vector.load %arg6[%c0_5, %c0_6, %c0_7] : memref<2x8x32xf32, #tpu.memory_space<vmem>>, vector<2x8x32xf32>
    %8 = vector.shape_cast %7 : vector<2x8x32xf32> to vector<16x32xf32>
    %c0_8 = arith.constant 0 : index
    %c0_9 = arith.constant 0 : index
    %9 = vector.load %arg10[%c0_8, %c0_9] : memref<32x32xf32, #tpu.memory_space<vmem>>, vector<32x32xf32>
    %cst_10 = arith.constant dense<0.000000e+00> : vector<16x32xf32>
    %10 = tpu.matmul %8, %9, %cst_10 {dimension_numbers = #tpu.dot_dimension_numbers<[1], [0], [0], [1], [0, 0, 1, 1], [], []>} : vector<16x32xf32>, vector<32x32xf32>, vector<16x32xf32> -> vector<16x32xf32>
    %11 = vector.shape_cast %10 : vector<16x32xf32> to vector<2x8x32xf32>
    %c0_11 = arith.constant 0 : index
    %c0_12 = arith.constant 0 : index
    %12 = vector.load %arg7[%c0_11, %c0_12] : memref<2x8xf32, #tpu.memory_space<vmem>>, vector<2x8xf32>
    %13 = vector.shape_cast %12 : vector<2x8xf32> to vector<2x1x8xf32>
    %c0_13 = arith.constant 0 : index
    %c0_14 = arith.constant 0 : index
    %14 = vector.load %arg12[%c0_13, %c0_14] : memref<1x32xf32, #tpu.memory_space<vmem>>, vector<1x32xf32>
    %15 = vector.shape_cast %14 : vector<1x32xf32> to vector<1x1x32xf32>
    %16 = vector.shape_cast %15 : vector<1x1x32xf32> to vector<1x1x32xf32>
    %17 = vector.broadcast %16 : vector<1x1x32xf32> to vector<2x1x32xf32>
    %18 = tpu.iota {dimensions = array<i32: 1>} : vector<2x18xi32>
    %19 = tpu.iota {dimensions = array<i32: 1>} : vector<2x18xi32>
    %cst_15 = arith.constant 0.000000e+00 : f32
    %20 = vector.broadcast %cst_15 : f32 to vector<2x18xf32>
    %c0_16 = arith.constant 0 : index
    %c0_17 = arith.constant 0 : index
    %c0_18 = arith.constant 0 : index
    %21 = vector.load %arg22[%c0_16, %c0_17, %c0_18] : memref<6x2x18xf32, #tpu.memory_space<vmem>>, vector<1x2x18xf32>
    %22 = vector.shape_cast %21 : vector<1x2x18xf32> to vector<2x18xf32>
    %23 = vector.shape_cast %20 : vector<2x18xf32> to vector<1x2x18xf32>
    tpu.vector_store %arg22[%c0_16, %c0_17, %c0_18], %23 {strides = array<i32>} : memref<6x2x18xf32, #tpu.memory_space<vmem>>, vector<1x2x18xf32>,
    %cst_19 = arith.constant 0.000000e+00 : f32
    %24 = vector.broadcast %cst_19 : f32 to vector<2x18xf32>
    %cst_20 = arith.constant dense<0xFF800000> : vector<2xf32>
    %25 = vector.multi_reduction <maximumf>, %24, %cst_20 [1] : vector<2x18xf32> to vector<2xf32>
    %26 = vector.shape_cast %25 : vector<2xf32> to vector<2x1xf32>
    %27 = vector.broadcast %26 : vector<2x1xf32> to vector<2x18xf32>
    %28 = arith.cmpf oeq, %24, %27 : vector<2x18xf32>
    %c18_i32 = arith.constant 18 : i32
    %29 = vector.broadcast %c18_i32 : i32 to vector<2x18xi32>
    %30 = arith.select %28, %18, %29 : vector<2x18xi1>, vector<2x18xi32>
    %cst_21 = arith.constant dense<2147483647> : vector<2xi32>
    %31 = vector.multi_reduction <minsi>, %30, %cst_21 [1] : vector<2x18xi32> to vector<2xi32>
    %32 = vector.shape_cast %31 : vector<2xi32> to vector<2x1xi32>
    %c0_22 = arith.constant 0 : index
    %33 = memref.load %arg1[%c0_22] : memref<5xi32, #tpu.memory_space<smem>>
    %c0_i32 = arith.constant 0 : i32
    %34 = arith.cmpi ne, %33, %c0_i32 : i32
    %c0_23 = arith.constant 0 : index
    %c0_24 = arith.constant 0 : index
    %c0_25 = arith.constant 0 : index
    %35 = vector.load %arg2[%c0_23, %c0_24, %c0_25] : memref<6x2x1xi32, #tpu.memory_space<vmem>>, vector<1x2x1xi32>
    %36 = vector.shape_cast %35 : vector<1x2x1xi32> to vector<2x1xi32>
    %37 = arith.select %34, %36, %32 : vector<2x1xi32>
    %38 = vector.broadcast %37 : vector<2x1xi32> to vector<2x18xi32>
    %39 = arith.cmpi eq, %19, %38 : vector<2x18xi32>
    %40 = arith.extui %39 : vector<2x18xi1> to vector<2x18xi32>
    %41 = arith.sitofp %40 : vector<2x18xi32> to vector<2x18xf32>
    %c0_26 = arith.constant 0 : index
    %c0_27 = arith.constant 0 : index
    %42 = vector.load %arg8[%c0_26, %c0_27] : memref<18x16xf32, #tpu.memory_space<vmem>>, vector<18x16xf32>
    %cst_28 = arith.constant dense<0.000000e+00> : vector<2x16xf32>
    %43 = tpu.matmul %41, %42, %cst_28 {dimension_numbers = #tpu.dot_dimension_numbers<[1], [0], [0], [1], [0, 0, 1, 1], [], []>} : vector<2x18xf32>, vector<18x16xf32>, vector<2x16xf32> -> vector<2x16xf32>
    %c0_29 = arith.constant 0 : index
    %c0_30 = arith.constant 0 : index
    %44 = vector.load %arg9[%c0_29, %c0_30] : memref<32x32xf32, #tpu.memory_space<vmem>>, vector<32x32xf32>
    %cst_31 = arith.constant dense<0.000000e+00> : vector<2x32xf32>
    %45 = tpu.matmul %6, %44, %cst_31 {dimension_numbers = #tpu.dot_dimension_numbers<[1], [0], [0], [1], [0, 0, 1, 1], [], []>} : vector<2x32xf32>, vector<32x32xf32>, vector<2x32xf32> -> vector<2x32xf32>
    %46 = vector.shape_cast %45 : vector<2x32xf32> to vector<2x1x32xf32>
    %47 = vector.broadcast %46 : vector<2x1x32xf32> to vector<2x8x32xf32>
    %48 = arith.addf %11, %47 : vector<2x8x32xf32>
    %c0_32 = arith.constant 0 : index
    %c0_33 = arith.constant 0 : index
    %49 = vector.load %arg11[%c0_32, %c0_33] : memref<1x32xf32, #tpu.memory_space<vmem>>, vector<1x32xf32>
    %50 = vector.shape_cast %49 : vector<1x32xf32> to vector<1x1x32xf32>
    %51 = vector.broadcast %50 : vector<1x1x32xf32> to vector<2x8x32xf32>
    %52 = arith.addf %48, %51 : vector<2x8x32xf32>
    %53 = math.tanh %52 : vector<2x8x32xf32>
    "tpu.trace_start"() <{level = 10 : i32, message = "bvh,bsh->bvs"}> : () -> ()
    %cst_34 = arith.constant dense<0.000000e+00> : vector<2x1x8xf32>
    %54 = tpu.matmul %17, %53, %cst_34 {dimension_numbers = #tpu.dot_dimension_numbers<[2], [2], [1], [1], [0, 0, 0, 1, 1, 1], [0], [0]>} : vector<2x1x32xf32>, vector<2x8x32xf32>, vector<2x1x8xf32> -> vector<2x1x8xf32>
    %cst_35 = arith.constant 0.000000e+00 : f32
    "tpu.trace_stop"() : () -> ()
    %55 = vector.broadcast %cst_35 : f32 to vector<2x1x8xf32>
    %56 = arith.cmpf ogt, %13, %55 : vector<2x1x8xf32>
    %cst_36 = arith.constant -1.000000e+10 : f32
    %57 = vector.broadcast %cst_36 : f32 to vector<2x1x8xf32>
    %58 = arith.select %56, %54, %57 : vector<2x1x8xi1>, vector<2x1x8xf32>
    %cst_37 = arith.constant dense<0xFF800000> : vector<2x1xf32>
    %59 = vector.multi_reduction <maximumf>, %58, %cst_37 [2] : vector<2x1x8xf32> to vector<2x1xf32>
    %60 = vector.shape_cast %59 : vector<2x1xf32> to vector<2x1x1xf32>
    %61 = vector.broadcast %60 : vector<2x1x1xf32> to vector<2x1x8xf32>
    %62 = arith.subf %58, %61 : vector<2x1x8xf32>
    %63 = math.exp %62 : vector<2x1x8xf32>
    %cst_38 = arith.constant dense<0.000000e+00> : vector<2x1xf32>
    %64 = vector.multi_reduction <add>, %63, %cst_38 [2] : vector<2x1x8xf32> to vector<2x1xf32>
    %65 = vector.shape_cast %64 : vector<2x1xf32> to vector<2x1x1xf32>
    %66 = vector.broadcast %65 : vector<2x1x1xf32> to vector<2x1x8xf32>
    %67 = arith.divf %63, %66 : vector<2x1x8xf32>
    "tpu.trace_start"() <{level = 10 : i32, message = "bvs,bsh->bvh"}> : () -> ()
    %cst_39 = arith.constant dense<0.000000e+00> : vector<2x1x32xf32>
    %68 = tpu.matmul %67, %7, %cst_39 {dimension_numbers = #tpu.dot_dimension_numbers<[2], [1], [1], [2], [0, 0, 0, 1, 1, 2], [0], [0]>} : vector<2x1x8xf32>, vector<2x8x32xf32>, vector<2x1x32xf32> -> vector<2x1x32xf32>
    "tpu.trace_stop"() : () -> ()
    %69 = vector.shape_cast %68 : vector<2x1x32xf32> to vector<2x32xf32>
    %c0_40 = arith.constant 0 : index
    %c0_41 = arith.constant 0 : index
    %70 = vector.load %arg13[%c0_40, %c0_41] : memref<16x96xf32, #tpu.memory_space<vmem>>, vector<16x96xf32>
    %cst_42 = arith.constant dense<0.000000e+00> : vector<2x96xf32>
    %71 = tpu.matmul %43, %70, %cst_42 {dimension_numbers = #tpu.dot_dimension_numbers<[1], [0], [0], [1], [0, 0, 1, 1], [], []>} : vector<2x16xf32>, vector<16x96xf32>, vector<2x96xf32> -> vector<2x96xf32>
    %c0_43 = arith.constant 0 : index
    %c0_44 = arith.constant 0 : index
    %72 = vector.load %arg14[%c0_43, %c0_44] : memref<32x96xf32, #tpu.memory_space<vmem>>, vector<32x96xf32>
    %cst_45 = arith.constant dense<0.000000e+00> : vector<2x96xf32>
    %73 = tpu.matmul %69, %72, %cst_45 {dimension_numbers = #tpu.dot_dimension_numbers<[1], [0], [0], [1], [0, 0, 1, 1], [], []>} : vector<2x32xf32>, vector<32x96xf32>, vector<2x96xf32> -> vector<2x96xf32>
    %74 = arith.addf %71, %73 : vector<2x96xf32>
    %c0_46 = arith.constant 0 : index
    %c0_47 = arith.constant 0 : index
    %75 = vector.load %arg16[%c0_46, %c0_47] : memref<1x96xf32, #tpu.memory_space<vmem>>, vector<1x96xf32>
    %76 = vector.broadcast %75 : vector<1x96xf32> to vector<2x96xf32>
    %77 = arith.addf %74, %76 : vector<2x96xf32>
    %c0_48 = arith.constant 0 : index
    %c0_49 = arith.constant 0 : index
    %78 = vector.load %arg15[%c0_48, %c0_49] : memref<32x96xf32, #tpu.memory_space<vmem>>, vector<32x96xf32>
    %cst_50 = arith.constant dense<0.000000e+00> : vector<2x96xf32>
    %79 = tpu.matmul %6, %78, %cst_50 {dimension_numbers = #tpu.dot_dimension_numbers<[1], [0], [0], [1], [0, 0, 1, 1], [], []>} : vector<2x32xf32>, vector<32x96xf32>, vector<2x96xf32> -> vector<2x96xf32>
    %c0_51 = arith.constant 0 : index
    %c0_52 = arith.constant 0 : index
    %80 = vector.load %arg17[%c0_51, %c0_52] : memref<1x96xf32, #tpu.memory_space<vmem>>, vector<1x96xf32>
    %81 = vector.broadcast %80 : vector<1x96xf32> to vector<2x96xf32>
    %82 = arith.addf %79, %81 : vector<2x96xf32>
    %83 = vector.extract_strided_slice %77 {offsets = [0, 0], sizes = [2, 32], strides = [1, 1]} : vector<2x96xf32> to vector<2x32xf32>
    %84 = vector.extract_strided_slice %82 {offsets = [0, 0], sizes = [2, 32], strides = [1, 1]} : vector<2x96xf32> to vector<2x32xf32>
    %85 = arith.addf %83, %84 : vector<2x32xf32>
    %86 = arith.negf %85 : vector<2x32xf32>
    %87 = math.exp %86 : vector<2x32xf32>
    %cst_53 = arith.constant 1.000000e+00 : f32
    %88 = vector.broadcast %cst_53 : f32 to vector<2x32xf32>
    %89 = arith.addf %88, %87 : vector<2x32xf32>
    %90 = arith.divf %88, %89 : vector<2x32xf32>
    %91 = vector.extract_strided_slice %77 {offsets = [0, 32], sizes = [2, 32], strides = [1, 1]} : vector<2x96xf32> to vector<2x32xf32>
    %92 = vector.extract_strided_slice %82 {offsets = [0, 32], sizes = [2, 32], strides = [1, 1]} : vector<2x96xf32> to vector<2x32xf32>
    %93 = arith.addf %91, %92 : vector<2x32xf32>
    %94 = arith.negf %93 : vector<2x32xf32>
    %95 = math.exp %94 : vector<2x32xf32>
    %cst_54 = arith.constant 1.000000e+00 : f32
    %96 = vector.broadcast %cst_54 : f32 to vector<2x32xf32>
    %97 = arith.addf %96, %95 : vector<2x32xf32>
    %98 = arith.divf %96, %97 : vector<2x32xf32>
    %99 = vector.extract_strided_slice %77 {offsets = [0, 64], sizes = [2, 32], strides = [1, 1]} : vector<2x96xf32> to vector<2x32xf32>
    %100 = vector.extract_strided_slice %82 {offsets = [0, 64], sizes = [2, 32], strides = [1, 1]} : vector<2x96xf32> to vector<2x32xf32>
    %101 = arith.mulf %90, %100 : vector<2x32xf32>
    %102 = arith.addf %99, %101 : vector<2x32xf32>
    %103 = math.tanh %102 : vector<2x32xf32>
    %cst_55 = arith.constant 1.000000e+00 : f32
    %104 = vector.broadcast %cst_55 : f32 to vector<2x32xf32>
    %105 = arith.subf %104, %98 : vector<2x32xf32>
    %106 = arith.mulf %105, %103 : vector<2x32xf32>
    %107 = arith.mulf %98, %6 : vector<2x32xf32>
    %108 = arith.addf %106, %107 : vector<2x32xf32>
    %c0_56 = arith.constant 0 : index
    %c0_57 = arith.constant 0 : index
    %109 = vector.load %arg18[%c0_56, %c0_57] : memref<32x18xf32, #tpu.memory_space<vmem>>, vector<32x18xf32>
    %cst_58 = arith.constant dense<0.000000e+00> : vector<2x18xf32>
    %110 = tpu.matmul %108, %109, %cst_58 {dimension_numbers = #tpu.dot_dimension_numbers<[1], [0], [0], [1], [0, 0, 1, 1], [], []>} : vector<2x32xf32>, vector<32x18xf32>, vector<2x18xf32> -> vector<2x18xf32>
    %c0_59 = arith.constant 0 : index
    %c0_60 = arith.constant 0 : index
    %111 = vector.load %arg19[%c0_59, %c0_60] : memref<32x18xf32, #tpu.memory_space<vmem>>, vector<32x18xf32>
    %cst_61 = arith.constant dense<0.000000e+00> : vector<2x18xf32>
    %112 = tpu.matmul %69, %111, %cst_61 {dimension_numbers = #tpu.dot_dimension_numbers<[1], [0], [0], [1], [0, 0, 1, 1], [], []>} : vector<2x32xf32>, vector<32x18xf32>, vector<2x18xf32> -> vector<2x18xf32>
    %113 = arith.addf %110, %112 : vector<2x18xf32>
    %c0_62 = arith.constant 0 : index
    %c0_63 = arith.constant 0 : index
    %114 = vector.load %arg20[%c0_62, %c0_63] : memref<16x18xf32, #tpu.memory_space<vmem>>, vector<16x18xf32>
    %cst_64 = arith.constant dense<0.000000e+00> : vector<2x18xf32>
    %115 = tpu.matmul %43, %114, %cst_64 {dimension_numbers = #tpu.dot_dimension_numbers<[1], [0], [0], [1], [0, 0, 1, 1], [], []>} : vector<2x16xf32>, vector<16x18xf32>, vector<2x18xf32> -> vector<2x18xf32>
    %116 = arith.addf %113, %115 : vector<2x18xf32>
    %c0_65 = arith.constant 0 : index
    %c0_66 = arith.constant 0 : index
    %117 = vector.load %arg21[%c0_65, %c0_66] : memref<1x18xf32, #tpu.memory_space<vmem>>, vector<1x18xf32>
    %118 = vector.broadcast %117 : vector<1x18xf32> to vector<2x18xf32>
    %119 = arith.addf %116, %118 : vector<2x18xf32>
    %c1 = arith.constant 1 : index
    %c0_67 = arith.constant 0 : index
    %c0_68 = arith.constant 0 : index
    %120 = vector.load %arg22[%c1, %c0_67, %c0_68] : memref<6x2x18xf32, #tpu.memory_space<vmem>>, vector<1x2x18xf32>
    %121 = vector.shape_cast %120 : vector<1x2x18xf32> to vector<2x18xf32>
    %122 = vector.shape_cast %119 : vector<2x18xf32> to vector<1x2x18xf32>
    tpu.vector_store %arg22[%c1, %c0_67, %c0_68], %122 {strides = array<i32>} : memref<6x2x18xf32, #tpu.memory_space<vmem>>, vector<1x2x18xf32>,
    %cst_69 = arith.constant dense<0xFF800000> : vector<2xf32>
    %123 = vector.multi_reduction <maximumf>, %119, %cst_69 [1] : vector<2x18xf32> to vector<2xf32>
    %124 = vector.shape_cast %123 : vector<2xf32> to vector<2x1xf32>
    %125 = vector.broadcast %124 : vector<2x1xf32> to vector<2x18xf32>
    %126 = arith.cmpf oeq, %119, %125 : vector<2x18xf32>
    %c18_i32_70 = arith.constant 18 : i32
    %127 = vector.broadcast %c18_i32_70 : i32 to vector<2x18xi32>
    %128 = arith.select %126, %18, %127 : vector<2x18xi1>, vector<2x18xi32>
    %cst_71 = arith.constant dense<2147483647> : vector<2xi32>
    %129 = vector.multi_reduction <minsi>, %128, %cst_71 [1] : vector<2x18xi32> to vector<2xi32>
    %130 = vector.shape_cast %129 : vector<2xi32> to vector<2x1xi32>
    %c1_72 = arith.constant 1 : index
    %131 = memref.load %arg1[%c1_72] : memref<5xi32, #tpu.memory_space<smem>>
    %c0_i32_73 = arith.constant 0 : i32
    %132 = arith.cmpi ne, %131, %c0_i32_73 : i32
    %c1_74 = arith.constant 1 : index
    %c0_75 = arith.constant 0 : index
    %c0_76 = arith.constant 0 : index
    %133 = vector.load %arg2[%c1_74, %c0_75, %c0_76] : memref<6x2x1xi32, #tpu.memory_space<vmem>>, vector<1x2x1xi32>
    %134 = vector.shape_cast %133 : vector<1x2x1xi32> to vector<2x1xi32>
    %135 = arith.select %132, %134, %130 : vector<2x1xi32>
    %136 = vector.broadcast %135 : vector<2x1xi32> to vector<2x18xi32>
    %137 = arith.cmpi eq, %19, %136 : vector<2x18xi32>
    %138 = arith.extui %137 : vector<2x18xi1> to vector<2x18xi32>
    %139 = arith.sitofp %138 : vector<2x18xi32> to vector<2x18xf32>
    %c0_77 = arith.constant 0 : index
    %c0_78 = arith.constant 0 : index
    %140 = vector.load %arg8[%c0_77, %c0_78] : memref<18x16xf32, #tpu.memory_space<vmem>>, vector<18x16xf32>
    %cst_79 = arith.constant dense<0.000000e+00> : vector<2x16xf32>
    %141 = tpu.matmul %139, %140, %cst_79 {dimension_numbers = #tpu.dot_dimension_numbers<[1], [0], [0], [1], [0, 0, 1, 1], [], []>} : vector<2x18xf32>, vector<18x16xf32>, vector<2x16xf32> -> vector<2x16xf32>
    %c0_80 = arith.constant 0 : index
    %c0_81 = arith.constant 0 : index
    %142 = vector.load %arg9[%c0_80, %c0_81] : memref<32x32xf32, #tpu.memory_space<vmem>>, vector<32x32xf32>
    %cst_82 = arith.constant dense<0.000000e+00> : vector<2x32xf32>
    %143 = tpu.matmul %108, %142, %cst_82 {dimension_numbers = #tpu.dot_dimension_numbers<[1], [0], [0], [1], [0, 0, 1, 1], [], []>} : vector<2x32xf32>, vector<32x32xf32>, vector<2x32xf32> -> vector<2x32xf32>
    %144 = vector.shape_cast %143 : vector<2x32xf32> to vector<2x1x32xf32>
    %145 = vector.broadcast %144 : vector<2x1x32xf32> to vector<2x8x32xf32>
    %146 = arith.addf %11, %145 : vector<2x8x32xf32>
    %c0_83 = arith.constant 0 : index
    %c0_84 = arith.constant 0 : index
    %147 = vector.load %arg11[%c0_83, %c0_84] : memref<1x32xf32, #tpu.memory_space<vmem>>, vector<1x32xf32>
    %148 = vector.shape_cast %147 : vector<1x32xf32> to vector<1x1x32xf32>
    %149 = vector.broadcast %148 : vector<1x1x32xf32> to vector<2x8x32xf32>
    %150 = arith.addf %146, %149 : vector<2x8x32xf32>
    %151 = math.tanh %150 : vector<2x8x32xf32>
    "tpu.trace_start"() <{level = 10 : i32, message = "bvh,bsh->bvs"}> : () -> ()
    %cst_85 = arith.constant dense<0.000000e+00> : vector<2x1x8xf32>
    %152 = tpu.matmul %17, %151, %cst_85 {dimension_numbers = #tpu.dot_dimension_numbers<[2], [2], [1], [1], [0, 0, 0, 1, 1, 1], [0], [0]>} : vector<2x1x32xf32>, vector<2x8x32xf32>, vector<2x1x8xf32> -> vector<2x1x8xf32>
    %cst_86 = arith.constant 0.000000e+00 : f32
    "tpu.trace_stop"() : () -> ()
    %153 = vector.broadcast %cst_86 : f32 to vector<2x1x8xf32>
    %154 = arith.cmpf ogt, %13, %153 : vector<2x1x8xf32>
    %cst_87 = arith.constant -1.000000e+10 : f32
    %155 = vector.broadcast %cst_87 : f32 to vector<2x1x8xf32>
    %156 = arith.select %154, %152, %155 : vector<2x1x8xi1>, vector<2x1x8xf32>
    %cst_88 = arith.constant dense<0xFF800000> : vector<2x1xf32>
    %157 = vector.multi_reduction <maximumf>, %156, %cst_88 [2] : vector<2x1x8xf32> to vector<2x1xf32>
    %158 = vector.shape_cast %157 : vector<2x1xf32> to vector<2x1x1xf32>
    %159 = vector.broadcast %158 : vector<2x1x1xf32> to vector<2x1x8xf32>
    %160 = arith.subf %156, %159 : vector<2x1x8xf32>
    %161 = math.exp %160 : vector<2x1x8xf32>
    %cst_89 = arith.constant dense<0.000000e+00> : vector<2x1xf32>
    %162 = vector.multi_reduction <add>, %161, %cst_89 [2] : vector<2x1x8xf32> to vector<2x1xf32>
    %163 = vector.shape_cast %162 : vector<2x1xf32> to vector<2x1x1xf32>
    %164 = vector.broadcast %163 : vector<2x1x1xf32> to vector<2x1x8xf32>
    %165 = arith.divf %161, %164 : vector<2x1x8xf32>
    "tpu.trace_start"() <{level = 10 : i32, message = "bvs,bsh->bvh"}> : () -> ()
    %cst_90 = arith.constant dense<0.000000e+00> : vector<2x1x32xf32>
    %166 = tpu.matmul %165, %7, %cst_90 {dimension_numbers = #tpu.dot_dimension_numbers<[2], [1], [1], [2], [0, 0, 0, 1, 1, 2], [0], [0]>} : vector<2x1x8xf32>, vector<2x8x32xf32>, vector<2x1x32xf32> -> vector<2x1x32xf32>
    "tpu.trace_stop"() : () -> ()
    %167 = vector.shape_cast %166 : vector<2x1x32xf32> to vector<2x32xf32>
    %c0_91 = arith.constant 0 : index
    %c0_92 = arith.constant 0 : index
    %168 = vector.load %arg13[%c0_91, %c0_92] : memref<16x96xf32, #tpu.memory_space<vmem>>, vector<16x96xf32>
    %cst_93 = arith.constant dense<0.000000e+00> : vector<2x96xf32>
    %169 = tpu.matmul %141, %168, %cst_93 {dimension_numbers = #tpu.dot_dimension_numbers<[1], [0], [0], [1], [0, 0, 1, 1], [], []>} : vector<2x16xf32>, vector<16x96xf32>, vector<2x96xf32> -> vector<2x96xf32>
    %c0_94 = arith.constant 0 : index
    %c0_95 = arith.constant 0 : index
    %170 = vector.load %arg14[%c0_94, %c0_95] : memref<32x96xf32, #tpu.memory_space<vmem>>, vector<32x96xf32>
    %cst_96 = arith.constant dense<0.000000e+00> : vector<2x96xf32>
    %171 = tpu.matmul %167, %170, %cst_96 {dimension_numbers = #tpu.dot_dimension_numbers<[1], [0], [0], [1], [0, 0, 1, 1], [], []>} : vector<2x32xf32>, vector<32x96xf32>, vector<2x96xf32> -> vector<2x96xf32>
    %172 = arith.addf %169, %171 : vector<2x96xf32>
    %c0_97 = arith.constant 0 : index
    %c0_98 = arith.constant 0 : index
    %173 = vector.load %arg16[%c0_97, %c0_98] : memref<1x96xf32, #tpu.memory_space<vmem>>, vector<1x96xf32>
    %174 = vector.broadcast %173 : vector<1x96xf32> to vector<2x96xf32>
    %175 = arith.addf %172, %174 : vector<2x96xf32>
    %c0_99 = arith.constant 0 : index
    %c0_100 = arith.constant 0 : index
    %176 = vector.load %arg15[%c0_99, %c0_100] : memref<32x96xf32, #tpu.memory_space<vmem>>, vector<32x96xf32>
    %cst_101 = arith.constant dense<0.000000e+00> : vector<2x96xf32>
    %177 = tpu.matmul %108, %176, %cst_101 {dimension_numbers = #tpu.dot_dimension_numbers<[1], [0], [0], [1], [0, 0, 1, 1], [], []>} : vector<2x32xf32>, vector<32x96xf32>, vector<2x96xf32> -> vector<2x96xf32>
    %c0_102 = arith.constant 0 : index
    %c0_103 = arith.constant 0 : index
    %178 = vector.load %arg17[%c0_102, %c0_103] : memref<1x96xf32, #tpu.memory_space<vmem>>, vector<1x96xf32>
    %179 = vector.broadcast %178 : vector<1x96xf32> to vector<2x96xf32>
    %180 = arith.addf %177, %179 : vector<2x96xf32>
    %181 = vector.extract_strided_slice %175 {offsets = [0, 0], sizes = [2, 32], strides = [1, 1]} : vector<2x96xf32> to vector<2x32xf32>
    %182 = vector.extract_strided_slice %180 {offsets = [0, 0], sizes = [2, 32], strides = [1, 1]} : vector<2x96xf32> to vector<2x32xf32>
    %183 = arith.addf %181, %182 : vector<2x32xf32>
    %184 = arith.negf %183 : vector<2x32xf32>
    %185 = math.exp %184 : vector<2x32xf32>
    %cst_104 = arith.constant 1.000000e+00 : f32
    %186 = vector.broadcast %cst_104 : f32 to vector<2x32xf32>
    %187 = arith.addf %186, %185 : vector<2x32xf32>
    %188 = arith.divf %186, %187 : vector<2x32xf32>
    %189 = vector.extract_strided_slice %175 {offsets = [0, 32], sizes = [2, 32], strides = [1, 1]} : vector<2x96xf32> to vector<2x32xf32>
    %190 = vector.extract_strided_slice %180 {offsets = [0, 32], sizes = [2, 32], strides = [1, 1]} : vector<2x96xf32> to vector<2x32xf32>
    %191 = arith.addf %189, %190 : vector<2x32xf32>
    %192 = arith.negf %191 : vector<2x32xf32>
    %193 = math.exp %192 : vector<2x32xf32>
    %cst_105 = arith.constant 1.000000e+00 : f32
    %194 = vector.broadcast %cst_105 : f32 to vector<2x32xf32>
    %195 = arith.addf %194, %193 : vector<2x32xf32>
    %196 = arith.divf %194, %195 : vector<2x32xf32>
    %197 = vector.extract_strided_slice %175 {offsets = [0, 64], sizes = [2, 32], strides = [1, 1]} : vector<2x96xf32> to vector<2x32xf32>
    %198 = vector.extract_strided_slice %180 {offsets = [0, 64], sizes = [2, 32], strides = [1, 1]} : vector<2x96xf32> to vector<2x32xf32>
    %199 = arith.mulf %188, %198 : vector<2x32xf32>
    %200 = arith.addf %197, %199 : vector<2x32xf32>
    %201 = math.tanh %200 : vector<2x32xf32>
    %cst_106 = arith.constant 1.000000e+00 : f32
    %202 = vector.broadcast %cst_106 : f32 to vector<2x32xf32>
    %203 = arith.subf %202, %196 : vector<2x32xf32>
    %204 = arith.mulf %203, %201 : vector<2x32xf32>
    %205 = arith.mulf %196, %108 : vector<2x32xf32>
    %206 = arith.addf %204, %205 : vector<2x32xf32>
    %c0_107 = arith.constant 0 : index
    %c0_108 = arith.constant 0 : index
    %207 = vector.load %arg18[%c0_107, %c0_108] : memref<32x18xf32, #tpu.memory_space<vmem>>, vector<32x18xf32>
    %cst_109 = arith.constant dense<0.000000e+00> : vector<2x18xf32>
    %208 = tpu.matmul %206, %207, %cst_109 {dimension_numbers = #tpu.dot_dimension_numbers<[1], [0], [0], [1], [0, 0, 1, 1], [], []>} : vector<2x32xf32>, vector<32x18xf32>, vector<2x18xf32> -> vector<2x18xf32>
    %c0_110 = arith.constant 0 : index
    %c0_111 = arith.constant 0 : index
    %209 = vector.load %arg19[%c0_110, %c0_111] : memref<32x18xf32, #tpu.memory_space<vmem>>, vector<32x18xf32>
    %cst_112 = arith.constant dense<0.000000e+00> : vector<2x18xf32>
    %210 = tpu.matmul %167, %209, %cst_112 {dimension_numbers = #tpu.dot_dimension_numbers<[1], [0], [0], [1], [0, 0, 1, 1], [], []>} : vector<2x32xf32>, vector<32x18xf32>, vector<2x18xf32> -> vector<2x18xf32>
    %211 = arith.addf %208, %210 : vector<2x18xf32>
    %c0_113 = arith.constant 0 : index
    %c0_114 = arith.constant 0 : index
    %212 = vector.load %arg20[%c0_113, %c0_114] : memref<16x18xf32, #tpu.memory_space<vmem>>, vector<16x18xf32>
    %cst_115 = arith.constant dense<0.000000e+00> : vector<2x18xf32>
    %213 = tpu.matmul %141, %212, %cst_115 {dimension_numbers = #tpu.dot_dimension_numbers<[1], [0], [0], [1], [0, 0, 1, 1], [], []>} : vector<2x16xf32>, vector<16x18xf32>, vector<2x18xf32> -> vector<2x18xf32>
    %214 = arith.addf %211, %213 : vector<2x18xf32>
    %c0_116 = arith.constant 0 : index
    %c0_117 = arith.constant 0 : index
    %215 = vector.load %arg21[%c0_116, %c0_117] : memref<1x18xf32, #tpu.memory_space<vmem>>, vector<1x18xf32>
    %216 = vector.broadcast %215 : vector<1x18xf32> to vector<2x18xf32>
    %217 = arith.addf %214, %216 : vector<2x18xf32>
    %c2 = arith.constant 2 : index
    %c0_118 = arith.constant 0 : index
    %c0_119 = arith.constant 0 : index
    %218 = vector.load %arg22[%c2, %c0_118, %c0_119] : memref<6x2x18xf32, #tpu.memory_space<vmem>>, vector<1x2x18xf32>
    %219 = vector.shape_cast %218 : vector<1x2x18xf32> to vector<2x18xf32>
    %220 = vector.shape_cast %217 : vector<2x18xf32> to vector<1x2x18xf32>
    tpu.vector_store %arg22[%c2, %c0_118, %c0_119], %220 {strides = array<i32>} : memref<6x2x18xf32, #tpu.memory_space<vmem>>, vector<1x2x18xf32>,
    %cst_120 = arith.constant dense<0xFF800000> : vector<2xf32>
    %221 = vector.multi_reduction <maximumf>, %217, %cst_120 [1] : vector<2x18xf32> to vector<2xf32>
    %222 = vector.shape_cast %221 : vector<2xf32> to vector<2x1xf32>
    %223 = vector.broadcast %222 : vector<2x1xf32> to vector<2x18xf32>
    %224 = arith.cmpf oeq, %217, %223 : vector<2x18xf32>
    %c18_i32_121 = arith.constant 18 : i32
    %225 = vector.broadcast %c18_i32_121 : i32 to vector<2x18xi32>
    %226 = arith.select %224, %18, %225 : vector<2x18xi1>, vector<2x18xi32>
    %cst_122 = arith.constant dense<2147483647> : vector<2xi32>
    %227 = vector.multi_reduction <minsi>, %226, %cst_122 [1] : vector<2x18xi32> to vector<2xi32>
    %228 = vector.shape_cast %227 : vector<2xi32> to vector<2x1xi32>
    %c2_123 = arith.constant 2 : index
    %229 = memref.load %arg1[%c2_123] : memref<5xi32, #tpu.memory_space<smem>>
    %c0_i32_124 = arith.constant 0 : i32
    %230 = arith.cmpi ne, %229, %c0_i32_124 : i32
    %c2_125 = arith.constant 2 : index
    %c0_126 = arith.constant 0 : index
    %c0_127 = arith.constant 0 : index
    %231 = vector.load %arg2[%c2_125, %c0_126, %c0_127] : memref<6x2x1xi32, #tpu.memory_space<vmem>>, vector<1x2x1xi32>
    %232 = vector.shape_cast %231 : vector<1x2x1xi32> to vector<2x1xi32>
    %233 = arith.select %230, %232, %228 : vector<2x1xi32>
    %234 = vector.broadcast %233 : vector<2x1xi32> to vector<2x18xi32>
    %235 = arith.cmpi eq, %19, %234 : vector<2x18xi32>
    %236 = arith.extui %235 : vector<2x18xi1> to vector<2x18xi32>
    %237 = arith.sitofp %236 : vector<2x18xi32> to vector<2x18xf32>
    %c0_128 = arith.constant 0 : index
    %c0_129 = arith.constant 0 : index
    %238 = vector.load %arg8[%c0_128, %c0_129] : memref<18x16xf32, #tpu.memory_space<vmem>>, vector<18x16xf32>
    %cst_130 = arith.constant dense<0.000000e+00> : vector<2x16xf32>
    %239 = tpu.matmul %237, %238, %cst_130 {dimension_numbers = #tpu.dot_dimension_numbers<[1], [0], [0], [1], [0, 0, 1, 1], [], []>} : vector<2x18xf32>, vector<18x16xf32>, vector<2x16xf32> -> vector<2x16xf32>
    %c0_131 = arith.constant 0 : index
    %c0_132 = arith.constant 0 : index
    %240 = vector.load %arg9[%c0_131, %c0_132] : memref<32x32xf32, #tpu.memory_space<vmem>>, vector<32x32xf32>
    %cst_133 = arith.constant dense<0.000000e+00> : vector<2x32xf32>
    %241 = tpu.matmul %206, %240, %cst_133 {dimension_numbers = #tpu.dot_dimension_numbers<[1], [0], [0], [1], [0, 0, 1, 1], [], []>} : vector<2x32xf32>, vector<32x32xf32>, vector<2x32xf32> -> vector<2x32xf32>
    %242 = vector.shape_cast %241 : vector<2x32xf32> to vector<2x1x32xf32>
    %243 = vector.broadcast %242 : vector<2x1x32xf32> to vector<2x8x32xf32>
    %244 = arith.addf %11, %243 : vector<2x8x32xf32>
    %c0_134 = arith.constant 0 : index
    %c0_135 = arith.constant 0 : index
    %245 = vector.load %arg11[%c0_134, %c0_135] : memref<1x32xf32, #tpu.memory_space<vmem>>, vector<1x32xf32>
    %246 = vector.shape_cast %245 : vector<1x32xf32> to vector<1x1x32xf32>
    %247 = vector.broadcast %246 : vector<1x1x32xf32> to vector<2x8x32xf32>
    %248 = arith.addf %244, %247 : vector<2x8x32xf32>
    %249 = math.tanh %248 : vector<2x8x32xf32>
    "tpu.trace_start"() <{level = 10 : i32, message = "bvh,bsh->bvs"}> : () -> ()
    %cst_136 = arith.constant dense<0.000000e+00> : vector<2x1x8xf32>
    %250 = tpu.matmul %17, %249, %cst_136 {dimension_numbers = #tpu.dot_dimension_numbers<[2], [2], [1], [1], [0, 0, 0, 1, 1, 1], [0], [0]>} : vector<2x1x32xf32>, vector<2x8x32xf32>, vector<2x1x8xf32> -> vector<2x1x8xf32>
    %cst_137 = arith.constant 0.000000e+00 : f32
    "tpu.trace_stop"() : () -> ()
    %251 = vector.broadcast %cst_137 : f32 to vector<2x1x8xf32>
    %252 = arith.cmpf ogt, %13, %251 : vector<2x1x8xf32>
    %cst_138 = arith.constant -1.000000e+10 : f32
    %253 = vector.broadcast %cst_138 : f32 to vector<2x1x8xf32>
    %254 = arith.select %252, %250, %253 : vector<2x1x8xi1>, vector<2x1x8xf32>
    %cst_139 = arith.constant dense<0xFF800000> : vector<2x1xf32>
    %255 = vector.multi_reduction <maximumf>, %254, %cst_139 [2] : vector<2x1x8xf32> to vector<2x1xf32>
    %256 = vector.shape_cast %255 : vector<2x1xf32> to vector<2x1x1xf32>
    %257 = vector.broadcast %256 : vector<2x1x1xf32> to vector<2x1x8xf32>
    %258 = arith.subf %254, %257 : vector<2x1x8xf32>
    %259 = math.exp %258 : vector<2x1x8xf32>
    %cst_140 = arith.constant dense<0.000000e+00> : vector<2x1xf32>
    %260 = vector.multi_reduction <add>, %259, %cst_140 [2] : vector<2x1x8xf32> to vector<2x1xf32>
    %261 = vector.shape_cast %260 : vector<2x1xf32> to vector<2x1x1xf32>
    %262 = vector.broadcast %261 : vector<2x1x1xf32> to vector<2x1x8xf32>
    %263 = arith.divf %259, %262 : vector<2x1x8xf32>
    "tpu.trace_start"() <{level = 10 : i32, message = "bvs,bsh->bvh"}> : () -> ()
    %cst_141 = arith.constant dense<0.000000e+00> : vector<2x1x32xf32>
    %264 = tpu.matmul %263, %7, %cst_141 {dimension_numbers = #tpu.dot_dimension_numbers<[2], [1], [1], [2], [0, 0, 0, 1, 1, 2], [0], [0]>} : vector<2x1x8xf32>, vector<2x8x32xf32>, vector<2x1x32xf32> -> vector<2x1x32xf32>
    "tpu.trace_stop"() : () -> ()
    %265 = vector.shape_cast %264 : vector<2x1x32xf32> to vector<2x32xf32>
    %c0_142 = arith.constant 0 : index
    %c0_143 = arith.constant 0 : index
    %266 = vector.load %arg13[%c0_142, %c0_143] : memref<16x96xf32, #tpu.memory_space<vmem>>, vector<16x96xf32>
    %cst_144 = arith.constant dense<0.000000e+00> : vector<2x96xf32>
    %267 = tpu.matmul %239, %266, %cst_144 {dimension_numbers = #tpu.dot_dimension_numbers<[1], [0], [0], [1], [0, 0, 1, 1], [], []>} : vector<2x16xf32>, vector<16x96xf32>, vector<2x96xf32> -> vector<2x96xf32>
    %c0_145 = arith.constant 0 : index
    %c0_146 = arith.constant 0 : index
    %268 = vector.load %arg14[%c0_145, %c0_146] : memref<32x96xf32, #tpu.memory_space<vmem>>, vector<32x96xf32>
    %cst_147 = arith.constant dense<0.000000e+00> : vector<2x96xf32>
    %269 = tpu.matmul %265, %268, %cst_147 {dimension_numbers = #tpu.dot_dimension_numbers<[1], [0], [0], [1], [0, 0, 1, 1], [], []>} : vector<2x32xf32>, vector<32x96xf32>, vector<2x96xf32> -> vector<2x96xf32>
    %270 = arith.addf %267, %269 : vector<2x96xf32>
    %c0_148 = arith.constant 0 : index
    %c0_149 = arith.constant 0 : index
    %271 = vector.load %arg16[%c0_148, %c0_149] : memref<1x96xf32, #tpu.memory_space<vmem>>, vector<1x96xf32>
    %272 = vector.broadcast %271 : vector<1x96xf32> to vector<2x96xf32>
    %273 = arith.addf %270, %272 : vector<2x96xf32>
    %c0_150 = arith.constant 0 : index
    %c0_151 = arith.constant 0 : index
    %274 = vector.load %arg15[%c0_150, %c0_151] : memref<32x96xf32, #tpu.memory_space<vmem>>, vector<32x96xf32>
    %cst_152 = arith.constant dense<0.000000e+00> : vector<2x96xf32>
    %275 = tpu.matmul %206, %274, %cst_152 {dimension_numbers = #tpu.dot_dimension_numbers<[1], [0], [0], [1], [0, 0, 1, 1], [], []>} : vector<2x32xf32>, vector<32x96xf32>, vector<2x96xf32> -> vector<2x96xf32>
    %c0_153 = arith.constant 0 : index
    %c0_154 = arith.constant 0 : index
    %276 = vector.load %arg17[%c0_153, %c0_154] : memref<1x96xf32, #tpu.memory_space<vmem>>, vector<1x96xf32>
    %277 = vector.broadcast %276 : vector<1x96xf32> to vector<2x96xf32>
    %278 = arith.addf %275, %277 : vector<2x96xf32>
    %279 = vector.extract_strided_slice %273 {offsets = [0, 0], sizes = [2, 32], strides = [1, 1]} : vector<2x96xf32> to vector<2x32xf32>
    %280 = vector.extract_strided_slice %278 {offsets = [0, 0], sizes = [2, 32], strides = [1, 1]} : vector<2x96xf32> to vector<2x32xf32>
    %281 = arith.addf %279, %280 : vector<2x32xf32>
    %282 = arith.negf %281 : vector<2x32xf32>
    %283 = math.exp %282 : vector<2x32xf32>
    %cst_155 = arith.constant 1.000000e+00 : f32
    %284 = vector.broadcast %cst_155 : f32 to vector<2x32xf32>
    %285 = arith.addf %284, %283 : vector<2x32xf32>
    %286 = arith.divf %284, %285 : vector<2x32xf32>
    %287 = vector.extract_strided_slice %273 {offsets = [0, 32], sizes = [2, 32], strides = [1, 1]} : vector<2x96xf32> to vector<2x32xf32>
    %288 = vector.extract_strided_slice %278 {offsets = [0, 32], sizes = [2, 32], strides = [1, 1]} : vector<2x96xf32> to vector<2x32xf32>
    %289 = arith.addf %287, %288 : vector<2x32xf32>
    %290 = arith.negf %289 : vector<2x32xf32>
    %291 = math.exp %290 : vector<2x32xf32>
    %cst_156 = arith.constant 1.000000e+00 : f32
    %292 = vector.broadcast %cst_156 : f32 to vector<2x32xf32>
    %293 = arith.addf %292, %291 : vector<2x32xf32>
    %294 = arith.divf %292, %293 : vector<2x32xf32>
    %295 = vector.extract_strided_slice %273 {offsets = [0, 64], sizes = [2, 32], strides = [1, 1]} : vector<2x96xf32> to vector<2x32xf32>
    %296 = vector.extract_strided_slice %278 {offsets = [0, 64], sizes = [2, 32], strides = [1, 1]} : vector<2x96xf32> to vector<2x32xf32>
    %297 = arith.mulf %286, %296 : vector<2x32xf32>
    %298 = arith.addf %295, %297 : vector<2x32xf32>
    %299 = math.tanh %298 : vector<2x32xf32>
    %cst_157 = arith.constant 1.000000e+00 : f32
    %300 = vector.broadcast %cst_157 : f32 to vector<2x32xf32>
    %301 = arith.subf %300, %294 : vector<2x32xf32>
    %302 = arith.mulf %301, %299 : vector<2x32xf32>
    %303 = arith.mulf %294, %206 : vector<2x32xf32>
    %304 = arith.addf %302, %303 : vector<2x32xf32>
    %c0_158 = arith.constant 0 : index
    %c0_159 = arith.constant 0 : index
    %305 = vector.load %arg18[%c0_158, %c0_159] : memref<32x18xf32, #tpu.memory_space<vmem>>, vector<32x18xf32>
    %cst_160 = arith.constant dense<0.000000e+00> : vector<2x18xf32>
    %306 = tpu.matmul %304, %305, %cst_160 {dimension_numbers = #tpu.dot_dimension_numbers<[1], [0], [0], [1], [0, 0, 1, 1], [], []>} : vector<2x32xf32>, vector<32x18xf32>, vector<2x18xf32> -> vector<2x18xf32>
    %c0_161 = arith.constant 0 : index
    %c0_162 = arith.constant 0 : index
    %307 = vector.load %arg19[%c0_161, %c0_162] : memref<32x18xf32, #tpu.memory_space<vmem>>, vector<32x18xf32>
    %cst_163 = arith.constant dense<0.000000e+00> : vector<2x18xf32>
    %308 = tpu.matmul %265, %307, %cst_163 {dimension_numbers = #tpu.dot_dimension_numbers<[1], [0], [0], [1], [0, 0, 1, 1], [], []>} : vector<2x32xf32>, vector<32x18xf32>, vector<2x18xf32> -> vector<2x18xf32>
    %309 = arith.addf %306, %308 : vector<2x18xf32>
    %c0_164 = arith.constant 0 : index
    %c0_165 = arith.constant 0 : index
    %310 = vector.load %arg20[%c0_164, %c0_165] : memref<16x18xf32, #tpu.memory_space<vmem>>, vector<16x18xf32>
    %cst_166 = arith.constant dense<0.000000e+00> : vector<2x18xf32>
    %311 = tpu.matmul %239, %310, %cst_166 {dimension_numbers = #tpu.dot_dimension_numbers<[1], [0], [0], [1], [0, 0, 1, 1], [], []>} : vector<2x16xf32>, vector<16x18xf32>, vector<2x18xf32> -> vector<2x18xf32>
    %312 = arith.addf %309, %311 : vector<2x18xf32>
    %c0_167 = arith.constant 0 : index
    %c0_168 = arith.constant 0 : index
    %313 = vector.load %arg21[%c0_167, %c0_168] : memref<1x18xf32, #tpu.memory_space<vmem>>, vector<1x18xf32>
    %314 = vector.broadcast %313 : vector<1x18xf32> to vector<2x18xf32>
    %315 = arith.addf %312, %314 : vector<2x18xf32>
    %c3 = arith.constant 3 : index
    %c0_169 = arith.constant 0 : index
    %c0_170 = arith.constant 0 : index
    %316 = vector.load %arg22[%c3, %c0_169, %c0_170] : memref<6x2x18xf32, #tpu.memory_space<vmem>>, vector<1x2x18xf32>
    %317 = vector.shape_cast %316 : vector<1x2x18xf32> to vector<2x18xf32>
    %318 = vector.shape_cast %315 : vector<2x18xf32> to vector<1x2x18xf32>
    tpu.vector_store %arg22[%c3, %c0_169, %c0_170], %318 {strides = array<i32>} : memref<6x2x18xf32, #tpu.memory_space<vmem>>, vector<1x2x18xf32>,
    %cst_171 = arith.constant dense<0xFF800000> : vector<2xf32>
    %319 = vector.multi_reduction <maximumf>, %315, %cst_171 [1] : vector<2x18xf32> to vector<2xf32>
    %320 = vector.shape_cast %319 : vector<2xf32> to vector<2x1xf32>
    %321 = vector.broadcast %320 : vector<2x1xf32> to vector<2x18xf32>
    %322 = arith.cmpf oeq, %315, %321 : vector<2x18xf32>
    %c18_i32_172 = arith.constant 18 : i32
    %323 = vector.broadcast %c18_i32_172 : i32 to vector<2x18xi32>
    %324 = arith.select %322, %18, %323 : vector<2x18xi1>, vector<2x18xi32>
    %cst_173 = arith.constant dense<2147483647> : vector<2xi32>
    %325 = vector.multi_reduction <minsi>, %324, %cst_173 [1] : vector<2x18xi32> to vector<2xi32>
    %326 = vector.shape_cast %325 : vector<2xi32> to vector<2x1xi32>
    %c3_174 = arith.constant 3 : index
    %327 = memref.load %arg1[%c3_174] : memref<5xi32, #tpu.memory_space<smem>>
    %c0_i32_175 = arith.constant 0 : i32
    %328 = arith.cmpi ne, %327, %c0_i32_175 : i32
    %c3_176 = arith.constant 3 : index
    %c0_177 = arith.constant 0 : index
    %c0_178 = arith.constant 0 : index
    %329 = vector.load %arg2[%c3_176, %c0_177, %c0_178] : memref<6x2x1xi32, #tpu.memory_space<vmem>>, vector<1x2x1xi32>
    %330 = vector.shape_cast %329 : vector<1x2x1xi32> to vector<2x1xi32>
    %331 = arith.select %328, %330, %326 : vector<2x1xi32>
    %332 = vector.broadcast %331 : vector<2x1xi32> to vector<2x18xi32>
    %333 = arith.cmpi eq, %19, %332 : vector<2x18xi32>
    %334 = arith.extui %333 : vector<2x18xi1> to vector<2x18xi32>
    %335 = arith.sitofp %334 : vector<2x18xi32> to vector<2x18xf32>
    %c0_179 = arith.constant 0 : index
    %c0_180 = arith.constant 0 : index
    %336 = vector.load %arg8[%c0_179, %c0_180] : memref<18x16xf32, #tpu.memory_space<vmem>>, vector<18x16xf32>
    %cst_181 = arith.constant dense<0.000000e+00> : vector<2x16xf32>
    %337 = tpu.matmul %335, %336, %cst_181 {dimension_numbers = #tpu.dot_dimension_numbers<[1], [0], [0], [1], [0, 0, 1, 1], [], []>} : vector<2x18xf32>, vector<18x16xf32>, vector<2x16xf32> -> vector<2x16xf32>
    %c0_182 = arith.constant 0 : index
    %c0_183 = arith.constant 0 : index
    %338 = vector.load %arg9[%c0_182, %c0_183] : memref<32x32xf32, #tpu.memory_space<vmem>>, vector<32x32xf32>
    %cst_184 = arith.constant dense<0.000000e+00> : vector<2x32xf32>
    %339 = tpu.matmul %304, %338, %cst_184 {dimension_numbers = #tpu.dot_dimension_numbers<[1], [0], [0], [1], [0, 0, 1, 1], [], []>} : vector<2x32xf32>, vector<32x32xf32>, vector<2x32xf32> -> vector<2x32xf32>
    %340 = vector.shape_cast %339 : vector<2x32xf32> to vector<2x1x32xf32>
    %341 = vector.broadcast %340 : vector<2x1x32xf32> to vector<2x8x32xf32>
    %342 = arith.addf %11, %341 : vector<2x8x32xf32>
    %c0_185 = arith.constant 0 : index
    %c0_186 = arith.constant 0 : index
    %343 = vector.load %arg11[%c0_185, %c0_186] : memref<1x32xf32, #tpu.memory_space<vmem>>, vector<1x32xf32>
    %344 = vector.shape_cast %343 : vector<1x32xf32> to vector<1x1x32xf32>
    %345 = vector.broadcast %344 : vector<1x1x32xf32> to vector<2x8x32xf32>
    %346 = arith.addf %342, %345 : vector<2x8x32xf32>
    %347 = math.tanh %346 : vector<2x8x32xf32>
    "tpu.trace_start"() <{level = 10 : i32, message = "bvh,bsh->bvs"}> : () -> ()
    %cst_187 = arith.constant dense<0.000000e+00> : vector<2x1x8xf32>
    %348 = tpu.matmul %17, %347, %cst_187 {dimension_numbers = #tpu.dot_dimension_numbers<[2], [2], [1], [1], [0, 0, 0, 1, 1, 1], [0], [0]>} : vector<2x1x32xf32>, vector<2x8x32xf32>, vector<2x1x8xf32> -> vector<2x1x8xf32>
    %cst_188 = arith.constant 0.000000e+00 : f32
    "tpu.trace_stop"() : () -> ()
    %349 = vector.broadcast %cst_188 : f32 to vector<2x1x8xf32>
    %350 = arith.cmpf ogt, %13, %349 : vector<2x1x8xf32>
    %cst_189 = arith.constant -1.000000e+10 : f32
    %351 = vector.broadcast %cst_189 : f32 to vector<2x1x8xf32>
    %352 = arith.select %350, %348, %351 : vector<2x1x8xi1>, vector<2x1x8xf32>
    %cst_190 = arith.constant dense<0xFF800000> : vector<2x1xf32>
    %353 = vector.multi_reduction <maximumf>, %352, %cst_190 [2] : vector<2x1x8xf32> to vector<2x1xf32>
    %354 = vector.shape_cast %353 : vector<2x1xf32> to vector<2x1x1xf32>
    %355 = vector.broadcast %354 : vector<2x1x1xf32> to vector<2x1x8xf32>
    %356 = arith.subf %352, %355 : vector<2x1x8xf32>
    %357 = math.exp %356 : vector<2x1x8xf32>
    %cst_191 = arith.constant dense<0.000000e+00> : vector<2x1xf32>
    %358 = vector.multi_reduction <add>, %357, %cst_191 [2] : vector<2x1x8xf32> to vector<2x1xf32>
    %359 = vector.shape_cast %358 : vector<2x1xf32> to vector<2x1x1xf32>
    %360 = vector.broadcast %359 : vector<2x1x1xf32> to vector<2x1x8xf32>
    %361 = arith.divf %357, %360 : vector<2x1x8xf32>
    "tpu.trace_start"() <{level = 10 : i32, message = "bvs,bsh->bvh"}> : () -> ()
    %cst_192 = arith.constant dense<0.000000e+00> : vector<2x1x32xf32>
    %362 = tpu.matmul %361, %7, %cst_192 {dimension_numbers = #tpu.dot_dimension_numbers<[2], [1], [1], [2], [0, 0, 0, 1, 1, 2], [0], [0]>} : vector<2x1x8xf32>, vector<2x8x32xf32>, vector<2x1x32xf32> -> vector<2x1x32xf32>
    "tpu.trace_stop"() : () -> ()
    %363 = vector.shape_cast %362 : vector<2x1x32xf32> to vector<2x32xf32>
    %c0_193 = arith.constant 0 : index
    %c0_194 = arith.constant 0 : index
    %364 = vector.load %arg13[%c0_193, %c0_194] : memref<16x96xf32, #tpu.memory_space<vmem>>, vector<16x96xf32>
    %cst_195 = arith.constant dense<0.000000e+00> : vector<2x96xf32>
    %365 = tpu.matmul %337, %364, %cst_195 {dimension_numbers = #tpu.dot_dimension_numbers<[1], [0], [0], [1], [0, 0, 1, 1], [], []>} : vector<2x16xf32>, vector<16x96xf32>, vector<2x96xf32> -> vector<2x96xf32>
    %c0_196 = arith.constant 0 : index
    %c0_197 = arith.constant 0 : index
    %366 = vector.load %arg14[%c0_196, %c0_197] : memref<32x96xf32, #tpu.memory_space<vmem>>, vector<32x96xf32>
    %cst_198 = arith.constant dense<0.000000e+00> : vector<2x96xf32>
    %367 = tpu.matmul %363, %366, %cst_198 {dimension_numbers = #tpu.dot_dimension_numbers<[1], [0], [0], [1], [0, 0, 1, 1], [], []>} : vector<2x32xf32>, vector<32x96xf32>, vector<2x96xf32> -> vector<2x96xf32>
    %368 = arith.addf %365, %367 : vector<2x96xf32>
    %c0_199 = arith.constant 0 : index
    %c0_200 = arith.constant 0 : index
    %369 = vector.load %arg16[%c0_199, %c0_200] : memref<1x96xf32, #tpu.memory_space<vmem>>, vector<1x96xf32>
    %370 = vector.broadcast %369 : vector<1x96xf32> to vector<2x96xf32>
    %371 = arith.addf %368, %370 : vector<2x96xf32>
    %c0_201 = arith.constant 0 : index
    %c0_202 = arith.constant 0 : index
    %372 = vector.load %arg15[%c0_201, %c0_202] : memref<32x96xf32, #tpu.memory_space<vmem>>, vector<32x96xf32>
    %cst_203 = arith.constant dense<0.000000e+00> : vector<2x96xf32>
    %373 = tpu.matmul %304, %372, %cst_203 {dimension_numbers = #tpu.dot_dimension_numbers<[1], [0], [0], [1], [0, 0, 1, 1], [], []>} : vector<2x32xf32>, vector<32x96xf32>, vector<2x96xf32> -> vector<2x96xf32>
    %c0_204 = arith.constant 0 : index
    %c0_205 = arith.constant 0 : index
    %374 = vector.load %arg17[%c0_204, %c0_205] : memref<1x96xf32, #tpu.memory_space<vmem>>, vector<1x96xf32>
    %375 = vector.broadcast %374 : vector<1x96xf32> to vector<2x96xf32>
    %376 = arith.addf %373, %375 : vector<2x96xf32>
    %377 = vector.extract_strided_slice %371 {offsets = [0, 0], sizes = [2, 32], strides = [1, 1]} : vector<2x96xf32> to vector<2x32xf32>
    %378 = vector.extract_strided_slice %376 {offsets = [0, 0], sizes = [2, 32], strides = [1, 1]} : vector<2x96xf32> to vector<2x32xf32>
    %379 = arith.addf %377, %378 : vector<2x32xf32>
    %380 = arith.negf %379 : vector<2x32xf32>
    %381 = math.exp %380 : vector<2x32xf32>
    %cst_206 = arith.constant 1.000000e+00 : f32
    %382 = vector.broadcast %cst_206 : f32 to vector<2x32xf32>
    %383 = arith.addf %382, %381 : vector<2x32xf32>
    %384 = arith.divf %382, %383 : vector<2x32xf32>
    %385 = vector.extract_strided_slice %371 {offsets = [0, 32], sizes = [2, 32], strides = [1, 1]} : vector<2x96xf32> to vector<2x32xf32>
    %386 = vector.extract_strided_slice %376 {offsets = [0, 32], sizes = [2, 32], strides = [1, 1]} : vector<2x96xf32> to vector<2x32xf32>
    %387 = arith.addf %385, %386 : vector<2x32xf32>
    %388 = arith.negf %387 : vector<2x32xf32>
    %389 = math.exp %388 : vector<2x32xf32>
    %cst_207 = arith.constant 1.000000e+00 : f32
    %390 = vector.broadcast %cst_207 : f32 to vector<2x32xf32>
    %391 = arith.addf %390, %389 : vector<2x32xf32>
    %392 = arith.divf %390, %391 : vector<2x32xf32>
    %393 = vector.extract_strided_slice %371 {offsets = [0, 64], sizes = [2, 32], strides = [1, 1]} : vector<2x96xf32> to vector<2x32xf32>
    %394 = vector.extract_strided_slice %376 {offsets = [0, 64], sizes = [2, 32], strides = [1, 1]} : vector<2x96xf32> to vector<2x32xf32>
    %395 = arith.mulf %384, %394 : vector<2x32xf32>
    %396 = arith.addf %393, %395 : vector<2x32xf32>
    %397 = math.tanh %396 : vector<2x32xf32>
    %cst_208 = arith.constant 1.000000e+00 : f32
    %398 = vector.broadcast %cst_208 : f32 to vector<2x32xf32>
    %399 = arith.subf %398, %392 : vector<2x32xf32>
    %400 = arith.mulf %399, %397 : vector<2x32xf32>
    %401 = arith.mulf %392, %304 : vector<2x32xf32>
    %402 = arith.addf %400, %401 : vector<2x32xf32>
    %c0_209 = arith.constant 0 : index
    %c0_210 = arith.constant 0 : index
    %403 = vector.load %arg18[%c0_209, %c0_210] : memref<32x18xf32, #tpu.memory_space<vmem>>, vector<32x18xf32>
    %cst_211 = arith.constant dense<0.000000e+00> : vector<2x18xf32>
    %404 = tpu.matmul %402, %403, %cst_211 {dimension_numbers = #tpu.dot_dimension_numbers<[1], [0], [0], [1], [0, 0, 1, 1], [], []>} : vector<2x32xf32>, vector<32x18xf32>, vector<2x18xf32> -> vector<2x18xf32>
    %c0_212 = arith.constant 0 : index
    %c0_213 = arith.constant 0 : index
    %405 = vector.load %arg19[%c0_212, %c0_213] : memref<32x18xf32, #tpu.memory_space<vmem>>, vector<32x18xf32>
    %cst_214 = arith.constant dense<0.000000e+00> : vector<2x18xf32>
    %406 = tpu.matmul %363, %405, %cst_214 {dimension_numbers = #tpu.dot_dimension_numbers<[1], [0], [0], [1], [0, 0, 1, 1], [], []>} : vector<2x32xf32>, vector<32x18xf32>, vector<2x18xf32> -> vector<2x18xf32>
    %407 = arith.addf %404, %406 : vector<2x18xf32>
    %c0_215 = arith.constant 0 : index
    %c0_216 = arith.constant 0 : index
    %408 = vector.load %arg20[%c0_215, %c0_216] : memref<16x18xf32, #tpu.memory_space<vmem>>, vector<16x18xf32>
    %cst_217 = arith.constant dense<0.000000e+00> : vector<2x18xf32>
    %409 = tpu.matmul %337, %408, %cst_217 {dimension_numbers = #tpu.dot_dimension_numbers<[1], [0], [0], [1], [0, 0, 1, 1], [], []>} : vector<2x16xf32>, vector<16x18xf32>, vector<2x18xf32> -> vector<2x18xf32>
    %410 = arith.addf %407, %409 : vector<2x18xf32>
    %c0_218 = arith.constant 0 : index
    %c0_219 = arith.constant 0 : index
    %411 = vector.load %arg21[%c0_218, %c0_219] : memref<1x18xf32, #tpu.memory_space<vmem>>, vector<1x18xf32>
    %412 = vector.broadcast %411 : vector<1x18xf32> to vector<2x18xf32>
    %413 = arith.addf %410, %412 : vector<2x18xf32>
    %c4 = arith.constant 4 : index
    %c0_220 = arith.constant 0 : index
    %c0_221 = arith.constant 0 : index
    %414 = vector.load %arg22[%c4, %c0_220, %c0_221] : memref<6x2x18xf32, #tpu.memory_space<vmem>>, vector<1x2x18xf32>
    %415 = vector.shape_cast %414 : vector<1x2x18xf32> to vector<2x18xf32>
    %416 = vector.shape_cast %413 : vector<2x18xf32> to vector<1x2x18xf32>
    tpu.vector_store %arg22[%c4, %c0_220, %c0_221], %416 {strides = array<i32>} : memref<6x2x18xf32, #tpu.memory_space<vmem>>, vector<1x2x18xf32>,
    %cst_222 = arith.constant dense<0xFF800000> : vector<2xf32>
    %417 = vector.multi_reduction <maximumf>, %413, %cst_222 [1] : vector<2x18xf32> to vector<2xf32>
    %418 = vector.shape_cast %417 : vector<2xf32> to vector<2x1xf32>
    %419 = vector.broadcast %418 : vector<2x1xf32> to vector<2x18xf32>
    %420 = arith.cmpf oeq, %413, %419 : vector<2x18xf32>
    %c18_i32_223 = arith.constant 18 : i32
    %421 = vector.broadcast %c18_i32_223 : i32 to vector<2x18xi32>
    %422 = arith.select %420, %18, %421 : vector<2x18xi1>, vector<2x18xi32>
    %cst_224 = arith.constant dense<2147483647> : vector<2xi32>
    %423 = vector.multi_reduction <minsi>, %422, %cst_224 [1] : vector<2x18xi32> to vector<2xi32>
    %424 = vector.shape_cast %423 : vector<2xi32> to vector<2x1xi32>
    %c4_225 = arith.constant 4 : index
    %425 = memref.load %arg1[%c4_225] : memref<5xi32, #tpu.memory_space<smem>>
    %c0_i32_226 = arith.constant 0 : i32
    %426 = arith.cmpi ne, %425, %c0_i32_226 : i32
    %c4_227 = arith.constant 4 : index
    %c0_228 = arith.constant 0 : index
    %c0_229 = arith.constant 0 : index
    %427 = vector.load %arg2[%c4_227, %c0_228, %c0_229] : memref<6x2x1xi32, #tpu.memory_space<vmem>>, vector<1x2x1xi32>
    %428 = vector.shape_cast %427 : vector<1x2x1xi32> to vector<2x1xi32>
    %429 = arith.select %426, %428, %424 : vector<2x1xi32>
    %430 = vector.broadcast %429 : vector<2x1xi32> to vector<2x18xi32>
    %431 = arith.cmpi eq, %19, %430 : vector<2x18xi32>
    %432 = arith.extui %431 : vector<2x18xi1> to vector<2x18xi32>
    %433 = arith.sitofp %432 : vector<2x18xi32> to vector<2x18xf32>
    %c0_230 = arith.constant 0 : index
    %c0_231 = arith.constant 0 : index
    %434 = vector.load %arg8[%c0_230, %c0_231] : memref<18x16xf32, #tpu.memory_space<vmem>>, vector<18x16xf32>
    %cst_232 = arith.constant dense<0.000000e+00> : vector<2x16xf32>
    %435 = tpu.matmul %433, %434, %cst_232 {dimension_numbers = #tpu.dot_dimension_numbers<[1], [0], [0], [1], [0, 0, 1, 1], [], []>} : vector<2x18xf32>, vector<18x16xf32>, vector<2x16xf32> -> vector<2x16xf32>
    %c0_233 = arith.constant 0 : index
    %c0_234 = arith.constant 0 : index
    %436 = vector.load %arg9[%c0_233, %c0_234] : memref<32x32xf32, #tpu.memory_space<vmem>>, vector<32x32xf32>
    %cst_235 = arith.constant dense<0.000000e+00> : vector<2x32xf32>
    %437 = tpu.matmul %402, %436, %cst_235 {dimension_numbers = #tpu.dot_dimension_numbers<[1], [0], [0], [1], [0, 0, 1, 1], [], []>} : vector<2x32xf32>, vector<32x32xf32>, vector<2x32xf32> -> vector<2x32xf32>
    %438 = vector.shape_cast %437 : vector<2x32xf32> to vector<2x1x32xf32>
    %439 = vector.broadcast %438 : vector<2x1x32xf32> to vector<2x8x32xf32>
    %440 = arith.addf %11, %439 : vector<2x8x32xf32>
    %c0_236 = arith.constant 0 : index
    %c0_237 = arith.constant 0 : index
    %441 = vector.load %arg11[%c0_236, %c0_237] : memref<1x32xf32, #tpu.memory_space<vmem>>, vector<1x32xf32>
    %442 = vector.shape_cast %441 : vector<1x32xf32> to vector<1x1x32xf32>
    %443 = vector.broadcast %442 : vector<1x1x32xf32> to vector<2x8x32xf32>
    %444 = arith.addf %440, %443 : vector<2x8x32xf32>
    %445 = math.tanh %444 : vector<2x8x32xf32>
    "tpu.trace_start"() <{level = 10 : i32, message = "bvh,bsh->bvs"}> : () -> ()
    %cst_238 = arith.constant dense<0.000000e+00> : vector<2x1x8xf32>
    %446 = tpu.matmul %17, %445, %cst_238 {dimension_numbers = #tpu.dot_dimension_numbers<[2], [2], [1], [1], [0, 0, 0, 1, 1, 1], [0], [0]>} : vector<2x1x32xf32>, vector<2x8x32xf32>, vector<2x1x8xf32> -> vector<2x1x8xf32>
    %cst_239 = arith.constant 0.000000e+00 : f32
    "tpu.trace_stop"() : () -> ()
    %447 = vector.broadcast %cst_239 : f32 to vector<2x1x8xf32>
    %448 = arith.cmpf ogt, %13, %447 : vector<2x1x8xf32>
    %cst_240 = arith.constant -1.000000e+10 : f32
    %449 = vector.broadcast %cst_240 : f32 to vector<2x1x8xf32>
    %450 = arith.select %448, %446, %449 : vector<2x1x8xi1>, vector<2x1x8xf32>
    %cst_241 = arith.constant dense<0xFF800000> : vector<2x1xf32>
    %451 = vector.multi_reduction <maximumf>, %450, %cst_241 [2] : vector<2x1x8xf32> to vector<2x1xf32>
    %452 = vector.shape_cast %451 : vector<2x1xf32> to vector<2x1x1xf32>
    %453 = vector.broadcast %452 : vector<2x1x1xf32> to vector<2x1x8xf32>
    %454 = arith.subf %450, %453 : vector<2x1x8xf32>
    %455 = math.exp %454 : vector<2x1x8xf32>
    %cst_242 = arith.constant dense<0.000000e+00> : vector<2x1xf32>
    %456 = vector.multi_reduction <add>, %455, %cst_242 [2] : vector<2x1x8xf32> to vector<2x1xf32>
    %457 = vector.shape_cast %456 : vector<2x1xf32> to vector<2x1x1xf32>
    %458 = vector.broadcast %457 : vector<2x1x1xf32> to vector<2x1x8xf32>
    %459 = arith.divf %455, %458 : vector<2x1x8xf32>
    "tpu.trace_start"() <{level = 10 : i32, message = "bvs,bsh->bvh"}> : () -> ()
    %cst_243 = arith.constant dense<0.000000e+00> : vector<2x1x32xf32>
    %460 = tpu.matmul %459, %7, %cst_243 {dimension_numbers = #tpu.dot_dimension_numbers<[2], [1], [1], [2], [0, 0, 0, 1, 1, 2], [0], [0]>} : vector<2x1x8xf32>, vector<2x8x32xf32>, vector<2x1x32xf32> -> vector<2x1x32xf32>
    "tpu.trace_stop"() : () -> ()
    %461 = vector.shape_cast %460 : vector<2x1x32xf32> to vector<2x32xf32>
    %c0_244 = arith.constant 0 : index
    %c0_245 = arith.constant 0 : index
    %462 = vector.load %arg13[%c0_244, %c0_245] : memref<16x96xf32, #tpu.memory_space<vmem>>, vector<16x96xf32>
    %cst_246 = arith.constant dense<0.000000e+00> : vector<2x96xf32>
    %463 = tpu.matmul %435, %462, %cst_246 {dimension_numbers = #tpu.dot_dimension_numbers<[1], [0], [0], [1], [0, 0, 1, 1], [], []>} : vector<2x16xf32>, vector<16x96xf32>, vector<2x96xf32> -> vector<2x96xf32>
    %c0_247 = arith.constant 0 : index
    %c0_248 = arith.constant 0 : index
    %464 = vector.load %arg14[%c0_247, %c0_248] : memref<32x96xf32, #tpu.memory_space<vmem>>, vector<32x96xf32>
    %cst_249 = arith.constant dense<0.000000e+00> : vector<2x96xf32>
    %465 = tpu.matmul %461, %464, %cst_249 {dimension_numbers = #tpu.dot_dimension_numbers<[1], [0], [0], [1], [0, 0, 1, 1], [], []>} : vector<2x32xf32>, vector<32x96xf32>, vector<2x96xf32> -> vector<2x96xf32>
    %466 = arith.addf %463, %465 : vector<2x96xf32>
    %c0_250 = arith.constant 0 : index
    %c0_251 = arith.constant 0 : index
    %467 = vector.load %arg16[%c0_250, %c0_251] : memref<1x96xf32, #tpu.memory_space<vmem>>, vector<1x96xf32>
    %468 = vector.broadcast %467 : vector<1x96xf32> to vector<2x96xf32>
    %469 = arith.addf %466, %468 : vector<2x96xf32>
    %c0_252 = arith.constant 0 : index
    %c0_253 = arith.constant 0 : index
    %470 = vector.load %arg15[%c0_252, %c0_253] : memref<32x96xf32, #tpu.memory_space<vmem>>, vector<32x96xf32>
    %cst_254 = arith.constant dense<0.000000e+00> : vector<2x96xf32>
    %471 = tpu.matmul %402, %470, %cst_254 {dimension_numbers = #tpu.dot_dimension_numbers<[1], [0], [0], [1], [0, 0, 1, 1], [], []>} : vector<2x32xf32>, vector<32x96xf32>, vector<2x96xf32> -> vector<2x96xf32>
    %c0_255 = arith.constant 0 : index
    %c0_256 = arith.constant 0 : index
    %472 = vector.load %arg17[%c0_255, %c0_256] : memref<1x96xf32, #tpu.memory_space<vmem>>, vector<1x96xf32>
    %473 = vector.broadcast %472 : vector<1x96xf32> to vector<2x96xf32>
    %474 = arith.addf %471, %473 : vector<2x96xf32>
    %475 = vector.extract_strided_slice %469 {offsets = [0, 0], sizes = [2, 32], strides = [1, 1]} : vector<2x96xf32> to vector<2x32xf32>
    %476 = vector.extract_strided_slice %474 {offsets = [0, 0], sizes = [2, 32], strides = [1, 1]} : vector<2x96xf32> to vector<2x32xf32>
    %477 = arith.addf %475, %476 : vector<2x32xf32>
    %478 = arith.negf %477 : vector<2x32xf32>
    %479 = math.exp %478 : vector<2x32xf32>
    %cst_257 = arith.constant 1.000000e+00 : f32
    %480 = vector.broadcast %cst_257 : f32 to vector<2x32xf32>
    %481 = arith.addf %480, %479 : vector<2x32xf32>
    %482 = arith.divf %480, %481 : vector<2x32xf32>
    %483 = vector.extract_strided_slice %469 {offsets = [0, 32], sizes = [2, 32], strides = [1, 1]} : vector<2x96xf32> to vector<2x32xf32>
    %484 = vector.extract_strided_slice %474 {offsets = [0, 32], sizes = [2, 32], strides = [1, 1]} : vector<2x96xf32> to vector<2x32xf32>
    %485 = arith.addf %483, %484 : vector<2x32xf32>
    %486 = arith.negf %485 : vector<2x32xf32>
    %487 = math.exp %486 : vector<2x32xf32>
    %cst_258 = arith.constant 1.000000e+00 : f32
    %488 = vector.broadcast %cst_258 : f32 to vector<2x32xf32>
    %489 = arith.addf %488, %487 : vector<2x32xf32>
    %490 = arith.divf %488, %489 : vector<2x32xf32>
    %491 = vector.extract_strided_slice %469 {offsets = [0, 64], sizes = [2, 32], strides = [1, 1]} : vector<2x96xf32> to vector<2x32xf32>
    %492 = vector.extract_strided_slice %474 {offsets = [0, 64], sizes = [2, 32], strides = [1, 1]} : vector<2x96xf32> to vector<2x32xf32>
    %493 = arith.mulf %482, %492 : vector<2x32xf32>
    %494 = arith.addf %491, %493 : vector<2x32xf32>
    %495 = math.tanh %494 : vector<2x32xf32>
    %cst_259 = arith.constant 1.000000e+00 : f32
    %496 = vector.broadcast %cst_259 : f32 to vector<2x32xf32>
    %497 = arith.subf %496, %490 : vector<2x32xf32>
    %498 = arith.mulf %497, %495 : vector<2x32xf32>
    %499 = arith.mulf %490, %402 : vector<2x32xf32>
    %500 = arith.addf %498, %499 : vector<2x32xf32>
    %c0_260 = arith.constant 0 : index
    %c0_261 = arith.constant 0 : index
    %501 = vector.load %arg18[%c0_260, %c0_261] : memref<32x18xf32, #tpu.memory_space<vmem>>, vector<32x18xf32>
    %cst_262 = arith.constant dense<0.000000e+00> : vector<2x18xf32>
    %502 = tpu.matmul %500, %501, %cst_262 {dimension_numbers = #tpu.dot_dimension_numbers<[1], [0], [0], [1], [0, 0, 1, 1], [], []>} : vector<2x32xf32>, vector<32x18xf32>, vector<2x18xf32> -> vector<2x18xf32>
    %c0_263 = arith.constant 0 : index
    %c0_264 = arith.constant 0 : index
    %503 = vector.load %arg19[%c0_263, %c0_264] : memref<32x18xf32, #tpu.memory_space<vmem>>, vector<32x18xf32>
    %cst_265 = arith.constant dense<0.000000e+00> : vector<2x18xf32>
    %504 = tpu.matmul %461, %503, %cst_265 {dimension_numbers = #tpu.dot_dimension_numbers<[1], [0], [0], [1], [0, 0, 1, 1], [], []>} : vector<2x32xf32>, vector<32x18xf32>, vector<2x18xf32> -> vector<2x18xf32>
    %505 = arith.addf %502, %504 : vector<2x18xf32>
    %c0_266 = arith.constant 0 : index
    %c0_267 = arith.constant 0 : index
    %506 = vector.load %arg20[%c0_266, %c0_267] : memref<16x18xf32, #tpu.memory_space<vmem>>, vector<16x18xf32>
    %cst_268 = arith.constant dense<0.000000e+00> : vector<2x18xf32>
    %507 = tpu.matmul %435, %506, %cst_268 {dimension_numbers = #tpu.dot_dimension_numbers<[1], [0], [0], [1], [0, 0, 1, 1], [], []>} : vector<2x16xf32>, vector<16x18xf32>, vector<2x18xf32> -> vector<2x18xf32>
    %508 = arith.addf %505, %507 : vector<2x18xf32>
    %c0_269 = arith.constant 0 : index
    %c0_270 = arith.constant 0 : index
    %509 = vector.load %arg21[%c0_269, %c0_270] : memref<1x18xf32, #tpu.memory_space<vmem>>, vector<1x18xf32>
    %510 = vector.broadcast %509 : vector<1x18xf32> to vector<2x18xf32>
    %511 = arith.addf %508, %510 : vector<2x18xf32>
    %c5 = arith.constant 5 : index
    %c0_271 = arith.constant 0 : index
    %c0_272 = arith.constant 0 : index
    %512 = vector.load %arg22[%c5, %c0_271, %c0_272] : memref<6x2x18xf32, #tpu.memory_space<vmem>>, vector<1x2x18xf32>
    %513 = vector.shape_cast %512 : vector<1x2x18xf32> to vector<2x18xf32>
    %514 = vector.shape_cast %511 : vector<2x18xf32> to vector<1x2x18xf32>
    tpu.vector_store %arg22[%c5, %c0_271, %c0_272], %514 {strides = array<i32>} : memref<6x2x18xf32, #tpu.memory_space<vmem>>, vector<1x2x18xf32>,
    return
  }
  func.func @transform_0(%arg0: i32, %arg1: memref<5xi32, #tpu.memory_space<smem>>) -> (i32, i32, i32) {
    %c0_i32 = arith.constant 0 : i32
    %c0_i32_0 = arith.constant 0 : i32
    %c0_i32_1 = arith.constant 0 : i32
    %c0_i32_2 = arith.constant 0 : i32
    return %c0_i32, %c0_i32_0, %c0_i32_1 : i32, i32, i32
  }
  func.func @transform_1(%arg0: i32, %arg1: memref<5xi32, #tpu.memory_space<smem>>) -> (i32, i32) {
    %c0_i32 = arith.constant 0 : i32
    %c0_i32_0 = arith.constant 0 : i32
    %c0_i32_1 = arith.constant 0 : i32
    return %c0_i32, %c0_i32_0 : i32, i32
  }
  func.func @transform_2(%arg0: i32, %arg1: memref<5xi32, #tpu.memory_space<smem>>) -> (i32, i32) {
    %c0_i32 = arith.constant 0 : i32
    %c0_i32_0 = arith.constant 0 : i32
    %c0_i32_1 = arith.constant 0 : i32
    return %c0_i32, %c0_i32_0 : i32, i32
  }
  func.func @transform_3(%arg0: i32, %arg1: memref<5xi32, #tpu.memory_space<smem>>) -> (i32, i32) {
    %c0_i32 = arith.constant 0 : i32
    %c0_i32_0 = arith.constant 0 : i32
    %c0_i32_1 = arith.constant 0 : i32
    return %c0_i32, %c0_i32_0 : i32, i32
  }
  func.func @transform_4(%arg0: i32, %arg1: memref<5xi32, #tpu.memory_space<smem>>) -> (i32, i32, i32) {
    %c0_i32 = arith.constant 0 : i32
    %c0_i32_0 = arith.constant 0 : i32
    %c0_i32_1 = arith.constant 0 : i32
    %c0_i32_2 = arith.constant 0 : i32
    return %c0_i32, %c0_i32_0, %c0_i32_1 : i32, i32, i32
  }
  func.func @transform_5(%arg0: i32, %arg1: memref<5xi32, #tpu.memory_space<smem>>) -> (i32, i32) {
    %c0_i32 = arith.constant 0 : i32
    %c0_i32_0 = arith.constant 0 : i32
    %c0_i32_1 = arith.constant 0 : i32
    return %c0_i32, %c0_i32_0 : i32, i32
  }
  func.func @transform_6(%arg0: i32, %arg1: memref<5xi32, #tpu.memory_space<smem>>) -> (i32, i32) {
    %c0_i32 = arith.constant 0 : i32
    %c0_i32_0 = arith.constant 0 : i32
    %c0_i32_1 = arith.constant 0 : i32
    return %c0_i32, %c0_i32_0 : i32, i32
  }
  func.func @transform_7(%arg0: i32, %arg1: memref<5xi32, #tpu.memory_space<smem>>) -> (i32, i32) {
    %c0_i32 = arith.constant 0 : i32
    %c0_i32_0 = arith.constant 0 : i32
    %c0_i32_1 = arith.constant 0 : i32
    return %c0_i32, %c0_i32_0 : i32, i32
  }
  func.func @transform_8(%arg0: i32, %arg1: memref<5xi32, #tpu.memory_space<smem>>) -> (i32, i32) {
    %c0_i32 = arith.constant 0 : i32
    %c0_i32_0 = arith.constant 0 : i32
    %c0_i32_1 = arith.constant 0 : i32
    return %c0_i32, %c0_i32_0 : i32, i32
  }
  func.func @transform_9(%arg0: i32, %arg1: memref<5xi32, #tpu.memory_space<smem>>) -> (i32, i32) {
    %c0_i32 = arith.constant 0 : i32
    %c0_i32_0 = arith.constant 0 : i32
    %c0_i32_1 = arith.constant 0 : i32
    return %c0_i32, %c0_i32_0 : i32, i32
  }
  func.func @transform_10(%arg0: i32, %arg1: memref<5xi32, #tpu.memory_space<smem>>) -> (i32, i32) {
    %c0_i32 = arith.constant 0 : i32
    %c0_i32_0 = arith.constant 0 : i32
    %c0_i32_1 = arith.constant 0 : i32
    return %c0_i32, %c0_i32_0 : i32, i32
  }
  func.func @transform_11(%arg0: i32, %arg1: memref<5xi32, #tpu.memory_space<smem>>) -> (i32, i32) {
    %c0_i32 = arith.constant 0 : i32
    %c0_i32_0 = arith.constant 0 : i32
    %c0_i32_1 = arith.constant 0 : i32
    return %c0_i32, %c0_i32_0 : i32, i32
  }
  func.func @transform_12(%arg0: i32, %arg1: memref<5xi32, #tpu.memory_space<smem>>) -> (i32, i32) {
    %c0_i32 = arith.constant 0 : i32
    %c0_i32_0 = arith.constant 0 : i32
    %c0_i32_1 = arith.constant 0 : i32
    return %c0_i32, %c0_i32_0 : i32, i32
  }
  func.func @transform_13(%arg0: i32, %arg1: memref<5xi32, #tpu.memory_space<smem>>) -> (i32, i32) {
    %c0_i32 = arith.constant 0 : i32
    %c0_i32_0 = arith.constant 0 : i32
    %c0_i32_1 = arith.constant 0 : i32
    return %c0_i32, %c0_i32_0 : i32, i32
  }
  func.func @transform_14(%arg0: i32, %arg1: memref<5xi32, #tpu.memory_space<smem>>) -> (i32, i32) {
    %c0_i32 = arith.constant 0 : i32
    %c0_i32_0 = arith.constant 0 : i32
    %c0_i32_1 = arith.constant 0 : i32
    return %c0_i32, %c0_i32_0 : i32, i32
  }
  func.func @transform_15(%arg0: i32, %arg1: memref<5xi32, #tpu.memory_space<smem>>) -> (i32, i32) {
    %c0_i32 = arith.constant 0 : i32
    %c0_i32_0 = arith.constant 0 : i32
    %c0_i32_1 = arith.constant 0 : i32
    return %c0_i32, %c0_i32_0 : i32, i32
  }
  func.func @transform_16(%arg0: i32, %arg1: memref<5xi32, #tpu.memory_space<smem>>) -> (i32, i32) {
    %c0_i32 = arith.constant 0 : i32
    %c0_i32_0 = arith.constant 0 : i32
    %c0_i32_1 = arith.constant 0 : i32
    return %c0_i32, %c0_i32_0 : i32, i32
  }
  func.func @transform_17(%arg0: i32, %arg1: memref<5xi32, #tpu.memory_space<smem>>) -> (i32, i32) {
    %c0_i32 = arith.constant 0 : i32
    %c0_i32_0 = arith.constant 0 : i32
    %c0_i32_1 = arith.constant 0 : i32
    return %c0_i32, %c0_i32_0 : i32, i32
  }
  func.func @transform_18(%arg0: i32, %arg1: memref<5xi32, #tpu.memory_space<smem>>) -> (i32, i32) {
    %c0_i32 = arith.constant 0 : i32
    %c0_i32_0 = arith.constant 0 : i32
    %c0_i32_1 = arith.constant 0 : i32
    return %c0_i32, %c0_i32_0 : i32, i32
  }
  func.func @transform_19(%arg0: i32, %arg1: memref<5xi32, #tpu.memory_space<smem>>) -> (i32, i32) {
    %c0_i32 = arith.constant 0 : i32
    %c0_i32_0 = arith.constant 0 : i32
    %c0_i32_1 = arith.constant 0 : i32
    return %c0_i32, %c0_i32_0 : i32, i32
  }
  func.func @transform_20(%arg0: i32, %arg1: memref<5xi32, #tpu.memory_space<smem>>) -> (i32, i32, i32) {
    %c0_i32 = arith.constant 0 : i32
    %c0_i32_0 = arith.constant 0 : i32
    %c0_i32_1 = arith.constant 0 : i32
    %c0_i32_2 = arith.constant 0 : i32
    return %c0_i32, %c0_i32_0, %c0_i32_1 : i32, i32, i32
  }
}

module attributes {stable_mosaic.version = 11 : i64} {
  func.func @_bigru_encoder_kernel(%arg0: i32, %arg1: memref<8x2x16xf32, #tpu.memory_space<vmem>>, %arg2: memref<1x16x48xf32, #tpu.memory_space<vmem>>, %arg3: memref<1x16x48xf32, #tpu.memory_space<vmem>>, %arg4: memref<1x1x48xf32, #tpu.memory_space<vmem>>, %arg5: memref<1x1x48xf32, #tpu.memory_space<vmem>>, %arg6: memref<1x8x2x16xf32, #tpu.memory_space<vmem>>) attributes {dimension_semantics = [#tpu.dimension_semantics<parallel>], iteration_bounds = array<i64: 2>, scalar_prefetch = 0 : i64, scratch_operands = 0 : i64, tpu.core_type = #tpu.core_type<tc>, window_params = [{pipeline_mode = #tpu.pipeline_mode<synchronous>, transform_indices = @transform_0, window_bounds = array<i64: 8, 2, 16>}, {transform_indices = @transform_1, window_bounds = array<i64: 1, 16, 48>}, {transform_indices = @transform_2, window_bounds = array<i64: 1, 16, 48>}, {transform_indices = @transform_3, window_bounds = array<i64: 1, 1, 48>}, {transform_indices = @transform_4, window_bounds = array<i64: 1, 1, 48>}, {transform_indices = @transform_5, window_bounds = array<i64: 1, 8, 2, 16>}]} {
    %c0 = arith.constant 0 : index
    %c0_0 = arith.constant 0 : index
    %c0_1 = arith.constant 0 : index
    %0 = vector.load %arg2[%c0, %c0_0, %c0_1] : memref<1x16x48xf32, #tpu.memory_space<vmem>>, vector<1x16x48xf32>
    %1 = vector.shape_cast %0 : vector<1x16x48xf32> to vector<16x48xf32>
    %c0_2 = arith.constant 0 : index
    %c0_3 = arith.constant 0 : index
    %c0_4 = arith.constant 0 : index
    %2 = vector.load %arg3[%c0_2, %c0_3, %c0_4] : memref<1x16x48xf32, #tpu.memory_space<vmem>>, vector<1x16x48xf32>
    %3 = vector.shape_cast %2 : vector<1x16x48xf32> to vector<16x48xf32>
    %c0_5 = arith.constant 0 : index
    %c0_6 = arith.constant 0 : index
    %c0_7 = arith.constant 0 : index
    %4 = vector.load %arg4[%c0_5, %c0_6, %c0_7] : memref<1x1x48xf32, #tpu.memory_space<vmem>>, vector<1x1x48xf32>
    %5 = vector.shape_cast %4 : vector<1x1x48xf32> to vector<1x48xf32>
    %c0_8 = arith.constant 0 : index
    %c0_9 = arith.constant 0 : index
    %c0_10 = arith.constant 0 : index
    %6 = vector.load %arg5[%c0_8, %c0_9, %c0_10] : memref<1x1x48xf32, #tpu.memory_space<vmem>>, vector<1x1x48xf32>
    %7 = vector.shape_cast %6 : vector<1x1x48xf32> to vector<1x48xf32>
    %c0_i32 = arith.constant 0 : i32
    %8 = arith.cmpi eq, %arg0, %c0_i32 : i32
    %9 = arith.extui %8 : i1 to i32
    %c0_i32_11 = arith.constant 0 : i32
    %10 = arith.cmpi ne, %9, %c0_i32_11 : i32
    scf.if %10 {
      %cst = arith.constant 0.000000e+00 : f32
      %14 = vector.broadcast %cst : f32 to vector<2x16xf32>
      %c0_13 = arith.constant 0 : index
      %c0_14 = arith.constant 0 : index
      %c0_15 = arith.constant 0 : index
      %15 = vector.load %arg1[%c0_13, %c0_14, %c0_15] : memref<8x2x16xf32, #tpu.memory_space<vmem>>, vector<1x2x16xf32>
      %16 = vector.shape_cast %15 : vector<1x2x16xf32> to vector<2x16xf32>
      %cst_16 = arith.constant dense<0.000000e+00> : vector<2x48xf32>
      %17 = tpu.matmul %16, %1, %cst_16 {dimension_numbers = #tpu.dot_dimension_numbers<[1], [0], [0], [1], [0, 0, 1, 1], [], []>} : vector<2x16xf32>, vector<16x48xf32>, vector<2x48xf32> -> vector<2x48xf32>
      %18 = vector.broadcast %5 : vector<1x48xf32> to vector<2x48xf32>
      %19 = arith.addf %17, %18 : vector<2x48xf32>
      %cst_17 = arith.constant dense<0.000000e+00> : vector<2x48xf32>
      %20 = tpu.matmul %14, %3, %cst_17 {dimension_numbers = #tpu.dot_dimension_numbers<[1], [0], [0], [1], [0, 0, 1, 1], [], []>} : vector<2x16xf32>, vector<16x48xf32>, vector<2x48xf32> -> vector<2x48xf32>
      %21 = vector.broadcast %7 : vector<1x48xf32> to vector<2x48xf32>
      %22 = arith.addf %20, %21 : vector<2x48xf32>
      %23 = vector.extract_strided_slice %19 {offsets = [0, 0], sizes = [2, 16], strides = [1, 1]} : vector<2x48xf32> to vector<2x16xf32>
      %24 = vector.extract_strided_slice %22 {offsets = [0, 0], sizes = [2, 16], strides = [1, 1]} : vector<2x48xf32> to vector<2x16xf32>
      %25 = arith.addf %23, %24 : vector<2x16xf32>
      %26 = arith.negf %25 : vector<2x16xf32>
      %27 = math.exp %26 : vector<2x16xf32>
      %cst_18 = arith.constant 1.000000e+00 : f32
      %28 = vector.broadcast %cst_18 : f32 to vector<2x16xf32>
      %29 = arith.addf %28, %27 : vector<2x16xf32>
      %30 = arith.divf %28, %29 : vector<2x16xf32>
      %31 = vector.extract_strided_slice %19 {offsets = [0, 16], sizes = [2, 16], strides = [1, 1]} : vector<2x48xf32> to vector<2x16xf32>
      %32 = vector.extract_strided_slice %22 {offsets = [0, 16], sizes = [2, 16], strides = [1, 1]} : vector<2x48xf32> to vector<2x16xf32>
      %33 = arith.addf %31, %32 : vector<2x16xf32>
      %34 = arith.negf %33 : vector<2x16xf32>
      %35 = math.exp %34 : vector<2x16xf32>
      %cst_19 = arith.constant 1.000000e+00 : f32
      %36 = vector.broadcast %cst_19 : f32 to vector<2x16xf32>
      %37 = arith.addf %36, %35 : vector<2x16xf32>
      %38 = arith.divf %36, %37 : vector<2x16xf32>
      %39 = vector.extract_strided_slice %19 {offsets = [0, 32], sizes = [2, 16], strides = [1, 1]} : vector<2x48xf32> to vector<2x16xf32>
      %40 = vector.extract_strided_slice %22 {offsets = [0, 32], sizes = [2, 16], strides = [1, 1]} : vector<2x48xf32> to vector<2x16xf32>
      %41 = arith.mulf %30, %40 : vector<2x16xf32>
      %42 = arith.addf %39, %41 : vector<2x16xf32>
      %43 = math.tanh %42 : vector<2x16xf32>
      %cst_20 = arith.constant 1.000000e+00 : f32
      %44 = vector.broadcast %cst_20 : f32 to vector<2x16xf32>
      %45 = arith.subf %44, %38 : vector<2x16xf32>
      %46 = arith.mulf %45, %43 : vector<2x16xf32>
      %47 = arith.mulf %38, %14 : vector<2x16xf32>
      %48 = arith.addf %46, %47 : vector<2x16xf32>
      %c0_21 = arith.constant 0 : index
      %c0_22 = arith.constant 0 : index
      %c0_23 = arith.constant 0 : index
      %c0_24 = arith.constant 0 : index
      %49 = vector.load %arg6[%c0_21, %c0_22, %c0_23, %c0_24] : memref<1x8x2x16xf32, #tpu.memory_space<vmem>>, vector<1x1x2x16xf32>
      %50 = vector.shape_cast %49 : vector<1x1x2x16xf32> to vector<2x16xf32>
      %51 = vector.shape_cast %48 : vector<2x16xf32> to vector<1x1x2x16xf32>
      tpu.vector_store %arg6[%c0_21, %c0_22, %c0_23, %c0_24], %51 {strides = array<i32>} : memref<1x8x2x16xf32, #tpu.memory_space<vmem>>, vector<1x1x2x16xf32>,
      %c1 = arith.constant 1 : index
      %c0_25 = arith.constant 0 : index
      %c0_26 = arith.constant 0 : index
      %52 = vector.load %arg1[%c1, %c0_25, %c0_26] : memref<8x2x16xf32, #tpu.memory_space<vmem>>, vector<1x2x16xf32>
      %53 = vector.shape_cast %52 : vector<1x2x16xf32> to vector<2x16xf32>
      %cst_27 = arith.constant dense<0.000000e+00> : vector<2x48xf32>
      %54 = tpu.matmul %53, %1, %cst_27 {dimension_numbers = #tpu.dot_dimension_numbers<[1], [0], [0], [1], [0, 0, 1, 1], [], []>} : vector<2x16xf32>, vector<16x48xf32>, vector<2x48xf32> -> vector<2x48xf32>
      %55 = vector.broadcast %5 : vector<1x48xf32> to vector<2x48xf32>
      %56 = arith.addf %54, %55 : vector<2x48xf32>
      %cst_28 = arith.constant dense<0.000000e+00> : vector<2x48xf32>
      %57 = tpu.matmul %48, %3, %cst_28 {dimension_numbers = #tpu.dot_dimension_numbers<[1], [0], [0], [1], [0, 0, 1, 1], [], []>} : vector<2x16xf32>, vector<16x48xf32>, vector<2x48xf32> -> vector<2x48xf32>
      %58 = vector.broadcast %7 : vector<1x48xf32> to vector<2x48xf32>
      %59 = arith.addf %57, %58 : vector<2x48xf32>
      %60 = vector.extract_strided_slice %56 {offsets = [0, 0], sizes = [2, 16], strides = [1, 1]} : vector<2x48xf32> to vector<2x16xf32>
      %61 = vector.extract_strided_slice %59 {offsets = [0, 0], sizes = [2, 16], strides = [1, 1]} : vector<2x48xf32> to vector<2x16xf32>
      %62 = arith.addf %60, %61 : vector<2x16xf32>
      %63 = arith.negf %62 : vector<2x16xf32>
      %64 = math.exp %63 : vector<2x16xf32>
      %cst_29 = arith.constant 1.000000e+00 : f32
      %65 = vector.broadcast %cst_29 : f32 to vector<2x16xf32>
      %66 = arith.addf %65, %64 : vector<2x16xf32>
      %67 = arith.divf %65, %66 : vector<2x16xf32>
      %68 = vector.extract_strided_slice %56 {offsets = [0, 16], sizes = [2, 16], strides = [1, 1]} : vector<2x48xf32> to vector<2x16xf32>
      %69 = vector.extract_strided_slice %59 {offsets = [0, 16], sizes = [2, 16], strides = [1, 1]} : vector<2x48xf32> to vector<2x16xf32>
      %70 = arith.addf %68, %69 : vector<2x16xf32>
      %71 = arith.negf %70 : vector<2x16xf32>
      %72 = math.exp %71 : vector<2x16xf32>
      %cst_30 = arith.constant 1.000000e+00 : f32
      %73 = vector.broadcast %cst_30 : f32 to vector<2x16xf32>
      %74 = arith.addf %73, %72 : vector<2x16xf32>
      %75 = arith.divf %73, %74 : vector<2x16xf32>
      %76 = vector.extract_strided_slice %56 {offsets = [0, 32], sizes = [2, 16], strides = [1, 1]} : vector<2x48xf32> to vector<2x16xf32>
      %77 = vector.extract_strided_slice %59 {offsets = [0, 32], sizes = [2, 16], strides = [1, 1]} : vector<2x48xf32> to vector<2x16xf32>
      %78 = arith.mulf %67, %77 : vector<2x16xf32>
      %79 = arith.addf %76, %78 : vector<2x16xf32>
      %80 = math.tanh %79 : vector<2x16xf32>
      %cst_31 = arith.constant 1.000000e+00 : f32
      %81 = vector.broadcast %cst_31 : f32 to vector<2x16xf32>
      %82 = arith.subf %81, %75 : vector<2x16xf32>
      %83 = arith.mulf %82, %80 : vector<2x16xf32>
      %84 = arith.mulf %75, %48 : vector<2x16xf32>
      %85 = arith.addf %83, %84 : vector<2x16xf32>
      %c0_32 = arith.constant 0 : index
      %c1_33 = arith.constant 1 : index
      %c0_34 = arith.constant 0 : index
      %c0_35 = arith.constant 0 : index
      %86 = vector.load %arg6[%c0_32, %c1_33, %c0_34, %c0_35] : memref<1x8x2x16xf32, #tpu.memory_space<vmem>>, vector<1x1x2x16xf32>
      %87 = vector.shape_cast %86 : vector<1x1x2x16xf32> to vector<2x16xf32>
      %88 = vector.shape_cast %85 : vector<2x16xf32> to vector<1x1x2x16xf32>
      tpu.vector_store %arg6[%c0_32, %c1_33, %c0_34, %c0_35], %88 {strides = array<i32>} : memref<1x8x2x16xf32, #tpu.memory_space<vmem>>, vector<1x1x2x16xf32>,
      %c2 = arith.constant 2 : index
      %c0_36 = arith.constant 0 : index
      %c0_37 = arith.constant 0 : index
      %89 = vector.load %arg1[%c2, %c0_36, %c0_37] : memref<8x2x16xf32, #tpu.memory_space<vmem>>, vector<1x2x16xf32>
      %90 = vector.shape_cast %89 : vector<1x2x16xf32> to vector<2x16xf32>
      %cst_38 = arith.constant dense<0.000000e+00> : vector<2x48xf32>
      %91 = tpu.matmul %90, %1, %cst_38 {dimension_numbers = #tpu.dot_dimension_numbers<[1], [0], [0], [1], [0, 0, 1, 1], [], []>} : vector<2x16xf32>, vector<16x48xf32>, vector<2x48xf32> -> vector<2x48xf32>
      %92 = vector.broadcast %5 : vector<1x48xf32> to vector<2x48xf32>
      %93 = arith.addf %91, %92 : vector<2x48xf32>
      %cst_39 = arith.constant dense<0.000000e+00> : vector<2x48xf32>
      %94 = tpu.matmul %85, %3, %cst_39 {dimension_numbers = #tpu.dot_dimension_numbers<[1], [0], [0], [1], [0, 0, 1, 1], [], []>} : vector<2x16xf32>, vector<16x48xf32>, vector<2x48xf32> -> vector<2x48xf32>
      %95 = vector.broadcast %7 : vector<1x48xf32> to vector<2x48xf32>
      %96 = arith.addf %94, %95 : vector<2x48xf32>
      %97 = vector.extract_strided_slice %93 {offsets = [0, 0], sizes = [2, 16], strides = [1, 1]} : vector<2x48xf32> to vector<2x16xf32>
      %98 = vector.extract_strided_slice %96 {offsets = [0, 0], sizes = [2, 16], strides = [1, 1]} : vector<2x48xf32> to vector<2x16xf32>
      %99 = arith.addf %97, %98 : vector<2x16xf32>
      %100 = arith.negf %99 : vector<2x16xf32>
      %101 = math.exp %100 : vector<2x16xf32>
      %cst_40 = arith.constant 1.000000e+00 : f32
      %102 = vector.broadcast %cst_40 : f32 to vector<2x16xf32>
      %103 = arith.addf %102, %101 : vector<2x16xf32>
      %104 = arith.divf %102, %103 : vector<2x16xf32>
      %105 = vector.extract_strided_slice %93 {offsets = [0, 16], sizes = [2, 16], strides = [1, 1]} : vector<2x48xf32> to vector<2x16xf32>
      %106 = vector.extract_strided_slice %96 {offsets = [0, 16], sizes = [2, 16], strides = [1, 1]} : vector<2x48xf32> to vector<2x16xf32>
      %107 = arith.addf %105, %106 : vector<2x16xf32>
      %108 = arith.negf %107 : vector<2x16xf32>
      %109 = math.exp %108 : vector<2x16xf32>
      %cst_41 = arith.constant 1.000000e+00 : f32
      %110 = vector.broadcast %cst_41 : f32 to vector<2x16xf32>
      %111 = arith.addf %110, %109 : vector<2x16xf32>
      %112 = arith.divf %110, %111 : vector<2x16xf32>
      %113 = vector.extract_strided_slice %93 {offsets = [0, 32], sizes = [2, 16], strides = [1, 1]} : vector<2x48xf32> to vector<2x16xf32>
      %114 = vector.extract_strided_slice %96 {offsets = [0, 32], sizes = [2, 16], strides = [1, 1]} : vector<2x48xf32> to vector<2x16xf32>
      %115 = arith.mulf %104, %114 : vector<2x16xf32>
      %116 = arith.addf %113, %115 : vector<2x16xf32>
      %117 = math.tanh %116 : vector<2x16xf32>
      %cst_42 = arith.constant 1.000000e+00 : f32
      %118 = vector.broadcast %cst_42 : f32 to vector<2x16xf32>
      %119 = arith.subf %118, %112 : vector<2x16xf32>
      %120 = arith.mulf %119, %117 : vector<2x16xf32>
      %121 = arith.mulf %112, %85 : vector<2x16xf32>
      %122 = arith.addf %120, %121 : vector<2x16xf32>
      %c0_43 = arith.constant 0 : index
      %c2_44 = arith.constant 2 : index
      %c0_45 = arith.constant 0 : index
      %c0_46 = arith.constant 0 : index
      %123 = vector.load %arg6[%c0_43, %c2_44, %c0_45, %c0_46] : memref<1x8x2x16xf32, #tpu.memory_space<vmem>>, vector<1x1x2x16xf32>
      %124 = vector.shape_cast %123 : vector<1x1x2x16xf32> to vector<2x16xf32>
      %125 = vector.shape_cast %122 : vector<2x16xf32> to vector<1x1x2x16xf32>
      tpu.vector_store %arg6[%c0_43, %c2_44, %c0_45, %c0_46], %125 {strides = array<i32>} : memref<1x8x2x16xf32, #tpu.memory_space<vmem>>, vector<1x1x2x16xf32>,
      %c3 = arith.constant 3 : index
      %c0_47 = arith.constant 0 : index
      %c0_48 = arith.constant 0 : index
      %126 = vector.load %arg1[%c3, %c0_47, %c0_48] : memref<8x2x16xf32, #tpu.memory_space<vmem>>, vector<1x2x16xf32>
      %127 = vector.shape_cast %126 : vector<1x2x16xf32> to vector<2x16xf32>
      %cst_49 = arith.constant dense<0.000000e+00> : vector<2x48xf32>
      %128 = tpu.matmul %127, %1, %cst_49 {dimension_numbers = #tpu.dot_dimension_numbers<[1], [0], [0], [1], [0, 0, 1, 1], [], []>} : vector<2x16xf32>, vector<16x48xf32>, vector<2x48xf32> -> vector<2x48xf32>
      %129 = vector.broadcast %5 : vector<1x48xf32> to vector<2x48xf32>
      %130 = arith.addf %128, %129 : vector<2x48xf32>
      %cst_50 = arith.constant dense<0.000000e+00> : vector<2x48xf32>
      %131 = tpu.matmul %122, %3, %cst_50 {dimension_numbers = #tpu.dot_dimension_numbers<[1], [0], [0], [1], [0, 0, 1, 1], [], []>} : vector<2x16xf32>, vector<16x48xf32>, vector<2x48xf32> -> vector<2x48xf32>
      %132 = vector.broadcast %7 : vector<1x48xf32> to vector<2x48xf32>
      %133 = arith.addf %131, %132 : vector<2x48xf32>
      %134 = vector.extract_strided_slice %130 {offsets = [0, 0], sizes = [2, 16], strides = [1, 1]} : vector<2x48xf32> to vector<2x16xf32>
      %135 = vector.extract_strided_slice %133 {offsets = [0, 0], sizes = [2, 16], strides = [1, 1]} : vector<2x48xf32> to vector<2x16xf32>
      %136 = arith.addf %134, %135 : vector<2x16xf32>
      %137 = arith.negf %136 : vector<2x16xf32>
      %138 = math.exp %137 : vector<2x16xf32>
      %cst_51 = arith.constant 1.000000e+00 : f32
      %139 = vector.broadcast %cst_51 : f32 to vector<2x16xf32>
      %140 = arith.addf %139, %138 : vector<2x16xf32>
      %141 = arith.divf %139, %140 : vector<2x16xf32>
      %142 = vector.extract_strided_slice %130 {offsets = [0, 16], sizes = [2, 16], strides = [1, 1]} : vector<2x48xf32> to vector<2x16xf32>
      %143 = vector.extract_strided_slice %133 {offsets = [0, 16], sizes = [2, 16], strides = [1, 1]} : vector<2x48xf32> to vector<2x16xf32>
      %144 = arith.addf %142, %143 : vector<2x16xf32>
      %145 = arith.negf %144 : vector<2x16xf32>
      %146 = math.exp %145 : vector<2x16xf32>
      %cst_52 = arith.constant 1.000000e+00 : f32
      %147 = vector.broadcast %cst_52 : f32 to vector<2x16xf32>
      %148 = arith.addf %147, %146 : vector<2x16xf32>
      %149 = arith.divf %147, %148 : vector<2x16xf32>
      %150 = vector.extract_strided_slice %130 {offsets = [0, 32], sizes = [2, 16], strides = [1, 1]} : vector<2x48xf32> to vector<2x16xf32>
      %151 = vector.extract_strided_slice %133 {offsets = [0, 32], sizes = [2, 16], strides = [1, 1]} : vector<2x48xf32> to vector<2x16xf32>
      %152 = arith.mulf %141, %151 : vector<2x16xf32>
      %153 = arith.addf %150, %152 : vector<2x16xf32>
      %154 = math.tanh %153 : vector<2x16xf32>
      %cst_53 = arith.constant 1.000000e+00 : f32
      %155 = vector.broadcast %cst_53 : f32 to vector<2x16xf32>
      %156 = arith.subf %155, %149 : vector<2x16xf32>
      %157 = arith.mulf %156, %154 : vector<2x16xf32>
      %158 = arith.mulf %149, %122 : vector<2x16xf32>
      %159 = arith.addf %157, %158 : vector<2x16xf32>
      %c0_54 = arith.constant 0 : index
      %c3_55 = arith.constant 3 : index
      %c0_56 = arith.constant 0 : index
      %c0_57 = arith.constant 0 : index
      %160 = vector.load %arg6[%c0_54, %c3_55, %c0_56, %c0_57] : memref<1x8x2x16xf32, #tpu.memory_space<vmem>>, vector<1x1x2x16xf32>
      %161 = vector.shape_cast %160 : vector<1x1x2x16xf32> to vector<2x16xf32>
      %162 = vector.shape_cast %159 : vector<2x16xf32> to vector<1x1x2x16xf32>
      tpu.vector_store %arg6[%c0_54, %c3_55, %c0_56, %c0_57], %162 {strides = array<i32>} : memref<1x8x2x16xf32, #tpu.memory_space<vmem>>, vector<1x1x2x16xf32>,
      %c4 = arith.constant 4 : index
      %c0_58 = arith.constant 0 : index
      %c0_59 = arith.constant 0 : index
      %163 = vector.load %arg1[%c4, %c0_58, %c0_59] : memref<8x2x16xf32, #tpu.memory_space<vmem>>, vector<1x2x16xf32>
      %164 = vector.shape_cast %163 : vector<1x2x16xf32> to vector<2x16xf32>
      %cst_60 = arith.constant dense<0.000000e+00> : vector<2x48xf32>
      %165 = tpu.matmul %164, %1, %cst_60 {dimension_numbers = #tpu.dot_dimension_numbers<[1], [0], [0], [1], [0, 0, 1, 1], [], []>} : vector<2x16xf32>, vector<16x48xf32>, vector<2x48xf32> -> vector<2x48xf32>
      %166 = vector.broadcast %5 : vector<1x48xf32> to vector<2x48xf32>
      %167 = arith.addf %165, %166 : vector<2x48xf32>
      %cst_61 = arith.constant dense<0.000000e+00> : vector<2x48xf32>
      %168 = tpu.matmul %159, %3, %cst_61 {dimension_numbers = #tpu.dot_dimension_numbers<[1], [0], [0], [1], [0, 0, 1, 1], [], []>} : vector<2x16xf32>, vector<16x48xf32>, vector<2x48xf32> -> vector<2x48xf32>
      %169 = vector.broadcast %7 : vector<1x48xf32> to vector<2x48xf32>
      %170 = arith.addf %168, %169 : vector<2x48xf32>
      %171 = vector.extract_strided_slice %167 {offsets = [0, 0], sizes = [2, 16], strides = [1, 1]} : vector<2x48xf32> to vector<2x16xf32>
      %172 = vector.extract_strided_slice %170 {offsets = [0, 0], sizes = [2, 16], strides = [1, 1]} : vector<2x48xf32> to vector<2x16xf32>
      %173 = arith.addf %171, %172 : vector<2x16xf32>
      %174 = arith.negf %173 : vector<2x16xf32>
      %175 = math.exp %174 : vector<2x16xf32>
      %cst_62 = arith.constant 1.000000e+00 : f32
      %176 = vector.broadcast %cst_62 : f32 to vector<2x16xf32>
      %177 = arith.addf %176, %175 : vector<2x16xf32>
      %178 = arith.divf %176, %177 : vector<2x16xf32>
      %179 = vector.extract_strided_slice %167 {offsets = [0, 16], sizes = [2, 16], strides = [1, 1]} : vector<2x48xf32> to vector<2x16xf32>
      %180 = vector.extract_strided_slice %170 {offsets = [0, 16], sizes = [2, 16], strides = [1, 1]} : vector<2x48xf32> to vector<2x16xf32>
      %181 = arith.addf %179, %180 : vector<2x16xf32>
      %182 = arith.negf %181 : vector<2x16xf32>
      %183 = math.exp %182 : vector<2x16xf32>
      %cst_63 = arith.constant 1.000000e+00 : f32
      %184 = vector.broadcast %cst_63 : f32 to vector<2x16xf32>
      %185 = arith.addf %184, %183 : vector<2x16xf32>
      %186 = arith.divf %184, %185 : vector<2x16xf32>
      %187 = vector.extract_strided_slice %167 {offsets = [0, 32], sizes = [2, 16], strides = [1, 1]} : vector<2x48xf32> to vector<2x16xf32>
      %188 = vector.extract_strided_slice %170 {offsets = [0, 32], sizes = [2, 16], strides = [1, 1]} : vector<2x48xf32> to vector<2x16xf32>
      %189 = arith.mulf %178, %188 : vector<2x16xf32>
      %190 = arith.addf %187, %189 : vector<2x16xf32>
      %191 = math.tanh %190 : vector<2x16xf32>
      %cst_64 = arith.constant 1.000000e+00 : f32
      %192 = vector.broadcast %cst_64 : f32 to vector<2x16xf32>
      %193 = arith.subf %192, %186 : vector<2x16xf32>
      %194 = arith.mulf %193, %191 : vector<2x16xf32>
      %195 = arith.mulf %186, %159 : vector<2x16xf32>
      %196 = arith.addf %194, %195 : vector<2x16xf32>
      %c0_65 = arith.constant 0 : index
      %c4_66 = arith.constant 4 : index
      %c0_67 = arith.constant 0 : index
      %c0_68 = arith.constant 0 : index
      %197 = vector.load %arg6[%c0_65, %c4_66, %c0_67, %c0_68] : memref<1x8x2x16xf32, #tpu.memory_space<vmem>>, vector<1x1x2x16xf32>
      %198 = vector.shape_cast %197 : vector<1x1x2x16xf32> to vector<2x16xf32>
      %199 = vector.shape_cast %196 : vector<2x16xf32> to vector<1x1x2x16xf32>
      tpu.vector_store %arg6[%c0_65, %c4_66, %c0_67, %c0_68], %199 {strides = array<i32>} : memref<1x8x2x16xf32, #tpu.memory_space<vmem>>, vector<1x1x2x16xf32>,
      %c5 = arith.constant 5 : index
      %c0_69 = arith.constant 0 : index
      %c0_70 = arith.constant 0 : index
      %200 = vector.load %arg1[%c5, %c0_69, %c0_70] : memref<8x2x16xf32, #tpu.memory_space<vmem>>, vector<1x2x16xf32>
      %201 = vector.shape_cast %200 : vector<1x2x16xf32> to vector<2x16xf32>
      %cst_71 = arith.constant dense<0.000000e+00> : vector<2x48xf32>
      %202 = tpu.matmul %201, %1, %cst_71 {dimension_numbers = #tpu.dot_dimension_numbers<[1], [0], [0], [1], [0, 0, 1, 1], [], []>} : vector<2x16xf32>, vector<16x48xf32>, vector<2x48xf32> -> vector<2x48xf32>
      %203 = vector.broadcast %5 : vector<1x48xf32> to vector<2x48xf32>
      %204 = arith.addf %202, %203 : vector<2x48xf32>
      %cst_72 = arith.constant dense<0.000000e+00> : vector<2x48xf32>
      %205 = tpu.matmul %196, %3, %cst_72 {dimension_numbers = #tpu.dot_dimension_numbers<[1], [0], [0], [1], [0, 0, 1, 1], [], []>} : vector<2x16xf32>, vector<16x48xf32>, vector<2x48xf32> -> vector<2x48xf32>
      %206 = vector.broadcast %7 : vector<1x48xf32> to vector<2x48xf32>
      %207 = arith.addf %205, %206 : vector<2x48xf32>
      %208 = vector.extract_strided_slice %204 {offsets = [0, 0], sizes = [2, 16], strides = [1, 1]} : vector<2x48xf32> to vector<2x16xf32>
      %209 = vector.extract_strided_slice %207 {offsets = [0, 0], sizes = [2, 16], strides = [1, 1]} : vector<2x48xf32> to vector<2x16xf32>
      %210 = arith.addf %208, %209 : vector<2x16xf32>
      %211 = arith.negf %210 : vector<2x16xf32>
      %212 = math.exp %211 : vector<2x16xf32>
      %cst_73 = arith.constant 1.000000e+00 : f32
      %213 = vector.broadcast %cst_73 : f32 to vector<2x16xf32>
      %214 = arith.addf %213, %212 : vector<2x16xf32>
      %215 = arith.divf %213, %214 : vector<2x16xf32>
      %216 = vector.extract_strided_slice %204 {offsets = [0, 16], sizes = [2, 16], strides = [1, 1]} : vector<2x48xf32> to vector<2x16xf32>
      %217 = vector.extract_strided_slice %207 {offsets = [0, 16], sizes = [2, 16], strides = [1, 1]} : vector<2x48xf32> to vector<2x16xf32>
      %218 = arith.addf %216, %217 : vector<2x16xf32>
      %219 = arith.negf %218 : vector<2x16xf32>
      %220 = math.exp %219 : vector<2x16xf32>
      %cst_74 = arith.constant 1.000000e+00 : f32
      %221 = vector.broadcast %cst_74 : f32 to vector<2x16xf32>
      %222 = arith.addf %221, %220 : vector<2x16xf32>
      %223 = arith.divf %221, %222 : vector<2x16xf32>
      %224 = vector.extract_strided_slice %204 {offsets = [0, 32], sizes = [2, 16], strides = [1, 1]} : vector<2x48xf32> to vector<2x16xf32>
      %225 = vector.extract_strided_slice %207 {offsets = [0, 32], sizes = [2, 16], strides = [1, 1]} : vector<2x48xf32> to vector<2x16xf32>
      %226 = arith.mulf %215, %225 : vector<2x16xf32>
      %227 = arith.addf %224, %226 : vector<2x16xf32>
      %228 = math.tanh %227 : vector<2x16xf32>
      %cst_75 = arith.constant 1.000000e+00 : f32
      %229 = vector.broadcast %cst_75 : f32 to vector<2x16xf32>
      %230 = arith.subf %229, %223 : vector<2x16xf32>
      %231 = arith.mulf %230, %228 : vector<2x16xf32>
      %232 = arith.mulf %223, %196 : vector<2x16xf32>
      %233 = arith.addf %231, %232 : vector<2x16xf32>
      %c0_76 = arith.constant 0 : index
      %c5_77 = arith.constant 5 : index
      %c0_78 = arith.constant 0 : index
      %c0_79 = arith.constant 0 : index
      %234 = vector.load %arg6[%c0_76, %c5_77, %c0_78, %c0_79] : memref<1x8x2x16xf32, #tpu.memory_space<vmem>>, vector<1x1x2x16xf32>
      %235 = vector.shape_cast %234 : vector<1x1x2x16xf32> to vector<2x16xf32>
      %236 = vector.shape_cast %233 : vector<2x16xf32> to vector<1x1x2x16xf32>
      tpu.vector_store %arg6[%c0_76, %c5_77, %c0_78, %c0_79], %236 {strides = array<i32>} : memref<1x8x2x16xf32, #tpu.memory_space<vmem>>, vector<1x1x2x16xf32>,
      %c6 = arith.constant 6 : index
      %c0_80 = arith.constant 0 : index
      %c0_81 = arith.constant 0 : index
      %237 = vector.load %arg1[%c6, %c0_80, %c0_81] : memref<8x2x16xf32, #tpu.memory_space<vmem>>, vector<1x2x16xf32>
      %238 = vector.shape_cast %237 : vector<1x2x16xf32> to vector<2x16xf32>
      %cst_82 = arith.constant dense<0.000000e+00> : vector<2x48xf32>
      %239 = tpu.matmul %238, %1, %cst_82 {dimension_numbers = #tpu.dot_dimension_numbers<[1], [0], [0], [1], [0, 0, 1, 1], [], []>} : vector<2x16xf32>, vector<16x48xf32>, vector<2x48xf32> -> vector<2x48xf32>
      %240 = vector.broadcast %5 : vector<1x48xf32> to vector<2x48xf32>
      %241 = arith.addf %239, %240 : vector<2x48xf32>
      %cst_83 = arith.constant dense<0.000000e+00> : vector<2x48xf32>
      %242 = tpu.matmul %233, %3, %cst_83 {dimension_numbers = #tpu.dot_dimension_numbers<[1], [0], [0], [1], [0, 0, 1, 1], [], []>} : vector<2x16xf32>, vector<16x48xf32>, vector<2x48xf32> -> vector<2x48xf32>
      %243 = vector.broadcast %7 : vector<1x48xf32> to vector<2x48xf32>
      %244 = arith.addf %242, %243 : vector<2x48xf32>
      %245 = vector.extract_strided_slice %241 {offsets = [0, 0], sizes = [2, 16], strides = [1, 1]} : vector<2x48xf32> to vector<2x16xf32>
      %246 = vector.extract_strided_slice %244 {offsets = [0, 0], sizes = [2, 16], strides = [1, 1]} : vector<2x48xf32> to vector<2x16xf32>
      %247 = arith.addf %245, %246 : vector<2x16xf32>
      %248 = arith.negf %247 : vector<2x16xf32>
      %249 = math.exp %248 : vector<2x16xf32>
      %cst_84 = arith.constant 1.000000e+00 : f32
      %250 = vector.broadcast %cst_84 : f32 to vector<2x16xf32>
      %251 = arith.addf %250, %249 : vector<2x16xf32>
      %252 = arith.divf %250, %251 : vector<2x16xf32>
      %253 = vector.extract_strided_slice %241 {offsets = [0, 16], sizes = [2, 16], strides = [1, 1]} : vector<2x48xf32> to vector<2x16xf32>
      %254 = vector.extract_strided_slice %244 {offsets = [0, 16], sizes = [2, 16], strides = [1, 1]} : vector<2x48xf32> to vector<2x16xf32>
      %255 = arith.addf %253, %254 : vector<2x16xf32>
      %256 = arith.negf %255 : vector<2x16xf32>
      %257 = math.exp %256 : vector<2x16xf32>
      %cst_85 = arith.constant 1.000000e+00 : f32
      %258 = vector.broadcast %cst_85 : f32 to vector<2x16xf32>
      %259 = arith.addf %258, %257 : vector<2x16xf32>
      %260 = arith.divf %258, %259 : vector<2x16xf32>
      %261 = vector.extract_strided_slice %241 {offsets = [0, 32], sizes = [2, 16], strides = [1, 1]} : vector<2x48xf32> to vector<2x16xf32>
      %262 = vector.extract_strided_slice %244 {offsets = [0, 32], sizes = [2, 16], strides = [1, 1]} : vector<2x48xf32> to vector<2x16xf32>
      %263 = arith.mulf %252, %262 : vector<2x16xf32>
      %264 = arith.addf %261, %263 : vector<2x16xf32>
      %265 = math.tanh %264 : vector<2x16xf32>
      %cst_86 = arith.constant 1.000000e+00 : f32
      %266 = vector.broadcast %cst_86 : f32 to vector<2x16xf32>
      %267 = arith.subf %266, %260 : vector<2x16xf32>
      %268 = arith.mulf %267, %265 : vector<2x16xf32>
      %269 = arith.mulf %260, %233 : vector<2x16xf32>
      %270 = arith.addf %268, %269 : vector<2x16xf32>
      %c0_87 = arith.constant 0 : index
      %c6_88 = arith.constant 6 : index
      %c0_89 = arith.constant 0 : index
      %c0_90 = arith.constant 0 : index
      %271 = vector.load %arg6[%c0_87, %c6_88, %c0_89, %c0_90] : memref<1x8x2x16xf32, #tpu.memory_space<vmem>>, vector<1x1x2x16xf32>
      %272 = vector.shape_cast %271 : vector<1x1x2x16xf32> to vector<2x16xf32>
      %273 = vector.shape_cast %270 : vector<2x16xf32> to vector<1x1x2x16xf32>
      tpu.vector_store %arg6[%c0_87, %c6_88, %c0_89, %c0_90], %273 {strides = array<i32>} : memref<1x8x2x16xf32, #tpu.memory_space<vmem>>, vector<1x1x2x16xf32>,
      %c7 = arith.constant 7 : index
      %c0_91 = arith.constant 0 : index
      %c0_92 = arith.constant 0 : index
      %274 = vector.load %arg1[%c7, %c0_91, %c0_92] : memref<8x2x16xf32, #tpu.memory_space<vmem>>, vector<1x2x16xf32>
      %275 = vector.shape_cast %274 : vector<1x2x16xf32> to vector<2x16xf32>
      %cst_93 = arith.constant dense<0.000000e+00> : vector<2x48xf32>
      %276 = tpu.matmul %275, %1, %cst_93 {dimension_numbers = #tpu.dot_dimension_numbers<[1], [0], [0], [1], [0, 0, 1, 1], [], []>} : vector<2x16xf32>, vector<16x48xf32>, vector<2x48xf32> -> vector<2x48xf32>
      %277 = vector.broadcast %5 : vector<1x48xf32> to vector<2x48xf32>
      %278 = arith.addf %276, %277 : vector<2x48xf32>
      %cst_94 = arith.constant dense<0.000000e+00> : vector<2x48xf32>
      %279 = tpu.matmul %270, %3, %cst_94 {dimension_numbers = #tpu.dot_dimension_numbers<[1], [0], [0], [1], [0, 0, 1, 1], [], []>} : vector<2x16xf32>, vector<16x48xf32>, vector<2x48xf32> -> vector<2x48xf32>
      %280 = vector.broadcast %7 : vector<1x48xf32> to vector<2x48xf32>
      %281 = arith.addf %279, %280 : vector<2x48xf32>
      %282 = vector.extract_strided_slice %278 {offsets = [0, 0], sizes = [2, 16], strides = [1, 1]} : vector<2x48xf32> to vector<2x16xf32>
      %283 = vector.extract_strided_slice %281 {offsets = [0, 0], sizes = [2, 16], strides = [1, 1]} : vector<2x48xf32> to vector<2x16xf32>
      %284 = arith.addf %282, %283 : vector<2x16xf32>
      %285 = arith.negf %284 : vector<2x16xf32>
      %286 = math.exp %285 : vector<2x16xf32>
      %cst_95 = arith.constant 1.000000e+00 : f32
      %287 = vector.broadcast %cst_95 : f32 to vector<2x16xf32>
      %288 = arith.addf %287, %286 : vector<2x16xf32>
      %289 = arith.divf %287, %288 : vector<2x16xf32>
      %290 = vector.extract_strided_slice %278 {offsets = [0, 16], sizes = [2, 16], strides = [1, 1]} : vector<2x48xf32> to vector<2x16xf32>
      %291 = vector.extract_strided_slice %281 {offsets = [0, 16], sizes = [2, 16], strides = [1, 1]} : vector<2x48xf32> to vector<2x16xf32>
      %292 = arith.addf %290, %291 : vector<2x16xf32>
      %293 = arith.negf %292 : vector<2x16xf32>
      %294 = math.exp %293 : vector<2x16xf32>
      %cst_96 = arith.constant 1.000000e+00 : f32
      %295 = vector.broadcast %cst_96 : f32 to vector<2x16xf32>
      %296 = arith.addf %295, %294 : vector<2x16xf32>
      %297 = arith.divf %295, %296 : vector<2x16xf32>
      %298 = vector.extract_strided_slice %278 {offsets = [0, 32], sizes = [2, 16], strides = [1, 1]} : vector<2x48xf32> to vector<2x16xf32>
      %299 = vector.extract_strided_slice %281 {offsets = [0, 32], sizes = [2, 16], strides = [1, 1]} : vector<2x48xf32> to vector<2x16xf32>
      %300 = arith.mulf %289, %299 : vector<2x16xf32>
      %301 = arith.addf %298, %300 : vector<2x16xf32>
      %302 = math.tanh %301 : vector<2x16xf32>
      %cst_97 = arith.constant 1.000000e+00 : f32
      %303 = vector.broadcast %cst_97 : f32 to vector<2x16xf32>
      %304 = arith.subf %303, %297 : vector<2x16xf32>
      %305 = arith.mulf %304, %302 : vector<2x16xf32>
      %306 = arith.mulf %297, %270 : vector<2x16xf32>
      %307 = arith.addf %305, %306 : vector<2x16xf32>
      %c0_98 = arith.constant 0 : index
      %c7_99 = arith.constant 7 : index
      %c0_100 = arith.constant 0 : index
      %c0_101 = arith.constant 0 : index
      %308 = vector.load %arg6[%c0_98, %c7_99, %c0_100, %c0_101] : memref<1x8x2x16xf32, #tpu.memory_space<vmem>>, vector<1x1x2x16xf32>
      %309 = vector.shape_cast %308 : vector<1x1x2x16xf32> to vector<2x16xf32>
      %310 = vector.shape_cast %307 : vector<2x16xf32> to vector<1x1x2x16xf32>
      tpu.vector_store %arg6[%c0_98, %c7_99, %c0_100, %c0_101], %310 {strides = array<i32>} : memref<1x8x2x16xf32, #tpu.memory_space<vmem>>, vector<1x1x2x16xf32>,
    } else {
    }
    %c1_i32 = arith.constant 1 : i32
    %11 = arith.cmpi eq, %arg0, %c1_i32 : i32
    %12 = arith.extui %11 : i1 to i32
    %c0_i32_12 = arith.constant 0 : i32
    %13 = arith.cmpi ne, %12, %c0_i32_12 : i32
    scf.if %13 {
      %cst = arith.constant 0.000000e+00 : f32
      %14 = vector.broadcast %cst : f32 to vector<2x16xf32>
      %c7 = arith.constant 7 : index
      %c0_13 = arith.constant 0 : index
      %c0_14 = arith.constant 0 : index
      %15 = vector.load %arg1[%c7, %c0_13, %c0_14] : memref<8x2x16xf32, #tpu.memory_space<vmem>>, vector<1x2x16xf32>
      %16 = vector.shape_cast %15 : vector<1x2x16xf32> to vector<2x16xf32>
      %cst_15 = arith.constant dense<0.000000e+00> : vector<2x48xf32>
      %17 = tpu.matmul %16, %1, %cst_15 {dimension_numbers = #tpu.dot_dimension_numbers<[1], [0], [0], [1], [0, 0, 1, 1], [], []>} : vector<2x16xf32>, vector<16x48xf32>, vector<2x48xf32> -> vector<2x48xf32>
      %18 = vector.broadcast %5 : vector<1x48xf32> to vector<2x48xf32>
      %19 = arith.addf %17, %18 : vector<2x48xf32>
      %cst_16 = arith.constant dense<0.000000e+00> : vector<2x48xf32>
      %20 = tpu.matmul %14, %3, %cst_16 {dimension_numbers = #tpu.dot_dimension_numbers<[1], [0], [0], [1], [0, 0, 1, 1], [], []>} : vector<2x16xf32>, vector<16x48xf32>, vector<2x48xf32> -> vector<2x48xf32>
      %21 = vector.broadcast %7 : vector<1x48xf32> to vector<2x48xf32>
      %22 = arith.addf %20, %21 : vector<2x48xf32>
      %23 = vector.extract_strided_slice %19 {offsets = [0, 0], sizes = [2, 16], strides = [1, 1]} : vector<2x48xf32> to vector<2x16xf32>
      %24 = vector.extract_strided_slice %22 {offsets = [0, 0], sizes = [2, 16], strides = [1, 1]} : vector<2x48xf32> to vector<2x16xf32>
      %25 = arith.addf %23, %24 : vector<2x16xf32>
      %26 = arith.negf %25 : vector<2x16xf32>
      %27 = math.exp %26 : vector<2x16xf32>
      %cst_17 = arith.constant 1.000000e+00 : f32
      %28 = vector.broadcast %cst_17 : f32 to vector<2x16xf32>
      %29 = arith.addf %28, %27 : vector<2x16xf32>
      %30 = arith.divf %28, %29 : vector<2x16xf32>
      %31 = vector.extract_strided_slice %19 {offsets = [0, 16], sizes = [2, 16], strides = [1, 1]} : vector<2x48xf32> to vector<2x16xf32>
      %32 = vector.extract_strided_slice %22 {offsets = [0, 16], sizes = [2, 16], strides = [1, 1]} : vector<2x48xf32> to vector<2x16xf32>
      %33 = arith.addf %31, %32 : vector<2x16xf32>
      %34 = arith.negf %33 : vector<2x16xf32>
      %35 = math.exp %34 : vector<2x16xf32>
      %cst_18 = arith.constant 1.000000e+00 : f32
      %36 = vector.broadcast %cst_18 : f32 to vector<2x16xf32>
      %37 = arith.addf %36, %35 : vector<2x16xf32>
      %38 = arith.divf %36, %37 : vector<2x16xf32>
      %39 = vector.extract_strided_slice %19 {offsets = [0, 32], sizes = [2, 16], strides = [1, 1]} : vector<2x48xf32> to vector<2x16xf32>
      %40 = vector.extract_strided_slice %22 {offsets = [0, 32], sizes = [2, 16], strides = [1, 1]} : vector<2x48xf32> to vector<2x16xf32>
      %41 = arith.mulf %30, %40 : vector<2x16xf32>
      %42 = arith.addf %39, %41 : vector<2x16xf32>
      %43 = math.tanh %42 : vector<2x16xf32>
      %cst_19 = arith.constant 1.000000e+00 : f32
      %44 = vector.broadcast %cst_19 : f32 to vector<2x16xf32>
      %45 = arith.subf %44, %38 : vector<2x16xf32>
      %46 = arith.mulf %45, %43 : vector<2x16xf32>
      %47 = arith.mulf %38, %14 : vector<2x16xf32>
      %48 = arith.addf %46, %47 : vector<2x16xf32>
      %c0_20 = arith.constant 0 : index
      %c7_21 = arith.constant 7 : index
      %c0_22 = arith.constant 0 : index
      %c0_23 = arith.constant 0 : index
      %49 = vector.load %arg6[%c0_20, %c7_21, %c0_22, %c0_23] : memref<1x8x2x16xf32, #tpu.memory_space<vmem>>, vector<1x1x2x16xf32>
      %50 = vector.shape_cast %49 : vector<1x1x2x16xf32> to vector<2x16xf32>
      %51 = vector.shape_cast %48 : vector<2x16xf32> to vector<1x1x2x16xf32>
      tpu.vector_store %arg6[%c0_20, %c7_21, %c0_22, %c0_23], %51 {strides = array<i32>} : memref<1x8x2x16xf32, #tpu.memory_space<vmem>>, vector<1x1x2x16xf32>,
      %c6 = arith.constant 6 : index
      %c0_24 = arith.constant 0 : index
      %c0_25 = arith.constant 0 : index
      %52 = vector.load %arg1[%c6, %c0_24, %c0_25] : memref<8x2x16xf32, #tpu.memory_space<vmem>>, vector<1x2x16xf32>
      %53 = vector.shape_cast %52 : vector<1x2x16xf32> to vector<2x16xf32>
      %cst_26 = arith.constant dense<0.000000e+00> : vector<2x48xf32>
      %54 = tpu.matmul %53, %1, %cst_26 {dimension_numbers = #tpu.dot_dimension_numbers<[1], [0], [0], [1], [0, 0, 1, 1], [], []>} : vector<2x16xf32>, vector<16x48xf32>, vector<2x48xf32> -> vector<2x48xf32>
      %55 = vector.broadcast %5 : vector<1x48xf32> to vector<2x48xf32>
      %56 = arith.addf %54, %55 : vector<2x48xf32>
      %cst_27 = arith.constant dense<0.000000e+00> : vector<2x48xf32>
      %57 = tpu.matmul %48, %3, %cst_27 {dimension_numbers = #tpu.dot_dimension_numbers<[1], [0], [0], [1], [0, 0, 1, 1], [], []>} : vector<2x16xf32>, vector<16x48xf32>, vector<2x48xf32> -> vector<2x48xf32>
      %58 = vector.broadcast %7 : vector<1x48xf32> to vector<2x48xf32>
      %59 = arith.addf %57, %58 : vector<2x48xf32>
      %60 = vector.extract_strided_slice %56 {offsets = [0, 0], sizes = [2, 16], strides = [1, 1]} : vector<2x48xf32> to vector<2x16xf32>
      %61 = vector.extract_strided_slice %59 {offsets = [0, 0], sizes = [2, 16], strides = [1, 1]} : vector<2x48xf32> to vector<2x16xf32>
      %62 = arith.addf %60, %61 : vector<2x16xf32>
      %63 = arith.negf %62 : vector<2x16xf32>
      %64 = math.exp %63 : vector<2x16xf32>
      %cst_28 = arith.constant 1.000000e+00 : f32
      %65 = vector.broadcast %cst_28 : f32 to vector<2x16xf32>
      %66 = arith.addf %65, %64 : vector<2x16xf32>
      %67 = arith.divf %65, %66 : vector<2x16xf32>
      %68 = vector.extract_strided_slice %56 {offsets = [0, 16], sizes = [2, 16], strides = [1, 1]} : vector<2x48xf32> to vector<2x16xf32>
      %69 = vector.extract_strided_slice %59 {offsets = [0, 16], sizes = [2, 16], strides = [1, 1]} : vector<2x48xf32> to vector<2x16xf32>
      %70 = arith.addf %68, %69 : vector<2x16xf32>
      %71 = arith.negf %70 : vector<2x16xf32>
      %72 = math.exp %71 : vector<2x16xf32>
      %cst_29 = arith.constant 1.000000e+00 : f32
      %73 = vector.broadcast %cst_29 : f32 to vector<2x16xf32>
      %74 = arith.addf %73, %72 : vector<2x16xf32>
      %75 = arith.divf %73, %74 : vector<2x16xf32>
      %76 = vector.extract_strided_slice %56 {offsets = [0, 32], sizes = [2, 16], strides = [1, 1]} : vector<2x48xf32> to vector<2x16xf32>
      %77 = vector.extract_strided_slice %59 {offsets = [0, 32], sizes = [2, 16], strides = [1, 1]} : vector<2x48xf32> to vector<2x16xf32>
      %78 = arith.mulf %67, %77 : vector<2x16xf32>
      %79 = arith.addf %76, %78 : vector<2x16xf32>
      %80 = math.tanh %79 : vector<2x16xf32>
      %cst_30 = arith.constant 1.000000e+00 : f32
      %81 = vector.broadcast %cst_30 : f32 to vector<2x16xf32>
      %82 = arith.subf %81, %75 : vector<2x16xf32>
      %83 = arith.mulf %82, %80 : vector<2x16xf32>
      %84 = arith.mulf %75, %48 : vector<2x16xf32>
      %85 = arith.addf %83, %84 : vector<2x16xf32>
      %c0_31 = arith.constant 0 : index
      %c6_32 = arith.constant 6 : index
      %c0_33 = arith.constant 0 : index
      %c0_34 = arith.constant 0 : index
      %86 = vector.load %arg6[%c0_31, %c6_32, %c0_33, %c0_34] : memref<1x8x2x16xf32, #tpu.memory_space<vmem>>, vector<1x1x2x16xf32>
      %87 = vector.shape_cast %86 : vector<1x1x2x16xf32> to vector<2x16xf32>
      %88 = vector.shape_cast %85 : vector<2x16xf32> to vector<1x1x2x16xf32>
      tpu.vector_store %arg6[%c0_31, %c6_32, %c0_33, %c0_34], %88 {strides = array<i32>} : memref<1x8x2x16xf32, #tpu.memory_space<vmem>>, vector<1x1x2x16xf32>,
      %c5 = arith.constant 5 : index
      %c0_35 = arith.constant 0 : index
      %c0_36 = arith.constant 0 : index
      %89 = vector.load %arg1[%c5, %c0_35, %c0_36] : memref<8x2x16xf32, #tpu.memory_space<vmem>>, vector<1x2x16xf32>
      %90 = vector.shape_cast %89 : vector<1x2x16xf32> to vector<2x16xf32>
      %cst_37 = arith.constant dense<0.000000e+00> : vector<2x48xf32>
      %91 = tpu.matmul %90, %1, %cst_37 {dimension_numbers = #tpu.dot_dimension_numbers<[1], [0], [0], [1], [0, 0, 1, 1], [], []>} : vector<2x16xf32>, vector<16x48xf32>, vector<2x48xf32> -> vector<2x48xf32>
      %92 = vector.broadcast %5 : vector<1x48xf32> to vector<2x48xf32>
      %93 = arith.addf %91, %92 : vector<2x48xf32>
      %cst_38 = arith.constant dense<0.000000e+00> : vector<2x48xf32>
      %94 = tpu.matmul %85, %3, %cst_38 {dimension_numbers = #tpu.dot_dimension_numbers<[1], [0], [0], [1], [0, 0, 1, 1], [], []>} : vector<2x16xf32>, vector<16x48xf32>, vector<2x48xf32> -> vector<2x48xf32>
      %95 = vector.broadcast %7 : vector<1x48xf32> to vector<2x48xf32>
      %96 = arith.addf %94, %95 : vector<2x48xf32>
      %97 = vector.extract_strided_slice %93 {offsets = [0, 0], sizes = [2, 16], strides = [1, 1]} : vector<2x48xf32> to vector<2x16xf32>
      %98 = vector.extract_strided_slice %96 {offsets = [0, 0], sizes = [2, 16], strides = [1, 1]} : vector<2x48xf32> to vector<2x16xf32>
      %99 = arith.addf %97, %98 : vector<2x16xf32>
      %100 = arith.negf %99 : vector<2x16xf32>
      %101 = math.exp %100 : vector<2x16xf32>
      %cst_39 = arith.constant 1.000000e+00 : f32
      %102 = vector.broadcast %cst_39 : f32 to vector<2x16xf32>
      %103 = arith.addf %102, %101 : vector<2x16xf32>
      %104 = arith.divf %102, %103 : vector<2x16xf32>
      %105 = vector.extract_strided_slice %93 {offsets = [0, 16], sizes = [2, 16], strides = [1, 1]} : vector<2x48xf32> to vector<2x16xf32>
      %106 = vector.extract_strided_slice %96 {offsets = [0, 16], sizes = [2, 16], strides = [1, 1]} : vector<2x48xf32> to vector<2x16xf32>
      %107 = arith.addf %105, %106 : vector<2x16xf32>
      %108 = arith.negf %107 : vector<2x16xf32>
      %109 = math.exp %108 : vector<2x16xf32>
      %cst_40 = arith.constant 1.000000e+00 : f32
      %110 = vector.broadcast %cst_40 : f32 to vector<2x16xf32>
      %111 = arith.addf %110, %109 : vector<2x16xf32>
      %112 = arith.divf %110, %111 : vector<2x16xf32>
      %113 = vector.extract_strided_slice %93 {offsets = [0, 32], sizes = [2, 16], strides = [1, 1]} : vector<2x48xf32> to vector<2x16xf32>
      %114 = vector.extract_strided_slice %96 {offsets = [0, 32], sizes = [2, 16], strides = [1, 1]} : vector<2x48xf32> to vector<2x16xf32>
      %115 = arith.mulf %104, %114 : vector<2x16xf32>
      %116 = arith.addf %113, %115 : vector<2x16xf32>
      %117 = math.tanh %116 : vector<2x16xf32>
      %cst_41 = arith.constant 1.000000e+00 : f32
      %118 = vector.broadcast %cst_41 : f32 to vector<2x16xf32>
      %119 = arith.subf %118, %112 : vector<2x16xf32>
      %120 = arith.mulf %119, %117 : vector<2x16xf32>
      %121 = arith.mulf %112, %85 : vector<2x16xf32>
      %122 = arith.addf %120, %121 : vector<2x16xf32>
      %c0_42 = arith.constant 0 : index
      %c5_43 = arith.constant 5 : index
      %c0_44 = arith.constant 0 : index
      %c0_45 = arith.constant 0 : index
      %123 = vector.load %arg6[%c0_42, %c5_43, %c0_44, %c0_45] : memref<1x8x2x16xf32, #tpu.memory_space<vmem>>, vector<1x1x2x16xf32>
      %124 = vector.shape_cast %123 : vector<1x1x2x16xf32> to vector<2x16xf32>
      %125 = vector.shape_cast %122 : vector<2x16xf32> to vector<1x1x2x16xf32>
      tpu.vector_store %arg6[%c0_42, %c5_43, %c0_44, %c0_45], %125 {strides = array<i32>} : memref<1x8x2x16xf32, #tpu.memory_space<vmem>>, vector<1x1x2x16xf32>,
      %c4 = arith.constant 4 : index
      %c0_46 = arith.constant 0 : index
      %c0_47 = arith.constant 0 : index
      %126 = vector.load %arg1[%c4, %c0_46, %c0_47] : memref<8x2x16xf32, #tpu.memory_space<vmem>>, vector<1x2x16xf32>
      %127 = vector.shape_cast %126 : vector<1x2x16xf32> to vector<2x16xf32>
      %cst_48 = arith.constant dense<0.000000e+00> : vector<2x48xf32>
      %128 = tpu.matmul %127, %1, %cst_48 {dimension_numbers = #tpu.dot_dimension_numbers<[1], [0], [0], [1], [0, 0, 1, 1], [], []>} : vector<2x16xf32>, vector<16x48xf32>, vector<2x48xf32> -> vector<2x48xf32>
      %129 = vector.broadcast %5 : vector<1x48xf32> to vector<2x48xf32>
      %130 = arith.addf %128, %129 : vector<2x48xf32>
      %cst_49 = arith.constant dense<0.000000e+00> : vector<2x48xf32>
      %131 = tpu.matmul %122, %3, %cst_49 {dimension_numbers = #tpu.dot_dimension_numbers<[1], [0], [0], [1], [0, 0, 1, 1], [], []>} : vector<2x16xf32>, vector<16x48xf32>, vector<2x48xf32> -> vector<2x48xf32>
      %132 = vector.broadcast %7 : vector<1x48xf32> to vector<2x48xf32>
      %133 = arith.addf %131, %132 : vector<2x48xf32>
      %134 = vector.extract_strided_slice %130 {offsets = [0, 0], sizes = [2, 16], strides = [1, 1]} : vector<2x48xf32> to vector<2x16xf32>
      %135 = vector.extract_strided_slice %133 {offsets = [0, 0], sizes = [2, 16], strides = [1, 1]} : vector<2x48xf32> to vector<2x16xf32>
      %136 = arith.addf %134, %135 : vector<2x16xf32>
      %137 = arith.negf %136 : vector<2x16xf32>
      %138 = math.exp %137 : vector<2x16xf32>
      %cst_50 = arith.constant 1.000000e+00 : f32
      %139 = vector.broadcast %cst_50 : f32 to vector<2x16xf32>
      %140 = arith.addf %139, %138 : vector<2x16xf32>
      %141 = arith.divf %139, %140 : vector<2x16xf32>
      %142 = vector.extract_strided_slice %130 {offsets = [0, 16], sizes = [2, 16], strides = [1, 1]} : vector<2x48xf32> to vector<2x16xf32>
      %143 = vector.extract_strided_slice %133 {offsets = [0, 16], sizes = [2, 16], strides = [1, 1]} : vector<2x48xf32> to vector<2x16xf32>
      %144 = arith.addf %142, %143 : vector<2x16xf32>
      %145 = arith.negf %144 : vector<2x16xf32>
      %146 = math.exp %145 : vector<2x16xf32>
      %cst_51 = arith.constant 1.000000e+00 : f32
      %147 = vector.broadcast %cst_51 : f32 to vector<2x16xf32>
      %148 = arith.addf %147, %146 : vector<2x16xf32>
      %149 = arith.divf %147, %148 : vector<2x16xf32>
      %150 = vector.extract_strided_slice %130 {offsets = [0, 32], sizes = [2, 16], strides = [1, 1]} : vector<2x48xf32> to vector<2x16xf32>
      %151 = vector.extract_strided_slice %133 {offsets = [0, 32], sizes = [2, 16], strides = [1, 1]} : vector<2x48xf32> to vector<2x16xf32>
      %152 = arith.mulf %141, %151 : vector<2x16xf32>
      %153 = arith.addf %150, %152 : vector<2x16xf32>
      %154 = math.tanh %153 : vector<2x16xf32>
      %cst_52 = arith.constant 1.000000e+00 : f32
      %155 = vector.broadcast %cst_52 : f32 to vector<2x16xf32>
      %156 = arith.subf %155, %149 : vector<2x16xf32>
      %157 = arith.mulf %156, %154 : vector<2x16xf32>
      %158 = arith.mulf %149, %122 : vector<2x16xf32>
      %159 = arith.addf %157, %158 : vector<2x16xf32>
      %c0_53 = arith.constant 0 : index
      %c4_54 = arith.constant 4 : index
      %c0_55 = arith.constant 0 : index
      %c0_56 = arith.constant 0 : index
      %160 = vector.load %arg6[%c0_53, %c4_54, %c0_55, %c0_56] : memref<1x8x2x16xf32, #tpu.memory_space<vmem>>, vector<1x1x2x16xf32>
      %161 = vector.shape_cast %160 : vector<1x1x2x16xf32> to vector<2x16xf32>
      %162 = vector.shape_cast %159 : vector<2x16xf32> to vector<1x1x2x16xf32>
      tpu.vector_store %arg6[%c0_53, %c4_54, %c0_55, %c0_56], %162 {strides = array<i32>} : memref<1x8x2x16xf32, #tpu.memory_space<vmem>>, vector<1x1x2x16xf32>,
      %c3 = arith.constant 3 : index
      %c0_57 = arith.constant 0 : index
      %c0_58 = arith.constant 0 : index
      %163 = vector.load %arg1[%c3, %c0_57, %c0_58] : memref<8x2x16xf32, #tpu.memory_space<vmem>>, vector<1x2x16xf32>
      %164 = vector.shape_cast %163 : vector<1x2x16xf32> to vector<2x16xf32>
      %cst_59 = arith.constant dense<0.000000e+00> : vector<2x48xf32>
      %165 = tpu.matmul %164, %1, %cst_59 {dimension_numbers = #tpu.dot_dimension_numbers<[1], [0], [0], [1], [0, 0, 1, 1], [], []>} : vector<2x16xf32>, vector<16x48xf32>, vector<2x48xf32> -> vector<2x48xf32>
      %166 = vector.broadcast %5 : vector<1x48xf32> to vector<2x48xf32>
      %167 = arith.addf %165, %166 : vector<2x48xf32>
      %cst_60 = arith.constant dense<0.000000e+00> : vector<2x48xf32>
      %168 = tpu.matmul %159, %3, %cst_60 {dimension_numbers = #tpu.dot_dimension_numbers<[1], [0], [0], [1], [0, 0, 1, 1], [], []>} : vector<2x16xf32>, vector<16x48xf32>, vector<2x48xf32> -> vector<2x48xf32>
      %169 = vector.broadcast %7 : vector<1x48xf32> to vector<2x48xf32>
      %170 = arith.addf %168, %169 : vector<2x48xf32>
      %171 = vector.extract_strided_slice %167 {offsets = [0, 0], sizes = [2, 16], strides = [1, 1]} : vector<2x48xf32> to vector<2x16xf32>
      %172 = vector.extract_strided_slice %170 {offsets = [0, 0], sizes = [2, 16], strides = [1, 1]} : vector<2x48xf32> to vector<2x16xf32>
      %173 = arith.addf %171, %172 : vector<2x16xf32>
      %174 = arith.negf %173 : vector<2x16xf32>
      %175 = math.exp %174 : vector<2x16xf32>
      %cst_61 = arith.constant 1.000000e+00 : f32
      %176 = vector.broadcast %cst_61 : f32 to vector<2x16xf32>
      %177 = arith.addf %176, %175 : vector<2x16xf32>
      %178 = arith.divf %176, %177 : vector<2x16xf32>
      %179 = vector.extract_strided_slice %167 {offsets = [0, 16], sizes = [2, 16], strides = [1, 1]} : vector<2x48xf32> to vector<2x16xf32>
      %180 = vector.extract_strided_slice %170 {offsets = [0, 16], sizes = [2, 16], strides = [1, 1]} : vector<2x48xf32> to vector<2x16xf32>
      %181 = arith.addf %179, %180 : vector<2x16xf32>
      %182 = arith.negf %181 : vector<2x16xf32>
      %183 = math.exp %182 : vector<2x16xf32>
      %cst_62 = arith.constant 1.000000e+00 : f32
      %184 = vector.broadcast %cst_62 : f32 to vector<2x16xf32>
      %185 = arith.addf %184, %183 : vector<2x16xf32>
      %186 = arith.divf %184, %185 : vector<2x16xf32>
      %187 = vector.extract_strided_slice %167 {offsets = [0, 32], sizes = [2, 16], strides = [1, 1]} : vector<2x48xf32> to vector<2x16xf32>
      %188 = vector.extract_strided_slice %170 {offsets = [0, 32], sizes = [2, 16], strides = [1, 1]} : vector<2x48xf32> to vector<2x16xf32>
      %189 = arith.mulf %178, %188 : vector<2x16xf32>
      %190 = arith.addf %187, %189 : vector<2x16xf32>
      %191 = math.tanh %190 : vector<2x16xf32>
      %cst_63 = arith.constant 1.000000e+00 : f32
      %192 = vector.broadcast %cst_63 : f32 to vector<2x16xf32>
      %193 = arith.subf %192, %186 : vector<2x16xf32>
      %194 = arith.mulf %193, %191 : vector<2x16xf32>
      %195 = arith.mulf %186, %159 : vector<2x16xf32>
      %196 = arith.addf %194, %195 : vector<2x16xf32>
      %c0_64 = arith.constant 0 : index
      %c3_65 = arith.constant 3 : index
      %c0_66 = arith.constant 0 : index
      %c0_67 = arith.constant 0 : index
      %197 = vector.load %arg6[%c0_64, %c3_65, %c0_66, %c0_67] : memref<1x8x2x16xf32, #tpu.memory_space<vmem>>, vector<1x1x2x16xf32>
      %198 = vector.shape_cast %197 : vector<1x1x2x16xf32> to vector<2x16xf32>
      %199 = vector.shape_cast %196 : vector<2x16xf32> to vector<1x1x2x16xf32>
      tpu.vector_store %arg6[%c0_64, %c3_65, %c0_66, %c0_67], %199 {strides = array<i32>} : memref<1x8x2x16xf32, #tpu.memory_space<vmem>>, vector<1x1x2x16xf32>,
      %c2 = arith.constant 2 : index
      %c0_68 = arith.constant 0 : index
      %c0_69 = arith.constant 0 : index
      %200 = vector.load %arg1[%c2, %c0_68, %c0_69] : memref<8x2x16xf32, #tpu.memory_space<vmem>>, vector<1x2x16xf32>
      %201 = vector.shape_cast %200 : vector<1x2x16xf32> to vector<2x16xf32>
      %cst_70 = arith.constant dense<0.000000e+00> : vector<2x48xf32>
      %202 = tpu.matmul %201, %1, %cst_70 {dimension_numbers = #tpu.dot_dimension_numbers<[1], [0], [0], [1], [0, 0, 1, 1], [], []>} : vector<2x16xf32>, vector<16x48xf32>, vector<2x48xf32> -> vector<2x48xf32>
      %203 = vector.broadcast %5 : vector<1x48xf32> to vector<2x48xf32>
      %204 = arith.addf %202, %203 : vector<2x48xf32>
      %cst_71 = arith.constant dense<0.000000e+00> : vector<2x48xf32>
      %205 = tpu.matmul %196, %3, %cst_71 {dimension_numbers = #tpu.dot_dimension_numbers<[1], [0], [0], [1], [0, 0, 1, 1], [], []>} : vector<2x16xf32>, vector<16x48xf32>, vector<2x48xf32> -> vector<2x48xf32>
      %206 = vector.broadcast %7 : vector<1x48xf32> to vector<2x48xf32>
      %207 = arith.addf %205, %206 : vector<2x48xf32>
      %208 = vector.extract_strided_slice %204 {offsets = [0, 0], sizes = [2, 16], strides = [1, 1]} : vector<2x48xf32> to vector<2x16xf32>
      %209 = vector.extract_strided_slice %207 {offsets = [0, 0], sizes = [2, 16], strides = [1, 1]} : vector<2x48xf32> to vector<2x16xf32>
      %210 = arith.addf %208, %209 : vector<2x16xf32>
      %211 = arith.negf %210 : vector<2x16xf32>
      %212 = math.exp %211 : vector<2x16xf32>
      %cst_72 = arith.constant 1.000000e+00 : f32
      %213 = vector.broadcast %cst_72 : f32 to vector<2x16xf32>
      %214 = arith.addf %213, %212 : vector<2x16xf32>
      %215 = arith.divf %213, %214 : vector<2x16xf32>
      %216 = vector.extract_strided_slice %204 {offsets = [0, 16], sizes = [2, 16], strides = [1, 1]} : vector<2x48xf32> to vector<2x16xf32>
      %217 = vector.extract_strided_slice %207 {offsets = [0, 16], sizes = [2, 16], strides = [1, 1]} : vector<2x48xf32> to vector<2x16xf32>
      %218 = arith.addf %216, %217 : vector<2x16xf32>
      %219 = arith.negf %218 : vector<2x16xf32>
      %220 = math.exp %219 : vector<2x16xf32>
      %cst_73 = arith.constant 1.000000e+00 : f32
      %221 = vector.broadcast %cst_73 : f32 to vector<2x16xf32>
      %222 = arith.addf %221, %220 : vector<2x16xf32>
      %223 = arith.divf %221, %222 : vector<2x16xf32>
      %224 = vector.extract_strided_slice %204 {offsets = [0, 32], sizes = [2, 16], strides = [1, 1]} : vector<2x48xf32> to vector<2x16xf32>
      %225 = vector.extract_strided_slice %207 {offsets = [0, 32], sizes = [2, 16], strides = [1, 1]} : vector<2x48xf32> to vector<2x16xf32>
      %226 = arith.mulf %215, %225 : vector<2x16xf32>
      %227 = arith.addf %224, %226 : vector<2x16xf32>
      %228 = math.tanh %227 : vector<2x16xf32>
      %cst_74 = arith.constant 1.000000e+00 : f32
      %229 = vector.broadcast %cst_74 : f32 to vector<2x16xf32>
      %230 = arith.subf %229, %223 : vector<2x16xf32>
      %231 = arith.mulf %230, %228 : vector<2x16xf32>
      %232 = arith.mulf %223, %196 : vector<2x16xf32>
      %233 = arith.addf %231, %232 : vector<2x16xf32>
      %c0_75 = arith.constant 0 : index
      %c2_76 = arith.constant 2 : index
      %c0_77 = arith.constant 0 : index
      %c0_78 = arith.constant 0 : index
      %234 = vector.load %arg6[%c0_75, %c2_76, %c0_77, %c0_78] : memref<1x8x2x16xf32, #tpu.memory_space<vmem>>, vector<1x1x2x16xf32>
      %235 = vector.shape_cast %234 : vector<1x1x2x16xf32> to vector<2x16xf32>
      %236 = vector.shape_cast %233 : vector<2x16xf32> to vector<1x1x2x16xf32>
      tpu.vector_store %arg6[%c0_75, %c2_76, %c0_77, %c0_78], %236 {strides = array<i32>} : memref<1x8x2x16xf32, #tpu.memory_space<vmem>>, vector<1x1x2x16xf32>,
      %c1 = arith.constant 1 : index
      %c0_79 = arith.constant 0 : index
      %c0_80 = arith.constant 0 : index
      %237 = vector.load %arg1[%c1, %c0_79, %c0_80] : memref<8x2x16xf32, #tpu.memory_space<vmem>>, vector<1x2x16xf32>
      %238 = vector.shape_cast %237 : vector<1x2x16xf32> to vector<2x16xf32>
      %cst_81 = arith.constant dense<0.000000e+00> : vector<2x48xf32>
      %239 = tpu.matmul %238, %1, %cst_81 {dimension_numbers = #tpu.dot_dimension_numbers<[1], [0], [0], [1], [0, 0, 1, 1], [], []>} : vector<2x16xf32>, vector<16x48xf32>, vector<2x48xf32> -> vector<2x48xf32>
      %240 = vector.broadcast %5 : vector<1x48xf32> to vector<2x48xf32>
      %241 = arith.addf %239, %240 : vector<2x48xf32>
      %cst_82 = arith.constant dense<0.000000e+00> : vector<2x48xf32>
      %242 = tpu.matmul %233, %3, %cst_82 {dimension_numbers = #tpu.dot_dimension_numbers<[1], [0], [0], [1], [0, 0, 1, 1], [], []>} : vector<2x16xf32>, vector<16x48xf32>, vector<2x48xf32> -> vector<2x48xf32>
      %243 = vector.broadcast %7 : vector<1x48xf32> to vector<2x48xf32>
      %244 = arith.addf %242, %243 : vector<2x48xf32>
      %245 = vector.extract_strided_slice %241 {offsets = [0, 0], sizes = [2, 16], strides = [1, 1]} : vector<2x48xf32> to vector<2x16xf32>
      %246 = vector.extract_strided_slice %244 {offsets = [0, 0], sizes = [2, 16], strides = [1, 1]} : vector<2x48xf32> to vector<2x16xf32>
      %247 = arith.addf %245, %246 : vector<2x16xf32>
      %248 = arith.negf %247 : vector<2x16xf32>
      %249 = math.exp %248 : vector<2x16xf32>
      %cst_83 = arith.constant 1.000000e+00 : f32
      %250 = vector.broadcast %cst_83 : f32 to vector<2x16xf32>
      %251 = arith.addf %250, %249 : vector<2x16xf32>
      %252 = arith.divf %250, %251 : vector<2x16xf32>
      %253 = vector.extract_strided_slice %241 {offsets = [0, 16], sizes = [2, 16], strides = [1, 1]} : vector<2x48xf32> to vector<2x16xf32>
      %254 = vector.extract_strided_slice %244 {offsets = [0, 16], sizes = [2, 16], strides = [1, 1]} : vector<2x48xf32> to vector<2x16xf32>
      %255 = arith.addf %253, %254 : vector<2x16xf32>
      %256 = arith.negf %255 : vector<2x16xf32>
      %257 = math.exp %256 : vector<2x16xf32>
      %cst_84 = arith.constant 1.000000e+00 : f32
      %258 = vector.broadcast %cst_84 : f32 to vector<2x16xf32>
      %259 = arith.addf %258, %257 : vector<2x16xf32>
      %260 = arith.divf %258, %259 : vector<2x16xf32>
      %261 = vector.extract_strided_slice %241 {offsets = [0, 32], sizes = [2, 16], strides = [1, 1]} : vector<2x48xf32> to vector<2x16xf32>
      %262 = vector.extract_strided_slice %244 {offsets = [0, 32], sizes = [2, 16], strides = [1, 1]} : vector<2x48xf32> to vector<2x16xf32>
      %263 = arith.mulf %252, %262 : vector<2x16xf32>
      %264 = arith.addf %261, %263 : vector<2x16xf32>
      %265 = math.tanh %264 : vector<2x16xf32>
      %cst_85 = arith.constant 1.000000e+00 : f32
      %266 = vector.broadcast %cst_85 : f32 to vector<2x16xf32>
      %267 = arith.subf %266, %260 : vector<2x16xf32>
      %268 = arith.mulf %267, %265 : vector<2x16xf32>
      %269 = arith.mulf %260, %233 : vector<2x16xf32>
      %270 = arith.addf %268, %269 : vector<2x16xf32>
      %c0_86 = arith.constant 0 : index
      %c1_87 = arith.constant 1 : index
      %c0_88 = arith.constant 0 : index
      %c0_89 = arith.constant 0 : index
      %271 = vector.load %arg6[%c0_86, %c1_87, %c0_88, %c0_89] : memref<1x8x2x16xf32, #tpu.memory_space<vmem>>, vector<1x1x2x16xf32>
      %272 = vector.shape_cast %271 : vector<1x1x2x16xf32> to vector<2x16xf32>
      %273 = vector.shape_cast %270 : vector<2x16xf32> to vector<1x1x2x16xf32>
      tpu.vector_store %arg6[%c0_86, %c1_87, %c0_88, %c0_89], %273 {strides = array<i32>} : memref<1x8x2x16xf32, #tpu.memory_space<vmem>>, vector<1x1x2x16xf32>,
      %c0_90 = arith.constant 0 : index
      %c0_91 = arith.constant 0 : index
      %c0_92 = arith.constant 0 : index
      %274 = vector.load %arg1[%c0_90, %c0_91, %c0_92] : memref<8x2x16xf32, #tpu.memory_space<vmem>>, vector<1x2x16xf32>
      %275 = vector.shape_cast %274 : vector<1x2x16xf32> to vector<2x16xf32>
      %cst_93 = arith.constant dense<0.000000e+00> : vector<2x48xf32>
      %276 = tpu.matmul %275, %1, %cst_93 {dimension_numbers = #tpu.dot_dimension_numbers<[1], [0], [0], [1], [0, 0, 1, 1], [], []>} : vector<2x16xf32>, vector<16x48xf32>, vector<2x48xf32> -> vector<2x48xf32>
      %277 = vector.broadcast %5 : vector<1x48xf32> to vector<2x48xf32>
      %278 = arith.addf %276, %277 : vector<2x48xf32>
      %cst_94 = arith.constant dense<0.000000e+00> : vector<2x48xf32>
      %279 = tpu.matmul %270, %3, %cst_94 {dimension_numbers = #tpu.dot_dimension_numbers<[1], [0], [0], [1], [0, 0, 1, 1], [], []>} : vector<2x16xf32>, vector<16x48xf32>, vector<2x48xf32> -> vector<2x48xf32>
      %280 = vector.broadcast %7 : vector<1x48xf32> to vector<2x48xf32>
      %281 = arith.addf %279, %280 : vector<2x48xf32>
      %282 = vector.extract_strided_slice %278 {offsets = [0, 0], sizes = [2, 16], strides = [1, 1]} : vector<2x48xf32> to vector<2x16xf32>
      %283 = vector.extract_strided_slice %281 {offsets = [0, 0], sizes = [2, 16], strides = [1, 1]} : vector<2x48xf32> to vector<2x16xf32>
      %284 = arith.addf %282, %283 : vector<2x16xf32>
      %285 = arith.negf %284 : vector<2x16xf32>
      %286 = math.exp %285 : vector<2x16xf32>
      %cst_95 = arith.constant 1.000000e+00 : f32
      %287 = vector.broadcast %cst_95 : f32 to vector<2x16xf32>
      %288 = arith.addf %287, %286 : vector<2x16xf32>
      %289 = arith.divf %287, %288 : vector<2x16xf32>
      %290 = vector.extract_strided_slice %278 {offsets = [0, 16], sizes = [2, 16], strides = [1, 1]} : vector<2x48xf32> to vector<2x16xf32>
      %291 = vector.extract_strided_slice %281 {offsets = [0, 16], sizes = [2, 16], strides = [1, 1]} : vector<2x48xf32> to vector<2x16xf32>
      %292 = arith.addf %290, %291 : vector<2x16xf32>
      %293 = arith.negf %292 : vector<2x16xf32>
      %294 = math.exp %293 : vector<2x16xf32>
      %cst_96 = arith.constant 1.000000e+00 : f32
      %295 = vector.broadcast %cst_96 : f32 to vector<2x16xf32>
      %296 = arith.addf %295, %294 : vector<2x16xf32>
      %297 = arith.divf %295, %296 : vector<2x16xf32>
      %298 = vector.extract_strided_slice %278 {offsets = [0, 32], sizes = [2, 16], strides = [1, 1]} : vector<2x48xf32> to vector<2x16xf32>
      %299 = vector.extract_strided_slice %281 {offsets = [0, 32], sizes = [2, 16], strides = [1, 1]} : vector<2x48xf32> to vector<2x16xf32>
      %300 = arith.mulf %289, %299 : vector<2x16xf32>
      %301 = arith.addf %298, %300 : vector<2x16xf32>
      %302 = math.tanh %301 : vector<2x16xf32>
      %cst_97 = arith.constant 1.000000e+00 : f32
      %303 = vector.broadcast %cst_97 : f32 to vector<2x16xf32>
      %304 = arith.subf %303, %297 : vector<2x16xf32>
      %305 = arith.mulf %304, %302 : vector<2x16xf32>
      %306 = arith.mulf %297, %270 : vector<2x16xf32>
      %307 = arith.addf %305, %306 : vector<2x16xf32>
      %c0_98 = arith.constant 0 : index
      %c0_99 = arith.constant 0 : index
      %c0_100 = arith.constant 0 : index
      %c0_101 = arith.constant 0 : index
      %308 = vector.load %arg6[%c0_98, %c0_99, %c0_100, %c0_101] : memref<1x8x2x16xf32, #tpu.memory_space<vmem>>, vector<1x1x2x16xf32>
      %309 = vector.shape_cast %308 : vector<1x1x2x16xf32> to vector<2x16xf32>
      %310 = vector.shape_cast %307 : vector<2x16xf32> to vector<1x1x2x16xf32>
      tpu.vector_store %arg6[%c0_98, %c0_99, %c0_100, %c0_101], %310 {strides = array<i32>} : memref<1x8x2x16xf32, #tpu.memory_space<vmem>>, vector<1x1x2x16xf32>,
    } else {
    }
    return
  }
  func.func @transform_0(%arg0: i32) -> (i32, i32, i32) {
    %c0_i32 = arith.constant 0 : i32
    %c0_i32_0 = arith.constant 0 : i32
    %c0_i32_1 = arith.constant 0 : i32
    %c0_i32_2 = arith.constant 0 : i32
    return %c0_i32, %c0_i32_0, %c0_i32_1 : i32, i32, i32
  }
  func.func @transform_1(%arg0: i32) -> (i32, i32, i32) {
    %c0_i32 = arith.constant 0 : i32
    %c0_i32_0 = arith.constant 0 : i32
    %c0_i32_1 = arith.constant 0 : i32
    return %arg0, %c0_i32, %c0_i32_0 : i32, i32, i32
  }
  func.func @transform_2(%arg0: i32) -> (i32, i32, i32) {
    %c0_i32 = arith.constant 0 : i32
    %c0_i32_0 = arith.constant 0 : i32
    %c0_i32_1 = arith.constant 0 : i32
    return %arg0, %c0_i32, %c0_i32_0 : i32, i32, i32
  }
  func.func @transform_3(%arg0: i32) -> (i32, i32, i32) {
    %c0_i32 = arith.constant 0 : i32
    %c0_i32_0 = arith.constant 0 : i32
    %c0_i32_1 = arith.constant 0 : i32
    return %arg0, %c0_i32, %c0_i32_0 : i32, i32, i32
  }
  func.func @transform_4(%arg0: i32) -> (i32, i32, i32) {
    %c0_i32 = arith.constant 0 : i32
    %c0_i32_0 = arith.constant 0 : i32
    %c0_i32_1 = arith.constant 0 : i32
    return %arg0, %c0_i32, %c0_i32_0 : i32, i32, i32
  }
  func.func @transform_5(%arg0: i32) -> (i32, i32, i32, i32) {
    %c0_i32 = arith.constant 0 : i32
    %c0_i32_0 = arith.constant 0 : i32
    %c0_i32_1 = arith.constant 0 : i32
    %c0_i32_2 = arith.constant 0 : i32
    return %arg0, %c0_i32, %c0_i32_0, %c0_i32_1 : i32, i32, i32, i32
  }
}

</mosaic_0001>

<bundles_post_ra>
// kernel: _forward_impl.2
= control target key start
LH: loop header
LB: loop body
LE: loop exit
PB: predicated region body
PF: predicated region fallthrough
CT: control target
= control target key end

     0   :  { %s3836_s18 = smov 0   ;;  %s4294_s0 = inlined_call_operand.vmem [shape: f32[8,2,16], index: 0, kind: input, shape index: {}]   ;;  %s4295_s1 = inlined_call_operand.vmem [shape: f32[2,16,48], index: 1, kind: input, shape index: {}]   ;;  %s4296_s2 = inlined_call_operand.vmem [shape: f32[2,16,48], index: 2, kind: input, shape index: {}]   ;;  %s4297_s3 = inlined_call_operand.vmem [shape: f32[2,1,48], index: 3, kind: input, shape index: {}]   ;;  %s4298_s4 = inlined_call_operand.vmem [shape: f32[2,1,48], index: 4, kind: input, shape index: {}]   ;;  %s4299_s5 = inlined_call_operand.vmem [shape: f32[2,8,2,16], index: 5, kind: output, shape index: {}]  }
   0x1 LB: > { %s3842_s19 = sadd.s32 4294967295, %s3794_s18   ;;  %p3266_p0 = scmp.ge.s32.totalorder %s3794_s18, 1  ;;  %s3794_s18 = sphi %s3836_s18, %s15_s18  }
   0x2   : > { %p213_p1 = scmp.lt.s32.totalorder %s3794_s18, 3 }
   0x4   : > { %p214_p2 = pnand %p3266_p0, %p213_p1 }
   0x5   : > { %p252_p3 = scmp.lt.s32.totalorder (!%p214_p2), %s3842_s19, 1  ;;  %p3273_p4 = scmp.ne.s32.totalorder (!%p214_p2), %s3842_s19, 0 }
   0x6   : > { %217 = sbr.rel (%p214_p2) target bundleno = 10874 (0x2a7a), region = 40 }
   0xb   : > { %s253_s20 = scalar_select %p252_p3, %s3842_s19, 1 }
   0xc   : > { %s3798_s14 = smov (!%p3273_p4), 96   ;;  %s3799_s15 = smov (!%p3273_p4), 32  }
   0xd   : > { %s3351_s21 = sshll.u32 %s253_s20, 4  ;;  %s264_s24 = scalar_lea.vmem %s4297_s3, %s253_s20 }
   0xe   : > { %s256_s27 = scalar_lea.vmem %s4295_s1, %s3351_s21  ;;  %s261_s30 = scalar_lea.vmem %s4296_s2, %s3351_s21  ;;  %v3857_v0 = vld [vmem:[%s264_s24] sm:$0x1] }
   0xf   : > { %s267_s8 = scalar_lea.vmem %s4298_s4, %s253_s20  ;;  %s3865_s11 = scalar_lea.vmem %s4299_s5, %s3351_s21  ;;  %v3867_v1 = vld [vmem:[%s256_s27] sm:$0xff]  ;;  %v3869_v2 = vld [vmem:[%s256_s27 + $0x8] sm:$0xff] }
  0x10   : > { %v3871_v3 = vld [vmem:[%s261_s30] sm:$0xff]  ;;  %v3873_v4 = vld [vmem:[%s261_s30 + $0x8] sm:$0xff]  ;;  %282 = sbr.rel (%p3273_p4) target bundleno = 5444 (0x1544), region = 44  ;;  %s3800_s16 = smov (!%p3273_p4), 112  }
  0x11   : > { %v3875_v5 = vld [vmem:[%s267_s8] sm:$0x1] }
  0x15   : > { %v3796_v6 = vmov 0.0   ;;  %v283_v7 = vld [vmem:[%s4294_s0] sm:$0x3]  ;;  %vm290_vm0 = vcmask 130048   ;;  %vm3797_vm1 = vmmov 0   ;;  %v285_v8 = vlaneseq }
  0x16   : > { %3450 = vmatprep.subr.mxu0 %v3796_v6  ;;  %3457 = vmatprep.subr.mxu1 %v3796_v6  ;;  %v3276_v29 = vld [vmem:[%s4294_s0 + $0x2] sm:$0x3]  ;;  %vm473_vm2 = vcmask 123904   ;;  %v3281_v52 = vld [vmem:[%s4294_s0 + $0x4] sm:$0x3] }
  0x17   : > { %3451 = vmatpush3.msra.mxu0 %v3869_v2  ;;  %3458 = vmatpush3.msra.mxu1 %v3873_v4  ;;  %v286_v9 = vshrl.u32 %v285_v8, 7 }
  0x18   : > { %3452 = vmatprep.subr.mxu0 %v3796_v6  ;;  %3459 = vmatprep.subr.mxu1 %v3796_v6 }
  0x19   : > { %3453 = vmatpush3.msra.mxu0 %v3867_v1  ;;  %3454 = vmatprep.mubr.msk.f32.mxu0 %vm3797_vm1, %v3796_v6  ;;  %v287_v10 = vsub.s32 0, %v286_v9 }
  0x1a   : > { %3460 = vmatpush3.msra.mxu1 %v3871_v3  ;;  %3461 = vmatprep.mubr.msk.f32.mxu1 %vm3797_vm1, %v3796_v6 }
  0x1b   : > { %3455 = vmatmul.mubr.msk.f32.vlgmr.msra.gmra.mxu0 %vm290_vm0, %v283_v7  ;;  %3462 = vmatmul.mubr.f32.vlgmr.msra.gmra.mxu1 %v3796_v6  ;;  %v3910_v11 = vrot.slane %v3875_v5, %v287_v10  ;;  %v3915_v17 = vrot.slane %v3857_v0, %v287_v10 }
  0x1c   : > { %3471 = vmatprep.subr.mxu1 %v3796_v6  ;;  %3464 = vmatprep.subr.mxu0 %v3796_v6 }
  0x1d   : > { %3472 = vmatpush3.msra.mxu1 %v3873_v4  ;;  %3465 = vmatpush3.msra.mxu0 %v3869_v2 }
  0x1e   : > { %3473 = vmatprep.subr.mxu1 %v3796_v6  ;;  %3466 = vmatprep.subr.mxu0 %v3796_v6 }
  0x1f   : > { %3474 = vmatpush3.msra.mxu1 %v3871_v3  ;;  %3467 = vmatpush3.msra.mxu0 %v3867_v1 }
  0x20   : > { %3468 = vmatprep.mubr.msk.f32.mxu0 %vm3797_vm1, %v3796_v6  ;;  %3475 = vmatprep.mubr.msk.f32.mxu1 %vm3797_vm1, %v3796_v6 }
  0x21   : > { %3485 = vmatprep.subr.mxu1 %v3796_v6  ;;  %3478 = vmatprep.subr.mxu0 %v3796_v6 }
  0x22   : > { %3469 = vmatmul.mubr.msk.f32.vlgmr.msra.gmra.mxu0 %vm290_vm0, %v3276_v29 }
  0x23   : > { %3479 = vmatpush3.msra.mxu0 %v3869_v2  ;;  %3482 = vmatprep.mubr.msk.f32.mxu0 %vm3797_vm1, %v3796_v6 }
  0x24   : > { %3480 = vmatprep.subr.mxu0 %v3796_v6 }
  0x25   : > { %3481 = vmatpush3.msra.mxu0 %v3867_v1 }
  0x26   : > { %3492 = vmatprep.subr.mxu0 %v3796_v6  ;;  %3483 = vmatmul.mubr.msk.f32.vlgmr.msra.gmra.mxu0 %vm290_vm0, %v3281_v52 }
  0x27   : > { %3493 = vmatpush3.msra.mxu0 %v3869_v2  ;;  %3496 = vmatprep.mubr.msk.f32.mxu0 %vm3797_vm1, %v3796_v6 }
  0x28   : > { %3494 = vmatprep.subr.mxu0 %v3796_v6 }
  0x29   : > { %3495 = vmatpush3.msra.mxu0 %v3867_v1 }
  0x2a   : > { %3506 = vmatprep.subr.mxu0 %v3796_v6 }
  0xdb   : > { %v360_v12 = vpop.f32.mrf.mxu0  ;;  %v439_v13 = vpop.f32.mrf.mxu1 }
  0xdc   : > { %v440_v14 = vadd.f32 %v439_v13, %v3910_v11  ;;  %v361_v18 = vadd.f32 %v360_v12, %v3915_v17 }
  0xdd   : > { %v3463_v15 = vpop.f32.mrf.mxu1  ;;  %v3456_v16 = vpop.f32.mrf.mxu0 }
  0xde   : > { %451 = vrot.lane.b32.xlu0 %v440_v14, %s3798_s14  ;;  %v443_v19 = vadd.f32 %v440_v14, %v361_v18 }
  0xe0   : > { %v3275_v20 = vmul.f32 -1.442695, %v443_v19 }
  0xe2   : > { %3692 = vpow2.f32 %v3275_v20  ;;  %v546_v36 = vpop.f32.mrf.mxu0  ;;  %v3286_v20 = vld [vmem:[%s4294_s0 + $0x6] sm:$0x3] }
  0xe3   : > { %v547_v41 = vadd.f32 %v546_v36, %v3915_v17  ;;  %3497 = vmatmul.mubr.msk.f32.vlgmr.msra.gmra.mxu0 %vm290_vm0, %v3286_v20 }
  0xe4   : > { %v3470_v37 = vpop.f32.mrf.mxu0  ;;  %3507 = vmatpush3.msra.mxu0 %v3869_v2  ;;  %3510 = vmatprep.mubr.msk.f32.mxu0 %vm3797_vm1, %v3796_v6 }
  0xe5   : > { %3508 = vmatprep.subr.mxu0 %v3796_v6 }
  0xe6   : > { %v725_v59 = vpop.f32.mrf.mxu0  ;;  %3509 = vmatpush3.msra.mxu0 %v3867_v1 }
  0xe7   : > { %v726_v7 = vadd.f32 %v725_v59, %v3915_v17  ;;  %3520 = vmatprep.subr.mxu0 %v3796_v6 }
  0xe8   : > { %v3484_v60 = vpop.f32.mrf.mxu0 }
  0xef   : > { %v3693_v21 = vpop.eup %3692 }
  0xf0   : > { %v447_v22 = vadd.f32 1.0, %v3693_v21 }
  0xf2   : > { %3694 = vrcp.f32 %v447_v22 }
  0xff   : > { %v3695_v23 = vpop.eup %3694 }
 0x100   : > { %v461_v30 = vsub.f32 1.0, %v3695_v23  ;;  %v467_v32 = vmul.f32 0.0, %v3695_v23 }
 0x150   : > { %v452_v24 = vpop.permute.xlu0 %451 }
 0x151   : > { %v454_v25 = vmul.f32 %v3695_v23, %v452_v24 }
 0x153   : > { %456 = vrot.lane.b32.xlu0 %v454_v25, %s3799_s15 }
 0x1c5   : > { %v457_v26 = vpop.permute.xlu0 %456 }
 0x1c6   : > { %v459_v27 = vadd.f32 %v457_v26, %v361_v18 }
 0x1c8   : > { %3696 = vtanh.f32 %v459_v27  ;;  %v904_v27 = vpop.f32.mrf.mxu0 }
 0x1d5   : > { %v3697_v28 = vpop.eup %3696 }
 0x1d6   : > { %463 = vrot.lane.b32.xlu1 %v3697_v28, %s3800_s16  ;;  %v3498_v28 = vpop.f32.mrf.mxu0 }
 0x248   : > { %v464_v31 = vpop.permute.xlu1 %463 }
 0x249   : > { %v466_v33 = vmul.f32 %v464_v31, %v461_v30 }
 0x24b   : > { %v468_v34 = vadd.f32 %v467_v32, %v466_v33  ;;  %v905_v32 = vadd.f32 %v904_v27, %v3915_v17 }
 0x24d   : > { %470 = vrot.lane.b32.xlu1 %v468_v34, %s3800_s16 }
 0x2bf   : > { %v471_v35 = vpop.permute.xlu1 %470 }
 0x2c0   : > { %474 = vst.msk [vmem:[%s3865_s11] sm:$0x3] %vm473_vm2, %v471_v35  ;;  %3476 = vmatmul.mubr.msk.f32.vlgmr.msra.gmra.mxu1 %vm290_vm0, %v471_v35 }
 0x2c1   : > { %3486 = vmatpush3.msra.mxu1 %v3873_v4  ;;  %3489 = vmatprep.mubr.msk.f32.mxu1 %vm3797_vm1, %v3796_v6 }
 0x2c2   : > { %3487 = vmatprep.subr.mxu1 %v3796_v6 }
 0x2c3   : > { %3488 = vmatpush3.msra.mxu1 %v3871_v3 }
 0x2c4   : > { %3499 = vmatprep.subr.mxu1 %v3796_v6 }
 0x380   : > { %v618_v38 = vpop.f32.mrf.mxu1 }
 0x381   : > { %v619_v39 = vadd.f32 %v618_v38, %v3910_v11 }
 0x382   : > { %v3477_v40 = vpop.f32.mrf.mxu1 }
 0x383   : > { %630 = vrot.lane.b32.xlu0 %v619_v39, %s3798_s14  ;;  %v622_v42 = vadd.f32 %v619_v39, %v547_v41 }
 0x385   : > { %v3279_v43 = vmul.f32 -1.442695, %v622_v42 }
 0x387   : > { %3698 = vpow2.f32 %v3279_v43  ;;  %v3291_v43 = vld [vmem:[%s4294_s0 + $0x8] sm:$0x3] }
 0x388   : > { %3511 = vmatmul.mubr.msk.f32.vlgmr.msra.gmra.mxu0 %vm290_vm0, %v3291_v43 }
 0x389   : > { %3521 = vmatpush3.msra.mxu0 %v3869_v2  ;;  %3524 = vmatprep.mubr.msk.f32.mxu0 %vm3797_vm1, %v3796_v6 }
 0x38a   : > { %3522 = vmatprep.subr.mxu0 %v3796_v6 }
 0x38b   : > { %3523 = vmatpush3.msra.mxu0 %v3867_v1 }
 0x38c   : > { %3534 = vmatprep.subr.mxu0 %v3796_v6 }
 0x394   : > { %v3699_v44 = vpop.eup %3698 }
 0x395   : > { %v626_v45 = vadd.f32 1.0, %v3699_v44 }
 0x397   : > { %3700 = vrcp.f32 %v626_v45 }
 0x3a4   : > { %v3701_v46 = vpop.eup %3700 }
 0x3a5   : > { %v640_v53 = vsub.f32 1.0, %v3701_v46  ;;  %v646_v55 = vmul.f32 %v3701_v46, %v468_v34 }
 0x3f5   : > { %v631_v47 = vpop.permute.xlu0 %630 }
 0x3f6   : > { %v633_v48 = vmul.f32 %v3701_v46, %v631_v47 }
 0x3f8   : > { %635 = vrot.lane.b32.xlu1 %v633_v48, %s3799_s15 }
 0x46a   : > { %v636_v49 = vpop.permute.xlu1 %635 }
 0x46b   : > { %v638_v50 = vadd.f32 %v636_v49, %v547_v41 }
 0x46d   : > { %3702 = vtanh.f32 %v638_v50  ;;  %v1083_v50 = vpop.f32.mrf.mxu0 }
 0x47a   : > { %v3703_v51 = vpop.eup %3702 }
 0x47b   : > { %642 = vrot.lane.b32.xlu0 %v3703_v51, %s3800_s16  ;;  %v3512_v51 = vpop.f32.mrf.mxu0 }
 0x4ed   : > { %v643_v54 = vpop.permute.xlu0 %642 }
 0x4ee   : > { %v645_v56 = vmul.f32 %v643_v54, %v640_v53 }
 0x4f0   : > { %v647_v57 = vadd.f32 %v646_v55, %v645_v56  ;;  %v1084_v55 = vadd.f32 %v1083_v50, %v3915_v17 }
 0x4f2   : > { %649 = vrot.lane.b32.xlu1 %v647_v57, %s3800_s16 }
 0x564   : > { %v650_v58 = vpop.permute.xlu1 %649 }
 0x565   : > { %3280 = vst.msk [vmem:[%s3865_s11 + $0x2] sm:$0x3] %vm473_vm2, %v650_v58  ;;  %3490 = vmatmul.mubr.msk.f32.vlgmr.msra.gmra.mxu1 %vm290_vm0, %v650_v58 }
 0x566   : > { %3500 = vmatpush3.msra.mxu1 %v3873_v4  ;;  %3503 = vmatprep.mubr.msk.f32.mxu1 %vm3797_vm1, %v3796_v6 }
 0x567   : > { %3501 = vmatprep.subr.mxu1 %v3796_v6 }
 0x568   : > { %3502 = vmatpush3.msra.mxu1 %v3871_v3 }
 0x569   : > { %3513 = vmatprep.subr.mxu1 %v3796_v6 }
 0x625   : > { %v797_v61 = vpop.f32.mrf.mxu1 }
 0x626   : > { %v798_v62 = vadd.f32 %v797_v61, %v3910_v11 }
 0x627   : > { %v3491_v63 = vpop.f32.mrf.mxu1 }
 0x628   : > { %809 = vrot.lane.b32.xlu0 %v798_v62, %s3798_s14  ;;  %v801_v8 = vadd.f32 %v798_v62, %v726_v7 }
 0x62a   : > { %v3284_v9 = vmul.f32 -1.442695, %v801_v8 }
 0x62c   : > { %3704 = vpow2.f32 %v3284_v9  ;;  %v3296_v9 = vld [vmem:[%s4294_s0 + $0xa] sm:$0x3] }
 0x62d   : > { %3525 = vmatmul.mubr.msk.f32.vlgmr.msra.gmra.mxu0 %vm290_vm0, %v3296_v9 }
 0x62e   : > { %3535 = vmatpush3.msra.mxu0 %v3869_v2  ;;  %3538 = vmatprep.mubr.msk.f32.mxu0 %vm3797_vm1, %v3796_v6 }
 0x62f   : > { %3536 = vmatprep.subr.mxu0 %v3796_v6 }
 0x630   : > { %3537 = vmatpush3.msra.mxu0 %v3867_v1 }
 0x631   : > { %3548 = vmatprep.subr.mxu0 %v3796_v6 }
 0x639   : > { %v3705_v10 = vpop.eup %3704 }
 0x63a   : > { %v805_v12 = vadd.f32 1.0, %v3705_v10 }
 0x63c   : > { %3706 = vrcp.f32 %v805_v12 }
 0x649   : > { %v3707_v13 = vpop.eup %3706 }
 0x64a   : > { %v819_v21 = vsub.f32 1.0, %v3707_v13  ;;  %v825_v23 = vmul.f32 %v3707_v13, %v647_v57 }
 0x69a   : > { %v810_v14 = vpop.permute.xlu0 %809 }
 0x69b   : > { %v812_v15 = vmul.f32 %v3707_v13, %v810_v14 }
 0x69d   : > { %814 = vrot.lane.b32.xlu1 %v812_v15, %s3799_s15 }
 0x70f   : > { %v815_v16 = vpop.permute.xlu1 %814 }
 0x710   : > { %v817_v18 = vadd.f32 %v815_v16, %v726_v7 }
 0x712   : > { %3708 = vtanh.f32 %v817_v18  ;;  %v1262_v18 = vpop.f32.mrf.mxu0 }
 0x71f   : > { %v3709_v19 = vpop.eup %3708 }
 0x720   : > { %821 = vrot.lane.b32.xlu0 %v3709_v19, %s3800_s16  ;;  %v3526_v19 = vpop.f32.mrf.mxu0 }
 0x792   : > { %v822_v22 = vpop.permute.xlu0 %821 }
 0x793   : > { %v824_v24 = vmul.f32 %v822_v22, %v819_v21 }
 0x795   : > { %v826_v25 = vadd.f32 %v825_v23, %v824_v24  ;;  %v1263_v23 = vadd.f32 %v1262_v18, %v3915_v17 }
 0x797   : > { %828 = vrot.lane.b32.xlu1 %v826_v25, %s3800_s16 }
 0x809   : > { %v829_v26 = vpop.permute.xlu1 %828 }
 0x80a   : > { %3285 = vst.msk [vmem:[%s3865_s11 + $0x4] sm:$0x3] %vm473_vm2, %v829_v26  ;;  %3504 = vmatmul.mubr.msk.f32.vlgmr.msra.gmra.mxu1 %vm290_vm0, %v829_v26 }
 0x80b   : > { %3514 = vmatpush3.msra.mxu1 %v3873_v4  ;;  %3517 = vmatprep.mubr.msk.f32.mxu1 %vm3797_vm1, %v3796_v6 }
 0x80c   : > { %3515 = vmatprep.subr.mxu1 %v3796_v6 }
 0x80d   : > { %3516 = vmatpush3.msra.mxu1 %v3871_v3 }
 0x80e   : > { %3527 = vmatprep.subr.mxu1 %v3796_v6 }
 0x8ca   : > { %v976_v29 = vpop.f32.mrf.mxu1 }
 0x8cb   : > { %v977_v30 = vadd.f32 %v976_v29, %v3910_v11 }
 0x8cc   : > { %v3505_v31 = vpop.f32.mrf.mxu1 }
 0x8cd   : > { %988 = vrot.lane.b32.xlu0 %v977_v30, %s3798_s14  ;;  %v980_v33 = vadd.f32 %v977_v30, %v905_v32 }
 0x8cf   : > { %v3289_v34 = vmul.f32 -1.442695, %v980_v33 }
 0x8d1   : > { %3710 = vpow2.f32 %v3289_v34  ;;  %v3301_v34 = vld [vmem:[%s4294_s0 + $0xc] sm:$0x3] }
 0x8d2   : > { %3539 = vmatmul.mubr.msk.f32.vlgmr.msra.gmra.mxu0 %vm290_vm0, %v3301_v34 }
 0x8d3   : > { %3549 = vmatpush3.msra.mxu0 %v3869_v2  ;;  %3552 = vmatprep.mubr.msk.f32.mxu0 %vm3797_vm1, %v3796_v6 }
 0x8d4   : > { %3550 = vmatprep.subr.mxu0 %v3796_v6 }
 0x8d5   : > { %3551 = vmatpush3.msra.mxu0 %v3867_v1 }
 0x8de   : > { %v3711_v35 = vpop.eup %3710 }
 0x8df   : > { %v984_v36 = vadd.f32 1.0, %v3711_v35 }
 0x8e1   : > { %3712 = vrcp.f32 %v984_v36 }
 0x8ee   : > { %v3713_v37 = vpop.eup %3712 }
 0x8ef   : > { %v998_v44 = vsub.f32 1.0, %v3713_v37  ;;  %v1004_v46 = vmul.f32 %v3713_v37, %v826_v25 }
 0x93f   : > { %v989_v38 = vpop.permute.xlu0 %988 }
 0x940   : > { %v991_v39 = vmul.f32 %v3713_v37, %v989_v38 }
 0x942   : > { %993 = vrot.lane.b32.xlu1 %v991_v39, %s3799_s15 }
 0x9b4   : > { %v994_v40 = vpop.permute.xlu1 %993 }
 0x9b5   : > { %v996_v41 = vadd.f32 %v994_v40, %v905_v32 }
 0x9b7   : > { %3714 = vtanh.f32 %v996_v41  ;;  %v1441_v41 = vpop.f32.mrf.mxu0 }
 0x9c4   : > { %v3715_v42 = vpop.eup %3714 }
 0x9c5   : > { %1000 = vrot.lane.b32.xlu0 %v3715_v42, %s3800_s16  ;;  %v3540_v42 = vpop.f32.mrf.mxu0 }
 0xa37   : > { %v1001_v45 = vpop.permute.xlu0 %1000 }
 0xa38   : > { %v1003_v47 = vmul.f32 %v1001_v45, %v998_v44 }
 0xa3a   : > { %v1005_v48 = vadd.f32 %v1004_v46, %v1003_v47  ;;  %v1442_v46 = vadd.f32 %v1441_v41, %v3915_v17 }
 0xa3c   : > { %1007 = vrot.lane.b32.xlu1 %v1005_v48, %s3800_s16 }
 0xaae   : > { %v1008_v49 = vpop.permute.xlu1 %1007 }
 0xaaf   : > { %3290 = vst.msk [vmem:[%s3865_s11 + $0x6] sm:$0x3] %vm473_vm2, %v1008_v49  ;;  %3518 = vmatmul.mubr.msk.f32.vlgmr.msra.gmra.mxu1 %vm290_vm0, %v1008_v49 }
 0xab0   : > { %3528 = vmatpush3.msra.mxu1 %v3873_v4  ;;  %3531 = vmatprep.mubr.msk.f32.mxu1 %vm3797_vm1, %v3796_v6 }
 0xab1   : > { %3529 = vmatprep.subr.mxu1 %v3796_v6 }
 0xab2   : > { %3530 = vmatpush3.msra.mxu1 %v3871_v3 }
 0xab3   : > { %3541 = vmatprep.subr.mxu1 %v3796_v6 }
 0xb6f   : > { %v1155_v52 = vpop.f32.mrf.mxu1 }
 0xb70   : > { %v1156_v53 = vadd.f32 %v1155_v52, %v3910_v11 }
 0xb71   : > { %v3519_v54 = vpop.f32.mrf.mxu1 }
 0xb72   : > { %1167 = vrot.lane.b32.xlu0 %v1156_v53, %s3798_s14  ;;  %v1159_v56 = vadd.f32 %v1156_v53, %v1084_v55 }
 0xb74   : > { %v3294_v57 = vmul.f32 -1.442695, %v1159_v56  ;;  %v3306_v56 = vld [vmem:[%s4294_s0 + $0xe] sm:$0x3] }
 0xb75   : > { %3553 = vmatmul.mubr.msk.f32.vlgmr.msra.gmra.mxu0 %vm290_vm0, %v3306_v56 }
 0xb76   : > { %3716 = vpow2.f32 %v3294_v57 }
 0xb83   : > { %v3717_v58 = vpop.eup %3716 }
 0xb84   : > { %v1163_v59 = vadd.f32 1.0, %v3717_v58 }
 0xb86   : > { %3718 = vrcp.f32 %v1163_v59 }
 0xb93   : > { %v3719_v60 = vpop.eup %3718 }
 0xb94   : > { %v1177_v10 = vsub.f32 1.0, %v3719_v60  ;;  %v1183_v13 = vmul.f32 %v3719_v60, %v1005_v48 }
 0xbe4   : > { %v1168_v61 = vpop.permute.xlu0 %1167 }
 0xbe5   : > { %v1170_v62 = vmul.f32 %v3719_v60, %v1168_v61 }
 0xbe7   : > { %1172 = vrot.lane.b32.xlu1 %v1170_v62, %s3799_s15 }
 0xc59   : > { %v1173_v63 = vpop.permute.xlu1 %1172 }
 0xc5a   : > { %v1175_v7 = vadd.f32 %v1173_v63, %v1084_v55  ;;  %v1620_v63 = vpop.f32.mrf.mxu0 }
 0xc5c   : > { %3720 = vtanh.f32 %v1175_v7  ;;  %v3554_v7 = vpop.f32.mrf.mxu0 }
 0xc69   : > { %v3721_v8 = vpop.eup %3720 }
 0xc6a   : > { %1179 = vrot.lane.b32.xlu0 %v3721_v8, %s3800_s16 }
 0xcdc   : > { %v1180_v12 = vpop.permute.xlu0 %1179 }
 0xcdd   : > { %v1182_v14 = vmul.f32 %v1180_v12, %v1177_v10  ;;  %v1621_v12 = vadd.f32 %v1620_v63, %v3915_v17 }
 0xcdf   : > { %v1184_v15 = vadd.f32 %v1183_v13, %v1182_v14 }
 0xce1   : > { %1186 = vrot.lane.b32.xlu1 %v1184_v15, %s3800_s16 }
 0xd53   : > { %v1187_v16 = vpop.permute.xlu1 %1186 }
 0xd54   : > { %3295 = vst.msk [vmem:[%s3865_s11 + $0x8] sm:$0x3] %vm473_vm2, %v1187_v16  ;;  %3532 = vmatmul.mubr.msk.f32.vlgmr.msra.gmra.mxu1 %vm290_vm0, %v1187_v16 }
 0xd55   : > { %3542 = vmatpush3.msra.mxu1 %v3873_v4  ;;  %3545 = vmatprep.mubr.msk.f32.mxu1 %vm3797_vm1, %v3796_v6 }
 0xd56   : > { %3543 = vmatprep.subr.mxu1 %v3796_v6 }
 0xd57   : > { %3544 = vmatpush3.msra.mxu1 %v3871_v3 }
 0xd58   : > { %3555 = vmatprep.subr.mxu1 %v3796_v6 }
 0xe14   : > { %v1334_v20 = vpop.f32.mrf.mxu1 }
 0xe15   : > { %v1335_v21 = vadd.f32 %v1334_v20, %v3910_v11 }
 0xe16   : > { %v3533_v22 = vpop.f32.mrf.mxu1 }
 0xe17   : > { %1346 = vrot.lane.b32.xlu0 %v1335_v21, %s3798_s14  ;;  %v1338_v24 = vadd.f32 %v1335_v21, %v1263_v23 }
 0xe19   : > { %v3299_v25 = vmul.f32 -1.442695, %v1338_v24 }
 0xe1b   : > { %3722 = vpow2.f32 %v3299_v25 }
 0xe28   : > { %v3723_v26 = vpop.eup %3722 }
 0xe29   : > { %v1342_v27 = vadd.f32 1.0, %v3723_v26 }
 0xe2b   : > { %3724 = vrcp.f32 %v1342_v27 }
 0xe38   : > { %v3725_v28 = vpop.eup %3724 }
 0xe39   : > { %v1356_v35 = vsub.f32 1.0, %v3725_v28  ;;  %v1362_v37 = vmul.f32 %v3725_v28, %v1184_v15 }
 0xe89   : > { %v1347_v29 = vpop.permute.xlu0 %1346 }
 0xe8a   : > { %v1349_v30 = vmul.f32 %v3725_v28, %v1347_v29 }
 0xe8c   : > { %1351 = vrot.lane.b32.xlu1 %v1349_v30, %s3799_s15 }
 0xefe   : > { %v1352_v31 = vpop.permute.xlu1 %1351 }
 0xeff   : > { %v1354_v32 = vadd.f32 %v1352_v31, %v1263_v23 }
 0xf01   : > { %3726 = vtanh.f32 %v1354_v32 }
 0xf0e   : > { %v3727_v33 = vpop.eup %3726 }
 0xf0f   : > { %1358 = vrot.lane.b32.xlu0 %v3727_v33, %s3800_s16 }
 0xf81   : > { %v1359_v36 = vpop.permute.xlu0 %1358 }
 0xf82   : > { %v1361_v38 = vmul.f32 %v1359_v36, %v1356_v35 }
 0xf84   : > { %v1363_v39 = vadd.f32 %v1362_v37, %v1361_v38 }
 0xf86   : > { %1365 = vrot.lane.b32.xlu1 %v1363_v39, %s3800_s16 }
 0xff8   : > { %v1366_v40 = vpop.permute.xlu1 %1365 }
 0xff9   : > { %3300 = vst.msk [vmem:[%s3865_s11 + $0xa] sm:$0x3] %vm473_vm2, %v1366_v40  ;;  %3546 = vmatmul.mubr.msk.f32.vlgmr.msra.gmra.mxu1 %vm290_vm0, %v1366_v40 }
 0xffa   : > { %3556 = vmatpush3.msra.mxu1 %v3873_v4  ;;  %3559 = vmatprep.mubr.msk.f32.mxu1 %vm3797_vm1, %v3796_v6 }
 0xffb   : > { %3557 = vmatprep.subr.mxu1 %v3796_v6 }
 0xffc   : > { %3558 = vmatpush3.msra.mxu1 %v3871_v3 }
0x10b9   : > { %v1513_v43 = vpop.f32.mrf.mxu1 }
0x10ba   : > { %v1514_v44 = vadd.f32 %v1513_v43, %v3910_v11 }
0x10bb   : > { %v3547_v45 = vpop.f32.mrf.mxu1 }
0x10bc   : > { %1525 = vrot.lane.b32.xlu0 %v1514_v44, %s3798_s14  ;;  %v1517_v47 = vadd.f32 %v1514_v44, %v1442_v46 }
0x10be   : > { %v3304_v48 = vmul.f32 -1.442695, %v1517_v47 }
0x10c0   : > { %3728 = vpow2.f32 %v3304_v48 }
0x10cd   : > { %v3729_v49 = vpop.eup %3728 }
0x10ce   : > { %v1521_v50 = vadd.f32 1.0, %v3729_v49 }
0x10d0   : > { %3730 = vrcp.f32 %v1521_v50 }
0x10dd   : > { %v3731_v51 = vpop.eup %3730 }
0x10de   : > { %v1535_v57 = vsub.f32 1.0, %v3731_v51  ;;  %v1541_v59 = vmul.f32 %v3731_v51, %v1363_v39 }
0x112e   : > { %v1526_v6 = vpop.permute.xlu0 %1525 }
0x112f   : > { %v1528_v52 = vmul.f32 %v3731_v51, %v1526_v6 }
0x1131   : > { %1530 = vrot.lane.b32.xlu1 %v1528_v52, %s3799_s15 }
0x11a3   : > { %v1531_v53 = vpop.permute.xlu1 %1530 }
0x11a4   : > { %v1533_v54 = vadd.f32 %v1531_v53, %v1442_v46 }
0x11a6   : > { %3732 = vtanh.f32 %v1533_v54 }
0x11b3   : > { %v3733_v55 = vpop.eup %3732 }
0x11b4   : > { %1537 = vrot.lane.b32.xlu0 %v3733_v55, %s3800_s16 }
0x1226   : > { %v1538_v58 = vpop.permute.xlu0 %1537 }
0x1227   : > { %v1540_v60 = vmul.f32 %v1538_v58, %v1535_v57 }
0x1229   : > { %v1542_v61 = vadd.f32 %v1541_v59, %v1540_v60 }
0x122b   : > { %1544 = vrot.lane.b32.xlu1 %v1542_v61, %s3800_s16 }
0x129d   : > { %v1545_v62 = vpop.permute.xlu1 %1544 }
0x129e   : > { %3305 = vst.msk [vmem:[%s3865_s11 + $0xc] sm:$0x3] %vm473_vm2, %v1545_v62  ;;  %3560 = vmatmul.mubr.msk.f32.vlgmr.msra.gmra.mxu1 %vm290_vm0, %v1545_v62 }
0x135e   : > { %v1692_v8 = vpop.f32.mrf.mxu1 }
0x135f   : > { %v1693_v9 = vadd.f32 %v1692_v8, %v3910_v11 }
0x1360   : > { %v3561_v10 = vpop.f32.mrf.mxu1 }
0x1361   : > { %1704 = vrot.lane.b32.xlu0 %v1693_v9, %s3798_s14  ;;  %v1696_v13 = vadd.f32 %v1693_v9, %v1621_v12 }
0x1363   : > { %v3309_v14 = vmul.f32 -1.442695, %v1696_v13 }
0x1365   : > { %3734 = vpow2.f32 %v3309_v14 }
0x1372   : > { %v3735_v15 = vpop.eup %3734 }
0x1373   : > { %v1700_v16 = vadd.f32 1.0, %v3735_v15 }
0x1375   : > { %3736 = vrcp.f32 %v1700_v16 }
0x1382   : > { %v3737_v18 = vpop.eup %3736 }
0x1383   : > { %v1714_v23 = vsub.f32 1.0, %v3737_v18  ;;  %v1720_v24 = vmul.f32 %v3737_v18, %v1542_v61 }
0x13d3   : > { %v1705_v19 = vpop.permute.xlu0 %1704 }
0x13d4   : > { %v1707_v20 = vmul.f32 %v3737_v18, %v1705_v19 }
0x13d6   : > { %1709 = vrot.lane.b32.xlu1 %v1707_v20, %s3799_s15 }
0x1448   : > { %v1710_v21 = vpop.permute.xlu1 %1709 }
0x1449   : > { %v1712_v22 = vadd.f32 %v1710_v21, %v1621_v12 }
0x144b   : > { %3738 = vtanh.f32 %v1712_v22 }
0x1458   : > { %v3739_v11 = vpop.eup %3738 }
0x1459   : > { %1716 = vrot.lane.b32.xlu0 %v3739_v11, %s3800_s16 }
0x14cb   : > { %v1717_v17 = vpop.permute.xlu0 %1716 }
0x14cc   : > { %v1719_v25 = vmul.f32 %v1717_v17, %v1714_v23 }
0x14ce   : > { %v1721_v26 = vadd.f32 %v1720_v24, %v1719_v25 }
0x14d0   : > { %1723 = vrot.lane.b32.xlu1 %v1721_v26, %s3800_s16 }
0x1542   : > { %v1724_v27 = vpop.permute.xlu1 %1723 }
0x1543   : > { %3310 = vst.msk [vmem:[%s3865_s11 + $0xe] sm:$0x3] %vm473_vm2, %v1724_v27 }
0x1544 PF: > { %p3311_p5 = scmp.ne.s32.totalorder %s3842_s19, 1 }
0x1545   : > { %s3803_s19 = smov (!%p3311_p5), 96   ;;  %s3804_s10 = smov (!%p3311_p5), 32  }
0x1546   : > { %1731 = sbr.rel (%p3311_p5) target bundleno = 10874 (0x2a7a), region = 48  ;;  %s3805_s12 = smov (!%p3311_p5), 112  }
0x154b   : > { %v3801_v28 = vmov 0.0   ;;  %v3312_v29 = vld [vmem:[%s4294_s0 + $0xe] sm:$0x3]  ;;  %vm1740_vm3 = vcmask 130048   ;;  %vm3802_vm4 = vmmov 0   ;;  %v1735_v30 = vlaneseq }
0x154c   : > { %3562 = vmatprep.subr.mxu0 %v3801_v28  ;;  %3569 = vmatprep.subr.mxu1 %v3801_v28  ;;  %vm1924_vm5 = vcmask 123904   ;;  %v3321_v15 = vld [vmem:[%s4294_s0 + $0xa] sm:$0x3] }
0x154d   : > { %3563 = vmatpush3.msra.mxu0 %v3869_v2  ;;  %3570 = vmatpush3.msra.mxu1 %v3873_v4  ;;  %v1736_v31 = vshrl.u32 %v1735_v30, 7 }
0x154e   : > { %3564 = vmatprep.subr.mxu0 %v3801_v28  ;;  %3571 = vmatprep.subr.mxu1 %v3801_v28 }
0x154f   : > { %3565 = vmatpush3.msra.mxu0 %v3867_v1  ;;  %3566 = vmatprep.mubr.msk.f32.mxu0 %vm3802_vm4, %v3801_v28  ;;  %v1737_v32 = vsub.s32 0, %v1736_v31 }
0x1550   : > { %3572 = vmatpush3.msra.mxu1 %v3871_v3  ;;  %3573 = vmatprep.mubr.msk.f32.mxu1 %vm3802_vm4, %v3801_v28 }
0x1551   : > { %3567 = vmatmul.mubr.msk.f32.vlgmr.msra.gmra.mxu0 %vm1740_vm3, %v3312_v29  ;;  %3574 = vmatmul.mubr.f32.vlgmr.msra.gmra.mxu1 %v3801_v28  ;;  %v4117_v33 = vrot.slane %v3875_v5, %v1737_v32  ;;  %v4122_v39 = vrot.slane %v3857_v0, %v1737_v32  ;;  %v3316_v0 = vld [vmem:[%s4294_s0 + $0xc] sm:$0x3] }
0x1552   : > { %3583 = vmatprep.subr.mxu1 %v3801_v28  ;;  %3576 = vmatprep.subr.mxu0 %v3801_v28 }
0x1553   : > { %3584 = vmatpush3.msra.mxu1 %v3873_v4  ;;  %3577 = vmatpush3.msra.mxu0 %v3869_v2 }
0x1554   : > { %3585 = vmatprep.subr.mxu1 %v3801_v28  ;;  %3578 = vmatprep.subr.mxu0 %v3801_v28 }
0x1555   : > { %3586 = vmatpush3.msra.mxu1 %v3871_v3  ;;  %3579 = vmatpush3.msra.mxu0 %v3867_v1 }
0x1556   : > { %3580 = vmatprep.mubr.msk.f32.mxu0 %vm3802_vm4, %v3801_v28  ;;  %3587 = vmatprep.mubr.msk.f32.mxu1 %vm3802_vm4, %v3801_v28 }
0x1557   : > { %3597 = vmatprep.subr.mxu1 %v3801_v28  ;;  %3590 = vmatprep.subr.mxu0 %v3801_v28 }
0x1558   : > { %3581 = vmatmul.mubr.msk.f32.vlgmr.msra.gmra.mxu0 %vm1740_vm3, %v3316_v0 }
0x1559   : > { %3591 = vmatpush3.msra.mxu0 %v3869_v2  ;;  %3594 = vmatprep.mubr.msk.f32.mxu0 %vm3802_vm4, %v3801_v28 }
0x155a   : > { %3592 = vmatprep.subr.mxu0 %v3801_v28 }
0x155b   : > { %3593 = vmatpush3.msra.mxu0 %v3867_v1 }
0x155c   : > { %3604 = vmatprep.subr.mxu0 %v3801_v28  ;;  %3595 = vmatmul.mubr.msk.f32.vlgmr.msra.gmra.mxu0 %vm1740_vm3, %v3321_v15 }
0x155d   : > { %3605 = vmatpush3.msra.mxu0 %v3869_v2  ;;  %3608 = vmatprep.mubr.msk.f32.mxu0 %vm3802_vm4, %v3801_v28 }
0x155e   : > { %3606 = vmatprep.subr.mxu0 %v3801_v28 }
0x155f   : > { %3607 = vmatpush3.msra.mxu0 %v3867_v1 }
0x1560   : > { %3618 = vmatprep.subr.mxu0 %v3801_v28 }
0x1611   : > { %v1810_v34 = vpop.f32.mrf.mxu0  ;;  %v1889_v35 = vpop.f32.mrf.mxu1 }
0x1612   : > { %v1890_v36 = vadd.f32 %v1889_v35, %v4117_v33  ;;  %v1811_v40 = vadd.f32 %v1810_v34, %v4122_v39 }
0x1613   : > { %v3575_v37 = vpop.f32.mrf.mxu1  ;;  %v3568_v38 = vpop.f32.mrf.mxu0 }
0x1614   : > { %1901 = vrot.lane.b32.xlu0 %v1890_v36, %s3803_s19  ;;  %v1893_v41 = vadd.f32 %v1890_v36, %v1811_v40 }
0x1616   : > { %v3314_v42 = vmul.f32 -1.442695, %v1893_v41 }
0x1618   : > { %3740 = vpow2.f32 %v3314_v42  ;;  %v1997_v55 = vpop.f32.mrf.mxu0 }
0x1619   : > { %v1998_v60 = vadd.f32 %v1997_v55, %v4122_v39 }
0x161a   : > { %v3582_v56 = vpop.f32.mrf.mxu0 }
0x161c   : > { %v2176_v11 = vpop.f32.mrf.mxu0 }
0x161d   : > { %v2177_v26 = vadd.f32 %v2176_v11, %v4122_v39 }
0x161e   : > { %v3596_v23 = vpop.f32.mrf.mxu0 }
0x1625   : > { %v3741_v43 = vpop.eup %3740 }
0x1626   : > { %v1897_v5 = vadd.f32 1.0, %v3741_v43 }
0x1628   : > { %3742 = vrcp.f32 %v1897_v5 }
0x1635   : > { %v3743_v44 = vpop.eup %3742 }
0x1636   : > { %v1911_v50 = vsub.f32 1.0, %v3743_v44  ;;  %v1917_v6 = vmul.f32 0.0, %v3743_v44 }
0x1686   : > { %v1902_v45 = vpop.permute.xlu0 %1901 }
0x1687   : > { %v1904_v46 = vmul.f32 %v3743_v44, %v1902_v45 }
0x1689   : > { %1906 = vrot.lane.b32.xlu0 %v1904_v46, %s3804_s10 }
0x16fb   : > { %v1907_v47 = vpop.permute.xlu0 %1906 }
0x16fc   : > { %v1909_v48 = vadd.f32 %v1907_v47, %v1811_v40  ;;  %v3326_v40 = vld [vmem:[%s4294_s0 + $0x8] sm:$0x3] }
0x16fd   : > { %3609 = vmatmul.mubr.msk.f32.vlgmr.msra.gmra.mxu0 %vm1740_vm3, %v3326_v40 }
0x16fe   : > { %3744 = vtanh.f32 %v1909_v48  ;;  %3619 = vmatpush3.msra.mxu0 %v3869_v2  ;;  %3622 = vmatprep.mubr.msk.f32.mxu0 %vm3802_vm4, %v3801_v28 }
0x16ff   : > { %3620 = vmatprep.subr.mxu0 %v3801_v28 }
0x1700   : > { %3621 = vmatpush3.msra.mxu0 %v3867_v1 }
0x1701   : > { %3632 = vmatprep.subr.mxu0 %v3801_v28 }
0x170b   : > { %v3745_v49 = vpop.eup %3744 }
0x170c   : > { %1913 = vrot.lane.b32.xlu1 %v3745_v49, %s3805_s12 }
0x177e   : > { %v1914_v51 = vpop.permute.xlu1 %1913 }
0x177f   : > { %v1916_v52 = vmul.f32 %v1914_v51, %v1911_v50 }
0x1781   : > { %v1918_v53 = vadd.f32 %v1917_v6, %v1916_v52 }
0x1783   : > { %1920 = vrot.lane.b32.xlu1 %v1918_v53, %s3805_s12 }
0x17bd   : > { %v2355_v46 = vpop.f32.mrf.mxu0 }
0x17be   : > { %v2356_v50 = vadd.f32 %v2355_v46, %v4122_v39 }
0x17bf   : > { %v3610_v47 = vpop.f32.mrf.mxu0 }
0x17f5   : > { %v1921_v54 = vpop.permute.xlu1 %1920 }
0x17f6   : > { %3315 = vst.msk [vmem:[%s3865_s11 + $0xe] sm:$0x3] %vm1924_vm5, %v1921_v54  ;;  %3588 = vmatmul.mubr.msk.f32.vlgmr.msra.gmra.mxu1 %vm1740_vm3, %v1921_v54 }
0x17f7   : > { %3598 = vmatpush3.msra.mxu1 %v3873_v4  ;;  %3601 = vmatprep.mubr.msk.f32.mxu1 %vm3802_vm4, %v3801_v28 }
0x17f8   : > { %3599 = vmatprep.subr.mxu1 %v3801_v28 }
0x17f9   : > { %3600 = vmatpush3.msra.mxu1 %v3871_v3 }
0x17fa   : > { %3611 = vmatprep.subr.mxu1 %v3801_v28 }
0x18b6   : > { %v2069_v57 = vpop.f32.mrf.mxu1 }
0x18b7   : > { %v2070_v58 = vadd.f32 %v2069_v57, %v4117_v33 }
0x18b8   : > { %v3589_v59 = vpop.f32.mrf.mxu1 }
0x18b9   : > { %2081 = vrot.lane.b32.xlu0 %v2070_v58, %s3803_s19  ;;  %v2073_v61 = vadd.f32 %v2070_v58, %v1998_v60 }
0x18bb   : > { %v3319_v62 = vmul.f32 -1.442695, %v2073_v61 }
0x18bd   : > { %3746 = vpow2.f32 %v3319_v62 }
0x18ca   : > { %v3747_v63 = vpop.eup %3746 }
0x18cb   : > { %v2077_v7 = vadd.f32 1.0, %v3747_v63 }
0x18cd   : > { %3748 = vrcp.f32 %v2077_v7 }
0x18da   : > { %v3749_v8 = vpop.eup %3748 }
0x18db   : > { %v2091_v16 = vsub.f32 1.0, %v3749_v8  ;;  %v2097_v19 = vmul.f32 %v3749_v8, %v1918_v53 }
0x192b   : > { %v2082_v9 = vpop.permute.xlu0 %2081 }
0x192c   : > { %v2084_v10 = vmul.f32 %v3749_v8, %v2082_v9 }
0x192e   : > { %2086 = vrot.lane.b32.xlu1 %v2084_v10, %s3804_s10 }
0x19a0   : > { %v2087_v12 = vpop.permute.xlu1 %2086 }
0x19a1   : > { %v2089_v13 = vadd.f32 %v2087_v12, %v1998_v60  ;;  %v3331_v60 = vld [vmem:[%s4294_s0 + $0x6] sm:$0x3] }
0x19a2   : > { %3623 = vmatmul.mubr.msk.f32.vlgmr.msra.gmra.mxu0 %vm1740_vm3, %v3331_v60 }
0x19a3   : > { %3750 = vtanh.f32 %v2089_v13  ;;  %3633 = vmatpush3.msra.mxu0 %v3869_v2  ;;  %3636 = vmatprep.mubr.msk.f32.mxu0 %vm3802_vm4, %v3801_v28 }
0x19a4   : > { %3634 = vmatprep.subr.mxu0 %v3801_v28 }
0x19a5   : > { %3635 = vmatpush3.msra.mxu0 %v3867_v1 }
0x19a6   : > { %3646 = vmatprep.subr.mxu0 %v3801_v28 }
0x19b0   : > { %v3751_v14 = vpop.eup %3750 }
0x19b1   : > { %2093 = vrot.lane.b32.xlu0 %v3751_v14, %s3805_s12 }
0x1a23   : > { %v2094_v18 = vpop.permute.xlu0 %2093 }
0x1a24   : > { %v2096_v20 = vmul.f32 %v2094_v18, %v2091_v16 }
0x1a26   : > { %v2098_v21 = vadd.f32 %v2097_v19, %v2096_v20 }
0x1a28   : > { %2100 = vrot.lane.b32.xlu1 %v2098_v21, %s3805_s12 }
0x1a62   : > { %v2534_v10 = vpop.f32.mrf.mxu0 }
0x1a63   : > { %v2535_v16 = vadd.f32 %v2534_v10, %v4122_v39  ;;  %v3000_v10 = vld [vmem:[%s4294_s0] sm:$0x3] }
0x1a64   : > { %v3624_v12 = vpop.f32.mrf.mxu0 }
0x1a9a   : > { %v2101_v22 = vpop.permute.xlu1 %2100 }
0x1a9b   : > { %3320 = vst.msk [vmem:[%s3865_s11 + $0xc] sm:$0x3] %vm1924_vm5, %v2101_v22  ;;  %3602 = vmatmul.mubr.msk.f32.vlgmr.msra.gmra.mxu1 %vm1740_vm3, %v2101_v22 }
0x1a9c   : > { %3612 = vmatpush3.msra.mxu1 %v3873_v4  ;;  %3615 = vmatprep.mubr.msk.f32.mxu1 %vm3802_vm4, %v3801_v28 }
0x1a9d   : > { %3613 = vmatprep.subr.mxu1 %v3801_v28 }
0x1a9e   : > { %3614 = vmatpush3.msra.mxu1 %v3871_v3 }
0x1a9f   : > { %3625 = vmatprep.subr.mxu1 %v3801_v28 }
0x1b5b   : > { %v2248_v17 = vpop.f32.mrf.mxu1 }
0x1b5c   : > { %v2249_v24 = vadd.f32 %v2248_v17, %v4117_v33 }
0x1b5d   : > { %v3603_v25 = vpop.f32.mrf.mxu1 }
0x1b5e   : > { %2260 = vrot.lane.b32.xlu0 %v2249_v24, %s3803_s19  ;;  %v2252_v27 = vadd.f32 %v2249_v24, %v2177_v26 }
0x1b60   : > { %v3324_v29 = vmul.f32 -1.442695, %v2252_v27 }
0x1b62   : > { %3752 = vpow2.f32 %v3324_v29 }
0x1b6f   : > { %v3753_v30 = vpop.eup %3752 }
0x1b70   : > { %v2256_v31 = vadd.f32 1.0, %v3753_v30 }
0x1b72   : > { %3754 = vrcp.f32 %v2256_v31 }
0x1b7f   : > { %v3755_v32 = vpop.eup %3754 }
0x1b80   : > { %v2270_v41 = vsub.f32 1.0, %v3755_v32  ;;  %v2276_v43 = vmul.f32 %v3755_v32, %v2098_v21 }
0x1bd0   : > { %v2261_v34 = vpop.permute.xlu0 %2260 }
0x1bd1   : > { %v2263_v35 = vmul.f32 %v3755_v32, %v2261_v34 }
0x1bd3   : > { %2265 = vrot.lane.b32.xlu1 %v2263_v35, %s3804_s10 }
0x1c45   : > { %v2266_v36 = vpop.permute.xlu1 %2265 }
0x1c46   : > { %v2268_v37 = vadd.f32 %v2266_v36, %v2177_v26  ;;  %v3336_v26 = vld [vmem:[%s4294_s0 + $0x4] sm:$0x3] }
0x1c47   : > { %3637 = vmatmul.mubr.msk.f32.vlgmr.msra.gmra.mxu0 %vm1740_vm3, %v3336_v26 }
0x1c48   : > { %3756 = vtanh.f32 %v2268_v37  ;;  %3647 = vmatpush3.msra.mxu0 %v3869_v2  ;;  %3650 = vmatprep.mubr.msk.f32.mxu0 %vm3802_vm4, %v3801_v28 }
0x1c49   : > { %3648 = vmatprep.subr.mxu0 %v3801_v28 }
0x1c4a   : > { %3649 = vmatpush3.msra.mxu0 %v3867_v1 }
0x1c4b   : > { %3660 = vmatprep.subr.mxu0 %v3801_v28 }
0x1c55   : > { %v3757_v38 = vpop.eup %3756 }
0x1c56   : > { %2272 = vrot.lane.b32.xlu0 %v3757_v38, %s3805_s12 }
0x1cc8   : > { %v2273_v42 = vpop.permute.xlu0 %2272 }
0x1cc9   : > { %v2275_v5 = vmul.f32 %v2273_v42, %v2270_v41 }
0x1ccb   : > { %v2277_v44 = vadd.f32 %v2276_v43, %v2275_v5 }
0x1ccd   : > { %2279 = vrot.lane.b32.xlu1 %v2277_v44, %s3805_s12 }
0x1d07   : > { %v2713_v35 = vpop.f32.mrf.mxu0 }
0x1d08   : > { %v2714_v41 = vadd.f32 %v2713_v35, %v4122_v39 }
0x1d09   : > { %v3638_v36 = vpop.f32.mrf.mxu0 }
0x1d3f   : > { %v2280_v45 = vpop.permute.xlu1 %2279 }
0x1d40   : > { %3325 = vst.msk [vmem:[%s3865_s11 + $0xa] sm:$0x3] %vm1924_vm5, %v2280_v45  ;;  %3616 = vmatmul.mubr.msk.f32.vlgmr.msra.gmra.mxu1 %vm1740_vm3, %v2280_v45 }
0x1d41   : > { %3626 = vmatpush3.msra.mxu1 %v3873_v4  ;;  %3629 = vmatprep.mubr.msk.f32.mxu1 %vm3802_vm4, %v3801_v28 }
0x1d42   : > { %3627 = vmatprep.subr.mxu1 %v3801_v28 }
0x1d43   : > { %3628 = vmatpush3.msra.mxu1 %v3871_v3 }
0x1d44   : > { %3639 = vmatprep.subr.mxu1 %v3801_v28 }
0x1e00   : > { %v2427_v48 = vpop.f32.mrf.mxu1 }
0x1e01   : > { %v2428_v49 = vadd.f32 %v2427_v48, %v4117_v33 }
0x1e02   : > { %v3617_v0 = vpop.f32.mrf.mxu1 }
0x1e03   : > { %2439 = vrot.lane.b32.xlu0 %v2428_v49, %s3803_s19  ;;  %v2431_v51 = vadd.f32 %v2428_v49, %v2356_v50 }
0x1e05   : > { %v3329_v6 = vmul.f32 -1.442695, %v2431_v51 }
0x1e07   : > { %3758 = vpow2.f32 %v3329_v6 }
0x1e14   : > { %v3759_v52 = vpop.eup %3758 }
0x1e15   : > { %v2435_v53 = vadd.f32 1.0, %v3759_v52 }
0x1e17   : > { %3760 = vrcp.f32 %v2435_v53 }
0x1e24   : > { %v3761_v54 = vpop.eup %3760 }
0x1e25   : > { %v2449_v61 = vsub.f32 1.0, %v3761_v54  ;;  %v2455_v63 = vmul.f32 %v3761_v54, %v2277_v44 }
0x1e75   : > { %v2440_v55 = vpop.permute.xlu0 %2439 }
0x1e76   : > { %v2442_v56 = vmul.f32 %v3761_v54, %v2440_v55 }
0x1e78   : > { %2444 = vrot.lane.b32.xlu1 %v2442_v56, %s3804_s10 }
0x1eea   : > { %v2445_v57 = vpop.permute.xlu1 %2444 }
0x1eeb   : > { %v2447_v58 = vadd.f32 %v2445_v57, %v2356_v50  ;;  %v3341_v50 = vld [vmem:[%s4294_s0 + $0x2] sm:$0x3] }
0x1eec   : > { %3651 = vmatmul.mubr.msk.f32.vlgmr.msra.gmra.mxu0 %vm1740_vm3, %v3341_v50 }
0x1eed   : > { %3762 = vtanh.f32 %v2447_v58  ;;  %3661 = vmatpush3.msra.mxu0 %v3869_v2  ;;  %3664 = vmatprep.mubr.msk.f32.mxu0 %vm3802_vm4, %v3801_v28 }
0x1eee   : > { %3662 = vmatprep.subr.mxu0 %v3801_v28 }
0x1eef   : > { %3663 = vmatpush3.msra.mxu0 %v3867_v1 }
0x1ef0   : > { %3665 = vmatmul.mubr.msk.f32.vlgmr.msra.gmra.mxu0 %vm1740_vm3, %v3000_v10 }
0x1efa   : > { %v3763_v59 = vpop.eup %3762 }
0x1efb   : > { %2451 = vrot.lane.b32.xlu0 %v3763_v59, %s3805_s12 }
0x1f6d   : > { %v2452_v62 = vpop.permute.xlu0 %2451 }
0x1f6e   : > { %v2454_v7 = vmul.f32 %v2452_v62, %v2449_v61 }
0x1f70   : > { %v2456_v8 = vadd.f32 %v2455_v63, %v2454_v7 }
0x1f72   : > { %2458 = vrot.lane.b32.xlu1 %v2456_v8, %s3805_s12 }
0x1fac   : > { %v2892_v1 = vpop.f32.mrf.mxu0 }
0x1fad   : > { %v2893_v59 = vadd.f32 %v2892_v1, %v4122_v39 }
0x1fae   : > { %v3652_v2 = vpop.f32.mrf.mxu0 }
0x1fe4   : > { %v2459_v9 = vpop.permute.xlu1 %2458 }
0x1fe5   : > { %3330 = vst.msk [vmem:[%s3865_s11 + $0x8] sm:$0x3] %vm1924_vm5, %v2459_v9  ;;  %3630 = vmatmul.mubr.msk.f32.vlgmr.msra.gmra.mxu1 %vm1740_vm3, %v2459_v9 }
0x1fe6   : > { %3640 = vmatpush3.msra.mxu1 %v3873_v4  ;;  %3643 = vmatprep.mubr.msk.f32.mxu1 %vm3802_vm4, %v3801_v28 }
0x1fe7   : > { %3641 = vmatprep.subr.mxu1 %v3801_v28 }
0x1fe8   : > { %3642 = vmatpush3.msra.mxu1 %v3871_v3 }
0x1fe9   : > { %3653 = vmatprep.subr.mxu1 %v3801_v28 }
0x20a5   : > { %v2606_v13 = vpop.f32.mrf.mxu1 }
0x20a6   : > { %v2607_v14 = vadd.f32 %v2606_v13, %v4117_v33 }
0x20a7   : > { %v3631_v15 = vpop.f32.mrf.mxu1 }
0x20a8   : > { %2618 = vrot.lane.b32.xlu0 %v2607_v14, %s3803_s19  ;;  %v2610_v18 = vadd.f32 %v2607_v14, %v2535_v16 }
0x20aa   : > { %v3334_v19 = vmul.f32 -1.442695, %v2610_v18 }
0x20ac   : > { %3764 = vpow2.f32 %v3334_v19  ;;  %v3070_v19 = vpop.f32.mrf.mxu0 }
0x20b9   : > { %v3765_v20 = vpop.eup %3764 }
0x20ba   : > { %v2614_v21 = vadd.f32 1.0, %v3765_v20  ;;  %v3666_v20 = vpop.f32.mrf.mxu0 }
0x20bc   : > { %3766 = vrcp.f32 %v2614_v21 }
0x20c9   : > { %v3767_v22 = vpop.eup %3766 }
0x20ca   : > { %v2628_v27 = vsub.f32 1.0, %v3767_v22  ;;  %v2634_v30 = vmul.f32 %v3767_v22, %v2456_v8 }
0x211a   : > { %v2619_v11 = vpop.permute.xlu0 %2618 }
0x211b   : > { %v2621_v23 = vmul.f32 %v3767_v22, %v2619_v11 }
0x211d   : > { %2623 = vrot.lane.b32.xlu1 %v2621_v23, %s3804_s10  ;;  %v3071_v23 = vadd.f32 %v3070_v19, %v4122_v39 }
0x218f   : > { %v2624_v17 = vpop.permute.xlu1 %2623 }
0x2190   : > { %v2626_v24 = vadd.f32 %v2624_v17, %v2535_v16 }
0x2192   : > { %3768 = vtanh.f32 %v2626_v24 }
0x219f   : > { %v3769_v25 = vpop.eup %3768 }
0x21a0   : > { %2630 = vrot.lane.b32.xlu0 %v3769_v25, %s3805_s12 }
0x2212   : > { %v2631_v29 = vpop.permute.xlu0 %2630 }
0x2213   : > { %v2633_v31 = vmul.f32 %v2631_v29, %v2628_v27 }
0x2215   : > { %v2635_v32 = vadd.f32 %v2634_v30, %v2633_v31 }
0x2217   : > { %2637 = vrot.lane.b32.xlu1 %v2635_v32, %s3805_s12 }
0x2289   : > { %v2638_v34 = vpop.permute.xlu1 %2637 }
0x228a   : > { %3335 = vst.msk [vmem:[%s3865_s11 + $0x6] sm:$0x3] %vm1924_vm5, %v2638_v34  ;;  %3644 = vmatmul.mubr.msk.f32.vlgmr.msra.gmra.mxu1 %vm1740_vm3, %v2638_v34 }
0x228b   : > { %3654 = vmatpush3.msra.mxu1 %v3873_v4  ;;  %3657 = vmatprep.mubr.msk.f32.mxu1 %vm3802_vm4, %v3801_v28 }
0x228c   : > { %3655 = vmatprep.subr.mxu1 %v3801_v28 }
0x228d   : > { %3656 = vmatpush3.msra.mxu1 %v3871_v3 }
0x228e   : > { %3667 = vmatprep.subr.mxu1 %v3801_v28 }
0x234a   : > { %v2785_v37 = vpop.f32.mrf.mxu1 }
0x234b   : > { %v2786_v38 = vadd.f32 %v2785_v37, %v4117_v33 }
0x234c   : > { %v3645_v40 = vpop.f32.mrf.mxu1 }
0x234d   : > { %2797 = vrot.lane.b32.xlu0 %v2786_v38, %s3803_s19  ;;  %v2789_v42 = vadd.f32 %v2786_v38, %v2714_v41 }
0x234f   : > { %v3339_v43 = vmul.f32 -1.442695, %v2789_v42 }
0x2351   : > { %3770 = vpow2.f32 %v3339_v43 }
0x235e   : > { %v3771_v5 = vpop.eup %3770 }
0x235f   : > { %v2793_v44 = vadd.f32 1.0, %v3771_v5 }
0x2361   : > { %3772 = vrcp.f32 %v2793_v44 }
0x236e   : > { %v3773_v45 = vpop.eup %3772 }
0x236f   : > { %v2807_v51 = vsub.f32 1.0, %v3773_v45  ;;  %v2813_v52 = vmul.f32 %v3773_v45, %v2635_v32 }
0x23bf   : > { %v2798_v46 = vpop.permute.xlu0 %2797 }
0x23c0   : > { %v2800_v47 = vmul.f32 %v3773_v45, %v2798_v46 }
0x23c2   : > { %2802 = vrot.lane.b32.xlu1 %v2800_v47, %s3804_s10 }
0x2434   : > { %v2803_v48 = vpop.permute.xlu1 %2802 }
0x2435   : > { %v2805_v49 = vadd.f32 %v2803_v48, %v2714_v41 }
0x2437   : > { %3774 = vtanh.f32 %v2805_v49 }
0x2444   : > { %v3775_v0 = vpop.eup %3774 }
0x2445   : > { %2809 = vrot.lane.b32.xlu0 %v3775_v0, %s3805_s12 }
0x24b7   : > { %v2810_v6 = vpop.permute.xlu0 %2809 }
0x24b8   : > { %v2812_v53 = vmul.f32 %v2810_v6, %v2807_v51 }
0x24ba   : > { %v2814_v54 = vadd.f32 %v2813_v52, %v2812_v53 }
0x24bc   : > { %2816 = vrot.lane.b32.xlu1 %v2814_v54, %s3805_s12 }
0x252e   : > { %v2817_v55 = vpop.permute.xlu1 %2816 }
0x252f   : > { %3340 = vst.msk [vmem:[%s3865_s11 + $0x4] sm:$0x3] %vm1924_vm5, %v2817_v55  ;;  %3658 = vmatmul.mubr.msk.f32.vlgmr.msra.gmra.mxu1 %vm1740_vm3, %v2817_v55 }
0x2530   : > { %3668 = vmatpush3.msra.mxu1 %v3873_v4  ;;  %3671 = vmatprep.mubr.msk.f32.mxu1 %vm3802_vm4, %v3801_v28 }
0x2531   : > { %3669 = vmatprep.subr.mxu1 %v3801_v28 }
0x2532   : > { %3670 = vmatpush3.msra.mxu1 %v3871_v3 }
0x25ef   : > { %v2964_v56 = vpop.f32.mrf.mxu1 }
0x25f0   : > { %v2965_v57 = vadd.f32 %v2964_v56, %v4117_v33 }
0x25f1   : > { %v3659_v58 = vpop.f32.mrf.mxu1 }
0x25f2   : > { %2976 = vrot.lane.b32.xlu0 %v2965_v57, %s3803_s19  ;;  %v2968_v60 = vadd.f32 %v2965_v57, %v2893_v59 }
0x25f4   : > { %v3344_v61 = vmul.f32 -1.442695, %v2968_v60 }
0x25f6   : > { %3776 = vpow2.f32 %v3344_v61 }
0x2603   : > { %v3777_v4 = vpop.eup %3776 }
0x2604   : > { %v2972_v62 = vadd.f32 1.0, %v3777_v4 }
0x2606   : > { %3778 = vrcp.f32 %v2972_v62 }
0x2613   : > { %v3779_v63 = vpop.eup %3778 }
0x2614   : > { %v2986_v12 = vsub.f32 1.0, %v3779_v63  ;;  %v2992_v14 = vmul.f32 %v3779_v63, %v2814_v54 }
0x2664   : > { %v2977_v28 = vpop.permute.xlu0 %2976 }
0x2665   : > { %v2979_v7 = vmul.f32 %v3779_v63, %v2977_v28 }
0x2667   : > { %2981 = vrot.lane.b32.xlu1 %v2979_v7, %s3804_s10 }
0x26d9   : > { %v2982_v3 = vpop.permute.xlu1 %2981 }
0x26da   : > { %v2984_v8 = vadd.f32 %v2982_v3, %v2893_v59 }
0x26dc   : > { %3780 = vtanh.f32 %v2984_v8 }
0x26e9   : > { %v3781_v9 = vpop.eup %3780 }
0x26ea   : > { %2988 = vrot.lane.b32.xlu0 %v3781_v9, %s3805_s12 }
0x275c   : > { %v2989_v13 = vpop.permute.xlu0 %2988 }
0x275d   : > { %v2991_v15 = vmul.f32 %v2989_v13, %v2986_v12 }
0x275f   : > { %v2993_v16 = vadd.f32 %v2992_v14, %v2991_v15 }
0x2761   : > { %2995 = vrot.lane.b32.xlu1 %v2993_v16, %s3805_s12 }
0x27d3   : > { %v2996_v18 = vpop.permute.xlu1 %2995 }
0x27d4   : > { %3345 = vst.msk [vmem:[%s3865_s11 + $0x2] sm:$0x3] %vm1924_vm5, %v2996_v18  ;;  %3672 = vmatmul.mubr.msk.f32.vlgmr.msra.gmra.mxu1 %vm1740_vm3, %v2996_v18 }
0x2894   : > { %v3142_v21 = vpop.f32.mrf.mxu1 }
0x2895   : > { %v3143_v22 = vadd.f32 %v3142_v21, %v4117_v33 }
0x2896   : > { %v3673_v11 = vpop.f32.mrf.mxu1 }
0x2897   : > { %3154 = vrot.lane.b32.xlu0 %v3143_v22, %s3803_s19  ;;  %v3146_v17 = vadd.f32 %v3143_v22, %v3071_v23 }
0x2899   : > { %v3348_v24 = vmul.f32 -1.442695, %v3146_v17 }
0x289b   : > { %3782 = vpow2.f32 %v3348_v24 }
0x28a8   : > { %v3783_v25 = vpop.eup %3782 }
0x28a9   : > { %v3150_v26 = vadd.f32 1.0, %v3783_v25 }
0x28ab   : > { %3784 = vrcp.f32 %v3150_v26 }
0x28b8   : > { %v3785_v27 = vpop.eup %3784 }
0x28b9   : > { %v3164_v34 = vsub.f32 1.0, %v3785_v27  ;;  %v3170_v35 = vmul.f32 %v3785_v27, %v2993_v16 }
0x2909   : > { %v3155_v29 = vpop.permute.xlu0 %3154 }
0x290a   : > { %v3157_v30 = vmul.f32 %v3785_v27, %v3155_v29 }
0x290c   : > { %3159 = vrot.lane.b32.xlu1 %v3157_v30, %s3804_s10 }
0x297e   : > { %v3160_v31 = vpop.permute.xlu1 %3159 }
0x297f   : > { %v3162_v32 = vadd.f32 %v3160_v31, %v3071_v23 }
0x2981   : > { %3786 = vtanh.f32 %v3162_v32 }
0x298e   : > { %v3787_v33 = vpop.eup %3786 }
0x298f   : > { %3166 = vrot.lane.b32.xlu0 %v3787_v33, %s3805_s12 }
0x2a01   : > { %v3167_v39 = vpop.permute.xlu0 %3166 }
0x2a02   : > { %v3169_v36 = vmul.f32 %v3167_v39, %v3164_v34 }
0x2a04   : > { %v3171_v37 = vadd.f32 %v3170_v35, %v3169_v36 }
0x2a06   : > { %3173 = vrot.lane.b32.xlu1 %v3171_v37, %s3805_s12 }
0x2a78   : > { %v3174_v38 = vpop.permute.xlu1 %3173 }
0x2a79   : > { %3176 = vst.msk [vmem:[%s3865_s11] sm:$0x3] %vm1924_vm5, %v3174_v38 }
0x2a7a PF: > { %s15_s18 = sadd.s32 1, %s3794_s18  }
0x2a7b   : > { %p12_p6 = scmp.ge.s32.totalorder %s15_s18, 4  }
0x2a7d   :  { %14 = sbr.rel (!%p12_p6) target bundleno = 1 (0x1), region = 115 }

// kernel: _forward_impl.3
= control target key start
LH: loop header
LB: loop body
LE: loop exit
PB: predicated region body
PF: predicated region fallthrough
CT: control target
= control target key end

     0   :  { %s7852_s0 = inlined_call_operand.vmem [shape: s32[5], index: 0, kind: input, shape index: {}]   ;;  %s7853_s1 = inlined_call_operand.vmem [shape: s32[6,2,1], index: 1, kind: input, shape index: {}]   ;;  %s7854_s2 = inlined_call_operand.vmem [shape: f32[2,32], index: 2, kind: input, shape index: {}]   ;;  %s7855_s3 = inlined_call_operand.vmem [shape: f32[32,32], index: 3, kind: input, shape index: {}]   ;;  %s7856_s4 = inlined_call_operand.vmem [shape: f32[1,32], index: 4, kind: input, shape index: {}]   ;;  %s7857_s5 = inlined_call_operand.vmem [shape: f32[2,8,32], index: 5, kind: input, shape index: {}]   ;;  %s7858_s6 = inlined_call_operand.vmem [shape: f32[2,8], index: 6, kind: input, shape index: {}]   ;;  %s7859_s7 = inlined_call_operand.vmem [shape: f32[18,16], index: 7, kind: input, shape index: {}]   ;;  %s7860_s8 = inlined_call_operand.vmem [shape: f32[32,32], index: 8, kind: input, shape index: {}]   ;;  %s7861_s9 = inlined_call_operand.vmem [shape: f32[32,32], index: 9, kind: input, shape index: {}]   ;;  %s7862_s10 = inlined_call_operand.vmem [shape: f32[1,32], index: 10, kind: input, shape index: {}]   ;;  %s7863_s11 = inlined_call_operand.vmem [shape: f32[1,32], index: 11, kind: input, shape index: {}]   ;;  %s7864_s12 = inlined_call_operand.vmem [shape: f32[16,96], index: 12, kind: input, shape index: {}]   ;;  %s7865_s13 = inlined_call_operand.vmem [shape: f32[32,96], index: 13, kind: input, shape index: {}]   ;;  %s7866_s14 = inlined_call_operand.vmem [shape: f32[32,96], index: 14, kind: input, shape index: {}]   ;;  %s7867_s15 = inlined_call_operand.vmem [shape: f32[1,96], index: 15, kind: input, shape index: {}]   ;;  %s7868_s16 = inlined_call_operand.vmem [shape: f32[1,96], index: 16, kind: input, shape index: {}]   ;;  %s7869_s17 = inlined_call_operand.vmem [shape: f32[32,18], index: 17, kind: input, shape index: {}]   ;;  %s7870_s18 = inlined_call_operand.vmem [shape: f32[32,18], index: 18, kind: input, shape index: {}]   ;;  %s7871_s19 = inlined_call_operand.vmem [shape: f32[16,18], index: 19, kind: input, shape index: {}]   ;;  %s7872_s20 = inlined_call_operand.vmem [shape: f32[1,18], index: 20, kind: input, shape index: {}]   ;;  %s7873_s21 = inlined_call_operand.hbm [shape: f32[6,2,18], index: 21, kind: output, shape index: {}]  }
   0x1   :  { %7878 = sst [smem:[#allocation8_spill]] %s7852_s0 }
   0x2   :  { %7879 = sst [smem:[#allocation9_spill]] %s7853_s1 }
   0x3   :  { %7880 = sst [smem:[#allocation10_spill]] %s7854_s2 }
   0x4   :  { %7881 = sst [smem:[#allocation11_spill]] %s7855_s3 }
   0x5   :  { %7882 = sst [smem:[#allocation12_spill]] %s7856_s4 }
   0x6   :  { %7883 = sst [smem:[#allocation13_spill]] %s7857_s5 }
   0x7   :  { %7884 = sst [smem:[#allocation14_spill]] %s7867_s15 }
   0x8   :  { %s7885_s26 = sld [smem:[#allocation8_spill]] }
   0xe   :  { %s26_s15 = sshll.u32 %s7885_s26, 4  ;;  %s27_s15 = int_to_ptr.vmem [resolvable:$true] %s26_s15 }
   0xf   :  { %s6545_s27 = scalar_lea.vmem %s27_s15, 16  ;;  %p6550_p1 = scmp.lt.s32.totalorder %s27_s15, %s27_s15 }
  0x10   :  { %p6546_p0 = scmp.ne.s32.totalorder %s27_s15, %s6545_s27  ;;  %p6551_p2 = scmp.lt.s32.totalorder %s6545_s27, %s6545_s27 }
  0x12   :  { %p6552_p3 = por %p6551_p2, %p6550_p1 }
  0x14   :  { %p6553_p4 = pnand %p6552_p3, %p6546_p0 }
  0x16   :  { %6556 = shalt.err (!%p6553_p4)  }
  0x17   :  { %s6581_s3 = smov [#allocation3]  }
  0x18   :  { %29 = dma.vmem_to_smem %s27_s15, 16, %s6581_s3, [#allocation2] }
  0x19   :  { %6577 = dma.done.wait [#allocation2], 16 }
  0x1a   :  { %6578 = vsyncadd [#allocation2], 4294967280 }
  0x1b   :  { %31 = sfence }
  0x1c   :  { %s7886_s0 = sld [smem:[#allocation11_spill]]  ;;  %v260_v1 = vlaneseq  ;;  %v6582_v2 = vmov 0.0   ;;  %vm6583_vm0 = vmmov 0   ;;  %vm280_vm1 = vcmask 146432  }
  0x1d   :  { %5926 = vmatprep.subr.mxu0 %v6582_v2  ;;  %5934 = vmatprep.mubr.msk.f32.mxu0 %vm6583_vm0, %v6582_v2 }
  0x22   :  { %v77_v0 = vld [vmem:[%s7886_s0 + $0x18] sm:$0xff]  ;;  %v76_v3 = vld [vmem:[%s7886_s0 + $0x10] sm:$0xff] }
  0x23   :  { %32 = vsyncpa [#allocation5], 0  ;;  %5927 = vmatpush3.msra.mxu0 %v77_v0  ;;  %v6714_v4 = vand.u32 127, %v260_v1  ;;  %v75_v5 = vld [vmem:[%s7886_s0 + $0x8] sm:$0xff]  ;;  %v74_v7 = vld [vmem:[%s7886_s0] sm:$0xff]  ;;  %s7887_s2 = sld [smem:[#allocation10_spill]] }
  0x24   :  { %5928 = vmatprep.subr.mxu0 %v6582_v2  ;;  %vm85_vm2 = vcmask 261120   ;;  %v165_v11 = vld [vmem:[%s7861_s9 + $0x18] sm:$0xff]  ;;  %v164_v12 = vld [vmem:[%s7861_s9 + $0x10] sm:$0xff]  ;;  %v163_v13 = vld [vmem:[%s7861_s9 + $0x8] sm:$0xff]  ;;  %s7888_s5 = sld [smem:[#allocation13_spill]]  ;;  %v6584_v25 = vmov 0  }
  0x25   :  { %5929 = vmatpush3.msra.mxu0 %v76_v3  ;;  %v281_v6 = vsel %vm280_vm1, %v6714_v4, 2147483647  ;;  %5937 = vmatprep.subr.mxu1 %v165_v11  ;;  %v162_v14 = vld [vmem:[%s7861_s9] sm:$0xff]  ;;  %v6761_v17 = vld [vmem:[%s7860_s8 + $0x18] sm:$0xff]  ;;  %v6769_v18 = vld [vmem:[%s7860_s8 + $0x10] sm:$0xff]  ;;  %s7889_s0 = sld [smem:[#allocation12_spill]] }
  0x26   :  { %5930 = vmatprep.subr.mxu0 %v6582_v2  ;;  %v283_v8 = vshra.s32 %v281_v6, 16  ;;  %5938 = vmatpush3.msra.mxu1 %v165_v11  ;;  %v6778_v19 = vld [vmem:[%s7860_s8 + $0x8] sm:$0xff]  ;;  %v6785_v20 = vld [vmem:[%s7860_s8] sm:$0xff]  ;;  %v282_v21 = vand.u32 65535, %v281_v6  ;;  %s296_s4 = sld [smem:[#allocation3]]  ;;  %vm315_vm4 = vcmask 1041408  }
  0x27   :  { %5931 = vmatpush3.msra.mxu0 %v75_v5  ;;  %5939 = vmatprep.subr.mxu1 %v164_v12  ;;  %v311_v32 = vld [vmem:[%s7859_s7 + $0x10] sm:$0x3]  ;;  %v6808_v35 = vld [vmem:[%s7859_s7 + $0x8] sm:$0xff]  ;;  %v6818_v39 = vld [vmem:[%s7859_s7] sm:$0xff]  ;;  %v6585_v42 = vmov 1966171168  }
  0x28   :  { %5932 = vmatprep.subr.mxu0 %v6582_v2  ;;  %v285_v10 = vcvt.s32.f32 %v283_v8  ;;  %5940 = vmatpush3.msra.mxu1 %v164_v12  ;;  %v284_v22 = vcvt.s32.f32 %v282_v21  ;;  %v258_v43 = vunpack.c.l.s4 %v6585_v42  ;;  %v261_v45 = vshrl.u32 %v260_v1, 7  ;;  %v6838_v58 = vld [vmem:[%s7862_s10] ss:$0 sm:$0xff]  ;;  %s6586_s15 = smov 64   ;;  %s7893_s1 = sld [smem:[#allocation14_spill]] }
  0x29   :  { %v73_v9 = vld [vmem:[%s7887_s2] sm:$0x3]  ;;  %5933 = vmatpush3.msra.mxu0 %v74_v7  ;;  %5941 = vmatprep.subr.mxu1 %v163_v13  ;;  %s7890_s2 = sld [smem:[#allocation9_spill]]  ;;  %vm665_vm8 = vcmask 57344   ;;  %vm688_vm10 = vcmask 64512   ;;  %vm918_vm11 = vcmask 130048  }
  0x2a   :  { %286 = vmin.xlane.f32.xlu0 %v285_v10  ;;  %5935 = vmatmul.mubr.msk.f32.vlgmr.msra.gmra.mxu0 %vm85_vm2, %v73_v9  ;;  %v6749_v15 = vld [vmem:[%s7888_s5] sm:$0xff]  ;;  %v6756_v16 = vld [vmem:[%s7888_s5 + $0x8] sm:$0xff]  ;;  %v259_v44 = vunpack.c.0.s8 %v258_v43  ;;  %v6830_v51 = vsub.s32 0, %v261_v45  ;;  %vm844_vm12 = vcmask 1041409   ;;  %vm276_vm13 = vcmask 140288   ;;  %s5608_s24 = sld [smem:[#allocation3 + $0x1]] }
  0x2b   :  { %5948 = vmatprep.subr.mxu0 %v6582_v2  ;;  %5954 = vmatprep.mubr.msk.f32.mxu0 %vm6583_vm0, %v6582_v2  ;;  %v5582_v26 = vld [vmem:[%s7889_s0] ss:$0 sm:$0xff]  ;;  %s6587_s0 = smov 96   ;;  %277 = vst.msk [vmem:[#allocation4] sm:$0x3] %vm276_vm13, %v6582_v2  ;;  %s5631_s28 = sld [smem:[#allocation3 + $0x2]] }
  0x2c   :  { %5945 = vmatprep.mubr.msk.f32.mxu1 %vm85_vm2, %v6749_v15  ;;  %5942 = vmatpush3.msra.mxu1 %v163_v13  ;;  %p297_p5 = scmp.ne.s32.totalorder %s296_s4, 0  ;;  %v6825_v47 = vsub.s32 %v259_v44, %v261_v45  ;;  %v6854_v3 = vld [vmem:[%s7863_s11] sm:$0x1]  ;;  %v6896_v44 = vld [vmem:[%s7864_s12 + $0x8] sm:$0xff]  ;;  %s6588_s4 = smov 32  }
  0x2d   :  { %5943 = vmatprep.subr.mxu1 %v162_v14  ;;  %6448 = vset.pattern.permute.xlu1 %v6584_v25  ;;  %v5586_v8 = vld.sshfl [vmem:[%s7858_s6] sm:$0x11 pattern:$0x75316420]  ;;  %s5677_s22 = sld [smem:[#allocation3 + $0x4]] }
  0x2e   :  { %5944 = vmatpush3.msra.mxu1 %v162_v14  ;;  %6449 = vset.pattern.permute.xlu0 %v6584_v25  ;;  %s299_s30 = scalar_select %p297_p5, 1, 0  ;;  %v256_v9 = vcombine.high %v5586_v8, %v5586_v8  ;;  %v6902_v45 = vld [vmem:[%s7864_s12] sm:$0xff] }
  0x2f   :  { %5946 = vmatmul.mubr.msk.f32.vlgmr.msra.gmra.mxu1 %vm85_vm2, %v6756_v16  ;;  %5957 = vmatprep.subr.mxu1 %v6582_v2  ;;  %v298_v38 = vld [vmem:[%s7890_s2] sm:$0x3] }
  0x30   :  { %5958 = vmatpush3.msra.mxu1 %v6761_v17  ;;  %5965 = vmatprep.mubr.msk.f32.mxu1 %vm6583_vm0, %v6582_v2  ;;  %v300_v33 = vstv %s299_s30  ;;  %v6878_v11 = vrot.slane %v256_v9, %v6825_v47  ;;  %v6987_v9 = vld [vmem:[%s7870_s18 + $0x10] sm:$0xff]  ;;  %p1367_p6 = scmp.ne.s32.totalorder %s5608_s24, 0  ;;  %s5654_s24 = sld [smem:[#allocation3 + $0x3]] }
  0x31   :  { %5959 = vmatprep.subr.mxu1 %v6582_v2  ;;  %5949 = vmatpush3.msk.msra.mxu0 %vm315_vm4, %v311_v32  ;;  %vm301_vm5 = vcmp.eq.s32.totalorder %v300_v33, 1  ;;  %p2422_p7 = scmp.ne.s32.totalorder %s5631_s28, 0 }
  0x32   :  { %5960 = vmatpush3.msra.mxu1 %v6769_v18  ;;  %5950 = vmatprep.subr.mxu0 %v6582_v2  ;;  %vm662_vm9 = vcmp.gt.f32.partialorder %v6878_v11, 0.0  ;;  %s1370_s9 = scalar_select %p1367_p6, 1, 0 }
  0x33   :  { %5961 = vmatprep.subr.mxu1 %v6582_v2  ;;  %5951 = vmatpush3.msra.mxu0 %v6808_v35  ;;  %s2425_s29 = scalar_select %p2422_p7, 1, 0 }
  0x34   :  { %5962 = vmatpush3.msra.mxu1 %v6778_v19  ;;  %5952 = vmatprep.subr.mxu0 %v6582_v2  ;;  %p4532_p9 = scmp.ne.s32.totalorder %s5677_s22, 0 }
  0x35   :  { %5963 = vmatprep.subr.mxu1 %v6582_v2  ;;  %5953 = vmatpush3.msra.mxu0 %v6818_v39 }
  0x36   :  { %5964 = vmatpush3.msra.mxu1 %v6785_v20  ;;  %5968 = vmatprep.subr.mxu0 %v6582_v2  ;;  %p3477_p8 = scmp.ne.s32.totalorder %s5654_s24, 0 }
  0x37   :  { %5973 = vmatprep.subr.mxu1 %v6582_v2  ;;  %s4535_s23 = scalar_select %p4532_p9, 1, 0 }
  0xb3   :  { %v287_v23 = vpop.xlane.xlu0 %286 }
  0xb4   :  { %vm288_vm3 = vcmp.eq.f32.partialorder %v285_v10, %v287_v23  ;;  %v293_v31 = vcvt.f32.s32 %v287_v23  ;;  %v263_v10 = vrot.slane %v5586_v8, %v6825_v47 }
  0xb5   :  { %v289_v24 = vsel %vm288_vm3, %v284_v22, inf }
  0xb6   :  { %290 = vmin.xlane.f32.xlu0 %v289_v24  ;;  %v294_v36 = vshll.u32 %v293_v31, 16  ;;  %vm6880_vm7 = vcmp.gt.f32.partialorder %v263_v10, 0.0 }
  0xea   :  { %v155_v27 = vpop.f32.mrf.mxu0 }
  0xeb   :  { %v156_v28 = vadd.f32 %v5582_v26, %v155_v27 }
  0xec   :  { %v5936_v29 = vpop.f32.mrf.mxu0 }
  0xed   :  { %6450 = vtanh.f32 %v156_v28 }
  0xef   :  { %v6823_v46 = vpop.f32.mrf.mxu1 }
  0xf1   :  { %v6827_v48 = vpop.f32.mrf.mxu1 }
  0xfa   :  { %v6794_v30 = vpop.eup %6450 }
  0xfb   :  { %5966 = vmatmul.mubr.msk.f32.vlgmr.msra.gmra.mxu1 %vm85_vm2, %v6794_v30 }
  0xfc   :  { %5975 = vmatprep.mubr.msk.f32.mxu1 %vm6583_vm0, %v6582_v2 }
 0x13f   :  { %v291_v34 = vpop.xlane.xlu0 %290 }
 0x140   :  { %v292_v37 = vcvt.f32.s32 %v291_v34 }
 0x142   :  { %v295_v40 = vadd.s32 %v294_v36, %v292_v37 }
 0x144   :  { %v302_v41 = vsel %vm301_vm5, %v298_v38, %v295_v40 }
 0x145   :  { %304 = vperm.xlu1 %6448, %v302_v41  }
 0x1bb   :  { %v462_v49 = vpop.f32.mrf.mxu1 }
 0x1bc   :  { %v473_v50 = vrot.slane %v462_v49, %v6825_v47 }
 0x1bd   :  { %v5967_v52 = vpop.f32.mrf.mxu1 }
 0x1be   :  { %v474_v53 = vcombine.high %v473_v50, %v473_v50  ;;  %v481_v54 = vrot.slane %v473_v50, %v6825_v47  ;;  %v6911_v52 = vld [vmem:[%s7865_s13 + $0x18] sm:$0xff] }
 0x1c0   :  { %v488_v55 = vrot.slane %v474_v53, %v6825_v47  ;;  %v492_v56 = vrot.slane %v481_v54, %v6830_v51  ;;  %v305_v57 = vpop.permute.xlu1 %304  ;;  %v6917_v53 = vld [vmem:[%s7866_s14 + $0x18] sm:$0xff]  ;;  %v6926_v54 = vld [vmem:[%s7866_s14 + $0x10] sm:$0xff] }
 0x1c1   :  { %vm306_vm6 = vcmp.eq.s32.totalorder %v6714_v4, %v305_v57  ;;  %v6959_v57 = vld [vmem:[%s7865_s13 + $0x10] sm:$0xff] }
 0x1c2   :  { %v496_v59 = vrot.slane %v488_v55, %v6830_v51  ;;  %v499_v60 = vadd.f32 %v492_v56, %v6827_v48  ;;  %v5587_v61 = vsel %vm306_vm6, 1.0, %v6582_v2  ;;  %v6936_v55 = vld [vmem:[%s7866_s14 + $0x8] sm:$0xff]  ;;  %v6946_v56 = vld [vmem:[%s7866_s14] sm:$0xff] }
 0x1c3   :  { %5955 = vmatmul.mubr.msk.f32.vlgmr.msra.gmra.mxu0 %vm280_vm1, %v5587_v61 }
 0x1c4   :  { %v500_v62 = vadd.f32 %v6823_v46, %v496_v59  ;;  %v508_v63 = vadd.f32 %v6838_v58, %v499_v60  ;;  %5970 = vmatprep.mubr.msk.f32.mxu0 %vm6583_vm0, %v6582_v2  ;;  %v6965_v59 = vld [vmem:[%s7865_s13 + $0x8] sm:$0xff]  ;;  %v6973_v60 = vld [vmem:[%s7865_s13] sm:$0xff] }
 0x1c6   :  { %v509_v0 = vadd.f32 %v6838_v58, %v500_v62  ;;  %6452 = vtanh.f32 %v508_v63 }
 0x1c8   :  { %6454 = vtanh.f32 %v509_v0 }
 0x1d3   :  { %v6453_v1 = vpop.eup %6452 }
 0x1d4   :  { %5969 = vmatpush3.xpose.msk.msra.mxu0 %vm85_vm2, %v6453_v1  ;;  %v6980_v1 = vld [vmem:[%s7870_s18 + $0x18] sm:$0xff] }
 0x1d5   :  { %v6455_v5 = vpop.eup %6454  ;;  %5978 = vmatprep.subr.mxu0 %v6582_v2 }
 0x1d6   :  { %5974 = vmatpush3.xpose.msk.msra.mxu1 %vm85_vm2, %v6455_v5 }
 0x1d7   :  { %5971 = vmatmul.mubr.msk.f32.vlgmr.msra.gmra.mxu0 %vm85_vm2, %v6854_v3  ;;  %5983 = vmatprep.subr.mxu1 %v6582_v2 }
 0x1d8   :  { %5979 = vmatpush3.msra.mxu0 %v6749_v15  ;;  %5980 = vmatprep.mubr.msk.f32.mxu0 %vm6583_vm0, %v6582_v2 }
 0x1d9   :  { %5976 = vmatmul.mubr.msk.f32.vlgmr.msra.gmra.mxu1 %vm85_vm2, %v6854_v3  ;;  %5988 = vmatprep.subr.mxu0 %v6582_v2 }
 0x1da   :  { %5984 = vmatpush3.msra.mxu1 %v6756_v16  ;;  %5985 = vmatprep.mubr.msk.f32.mxu1 %vm6583_vm0, %v6582_v2 }
 0x1db   :  { %5999 = vmatprep.subr.mxu1 %v6582_v2 }
 0x283   :  { %v6871_v6 = vpop.f32.mrf.mxu0 }
 0x285   :  { %v5956_v7 = vpop.f32.mrf.mxu0 }
 0x297   :  { %v584_v13 = vpop.f32.mrf.mxu0 }
 0x298   :  { %v663_v14 = vsel %vm6880_vm7, %v584_v13, -1e+10  ;;  %v6996_v13 = vld [vmem:[%s7870_s18 + $0x8] sm:$0xff] }
 0x299   :  { %v657_v21 = vpop.f32.mrf.mxu1  ;;  %v666_v22 = vsel %vm665_vm8, %v663_v14, -inf  ;;  %v5972_v23 = vpop.f32.mrf.mxu0 }
 0x29a   :  { %v664_v24 = vsel %vm662_vm9, %v657_v21, -1e+10  ;;  %667 = vmax.xlane.f32.xlu0 %v666_v22  ;;  %v7009_v21 = vld [vmem:[%s7868_s16] ss:$0 sm:$0xff]  ;;  %v7015_v22 = vld [vmem:[%s7871_s19 + $0x8] sm:$0xff] }
 0x29b   :  { %v5977_v25 = vpop.f32.mrf.mxu1  ;;  %v669_v26 = vsel %vm665_vm8, %v664_v24, -inf }
 0x29c   :  { %670 = vmax.xlane.f32.xlu1 %v669_v26  ;;  %v7024_v25 = vld [vmem:[%s7871_s19] sm:$0xff] }
 0x323   :  { %v668_v27 = vpop.xlane.xlu0 %667 }
 0x324   :  { %v672_v28 = vsub.f32 %v663_v14, %v668_v27  ;;  %v7003_v14 = vld [vmem:[%s7870_s18] sm:$0xff] }
 0x325   :  { %v671_v29 = vpop.xlane.xlu1 %670 }
 0x326   :  { %v673_v31 = vsub.f32 %v664_v24, %v671_v29  ;;  %v674_v32 = vmul.f32 1.442695, %v672_v28  ;;  %v7040_v28 = vld [vmem:[%s7893_s1] ss:$0 sm:$0xff] }
 0x328   :  { %v676_v33 = vmul.f32 1.442695, %v673_v31 }
 0x32a   :  { %6456 = vpow2.f32 %v676_v33 }
 0x32b   :  { %6458 = vpow2.f32 %v674_v32 }
 0x337   :  { %v6457_v34 = vpop.eup %6456 }
 0x338   :  { %v681_v36 = vsel %vm665_vm8, %v6457_v34, 0.0  ;;  %v6459_v37 = vpop.eup %6458 }
 0x339   :  { %682 = vadd.xlane.f32.xlu0 %v681_v36  ;;  %v678_v38 = vsel %vm665_vm8, %v6459_v37, 0.0 }
 0x33d   :  { %679 = vadd.xlane.f32.xlu0 %v678_v38 }
 0x3c2   :  { %v683_v40 = vpop.xlane.xlu0 %682 }
 0x3c3   :  { %6460 = vrcp.f32 %v683_v40 }
 0x3c6   :  { %v680_v41 = vpop.xlane.xlu0 %679 }
 0x3c7   :  { %6462 = vrcp.f32 %v680_v41 }
 0x3d0   :  { %v6461_v42 = vpop.eup %6460 }
 0x3d1   :  { %v687_v43 = vmul.f32 %v6461_v42, %v6457_v34 }
 0x3d3   :  { %5986 = vmatmul.mubr.msk.f32.vlgmr.msra.gmra.mxu1 %vm688_vm10, %v687_v43 }
 0x3d4   :  { %v6463_v49 = vpop.eup %6462  ;;  %6000 = vmatpush3.msra.mxu1 %v6896_v44  ;;  %6003 = vmatprep.mubr.msk.f32.mxu1 %vm6583_vm0, %v6582_v2 }
 0x3d5   :  { %6001 = vmatprep.subr.mxu1 %v6582_v2  ;;  %v685_v50 = vmul.f32 %v6463_v49, %v6459_v37 }
 0x3d6   :  { %6002 = vmatpush3.msra.mxu1 %v6902_v45 }
 0x3d7   :  { %6006 = vmatprep.subr.mxu1 %v6582_v2  ;;  %5981 = vmatmul.mubr.msk.f32.vlgmr.msra.gmra.mxu0 %vm688_vm10, %v685_v50 }
 0x3d8   :  { %6004 = vmatmul.mubr.msk.f32.vlgmr.msra.gmra.mxu1 %vm918_vm11, %v6871_v6  ;;  %5989 = vmatpush3.msra.mxu0 %v6911_v52 }
 0x3d9   :  { %6007 = vmatpush3.msra.mxu1 %v6917_v53  ;;  %6014 = vmatprep.mubr.msk.f32.mxu1 %vm6583_vm0, %v6582_v2 }
 0x3da   :  { %6008 = vmatprep.subr.mxu1 %v6582_v2  ;;  %5990 = vmatprep.subr.mxu0 %v6582_v2 }
 0x3db   :  { %6009 = vmatpush3.msra.mxu1 %v6926_v54  ;;  %5996 = vmatprep.mubr.msk.f32.mxu0 %vm6583_vm0, %v6582_v2 }
 0x3dc   :  { %6010 = vmatprep.subr.mxu1 %v6582_v2  ;;  %5991 = vmatpush3.msra.mxu0 %v6959_v57 }
 0x3dd   :  { %6011 = vmatpush3.msra.mxu1 %v6936_v55  ;;  %5992 = vmatprep.subr.mxu0 %v6582_v2 }
 0x3de   :  { %6012 = vmatprep.subr.mxu1 %v6582_v2  ;;  %5993 = vmatpush3.msra.mxu0 %v6965_v59 }
 0x3df   :  { %6013 = vmatpush3.msra.mxu1 %v6946_v56  ;;  %5994 = vmatprep.subr.mxu0 %v6582_v2 }
 0x3e0   :  { %6015 = vmatmul.mubr.msk.f32.vlgmr.msra.gmra.mxu1 %vm85_vm2, %v6794_v30  ;;  %6028 = vmatprep.subr.mxu1 %v6582_v2 }
 0x3e1   :  { %6036 = vmatprep.mubr.msk.f32.mxu1 %vm6583_vm0, %v6582_v2  ;;  %5995 = vmatpush3.msra.mxu0 %v6973_v60 }
 0x3e2   :  { %6017 = vmatprep.subr.mxu0 %v6582_v2 }
 0x493   :  { %v831_v61 = vpop.f32.mrf.mxu1 }
 0x494   :  { %v843_v63 = vrot.slane %v831_v61, 7 }
 0x495   :  { %v5987_v62 = vpop.f32.mrf.mxu1 }
 0x496   :  { %v7047_v62 = vld [vmem:[%s7869_s17 + $0x18] sm:$0xff] }
 0x497   :  { %v758_v0 = vpop.f32.mrf.mxu0  ;;  %6029 = vmatpush3.msra.mxu1 %v7047_v62 }
 0x498   :  { %v845_v5 = vsel %vm844_vm12, %v843_v63, %v758_v0  ;;  %v988_v7 = vpop.f32.mrf.mxu1  ;;  %v7052_v63 = vld [vmem:[%s7869_s17 + $0x10] sm:$0xff]  ;;  %6030 = vmatprep.subr.mxu1 %v6582_v2  ;;  %v7059_v0 = vld [vmem:[%s7869_s17 + $0x8] sm:$0xff] }
 0x499   :  { %v5982_v8 = vpop.f32.mrf.mxu0  ;;  %5997 = vmatmul.mubr.msk.f32.vlgmr.msra.gmra.mxu0 %vm85_vm2, %v845_v5  ;;  %6031 = vmatpush3.msra.mxu1 %v7052_v63 }
 0x49a   :  { %v6005_v10 = vpop.f32.mrf.mxu1  ;;  %6018 = vmatpush3.msra.mxu0 %v6980_v1  ;;  %6025 = vmatprep.mubr.msk.f32.mxu0 %vm6583_vm0, %v6582_v2 }
 0x49b   :  { %6019 = vmatprep.subr.mxu0 %v6582_v2  ;;  %6032 = vmatprep.subr.mxu1 %v6582_v2 }
 0x49c   :  { %6020 = vmatpush3.msra.mxu0 %v6987_v9  ;;  %6033 = vmatpush3.msra.mxu1 %v7059_v0 }
 0x49d   :  { %6021 = vmatprep.subr.mxu0 %v6582_v2  ;;  %6034 = vmatprep.subr.mxu1 %v6582_v2 }
 0x49e   :  { %6022 = vmatpush3.msra.mxu0 %v6996_v13 }
 0x49f   :  { %6023 = vmatprep.subr.mxu0 %v6582_v2 }
 0x4a0   :  { %v1077_v23 = vpop.f32.mrf.mxu1  ;;  %6024 = vmatpush3.msra.mxu0 %v7003_v14 }
 0x4a1   :  { %v1078_v24 = vadd.f32 %v7009_v21, %v1077_v23  ;;  %6026 = vmatmul.mubr.msk.f32.vlgmr.msra.gmra.mxu0 %vm85_vm2, %v845_v5  ;;  %6039 = vmatprep.subr.mxu0 %v6582_v2 }
 0x4a2   :  { %v6016_v26 = vpop.f32.mrf.mxu1  ;;  %6040 = vmatpush3.msra.mxu0 %v7015_v22  ;;  %6043 = vmatprep.mubr.msk.f32.mxu0 %vm6583_vm0, %v6582_v2 }
 0x4a3   :  { %1089 = vrot.lane.b32.xlu0 %v1078_v24, %s6586_s15  ;;  %6041 = vmatprep.subr.mxu0 %v6582_v2 }
 0x4a4   :  { %6042 = vmatpush3.msra.mxu0 %v7024_v25 }
 0x4a5   :  { %6044 = vmatmul.mubr.msk.f32.vlgmr.msra.gmra.mxu0 %vm918_vm11, %v6871_v6  ;;  %6046 = vmatprep.subr.mxu0 %v6582_v2 }
 0x4a6   :  { %6052 = vmatprep.mubr.msk.f32.mxu0 %vm6583_vm0, %v6582_v2 }
 0x515   :  { %v1090_v43 = vpop.permute.xlu0 %1089 }
 0x559   :  { %v914_v27 = vpop.f32.mrf.mxu0 }
 0x55a   :  { %v989_v29 = vadd.f32 %v988_v7, %v914_v27  ;;  %v7066_v7 = vld [vmem:[%s7869_s17] sm:$0xff] }
 0x55b   :  { %v5998_v31 = vpop.f32.mrf.mxu0  ;;  %6035 = vmatpush3.msra.mxu1 %v7066_v7 }
 0x55c   :  { %v999_v32 = vadd.f32 %v7040_v28, %v989_v29  ;;  %6055 = vmatprep.subr.mxu1 %v6582_v2 }
 0x55e   :  { %v1081_v33 = vadd.f32 %v1078_v24, %v999_v32 }
 0x560   :  { %v5603_v34 = vmul.f32 -1.442695, %v1081_v33 }
 0x561   :  { %v1184_v36 = vpop.f32.mrf.mxu0 }
 0x562   :  { %6464 = vpow2.f32 %v5603_v34 }
 0x563   :  { %v6027_v6 = vpop.f32.mrf.mxu0 }
 0x565   :  { %v1331_v37 = vpop.f32.mrf.mxu0 }
 0x567   :  { %v6045_v38 = vpop.f32.mrf.mxu0 }
 0x56f   :  { %v6465_v40 = vpop.eup %6464 }
 0x570   :  { %v1085_v41 = vadd.f32 1.0, %v6465_v40 }
 0x572   :  { %6466 = vrcp.f32 %v1085_v41 }
 0x57f   :  { %v6467_v42 = vpop.eup %6466 }
 0x580   :  { %v1092_v49 = vmul.f32 %v6467_v42, %v1090_v43  ;;  %v1099_v10 = vsub.f32 1.0, %v6467_v42 }
 0x582   :  { %1094 = vrot.lane.b32.xlu1 %v1092_v49, %s6586_s15 }
 0x5f4   :  { %v1095_v50 = vpop.permute.xlu1 %1094 }
 0x5f5   :  { %v1097_v61 = vadd.f32 %v1095_v50, %v999_v32  ;;  %v7104_v32 = vld [vmem:[%s7872_s20] ss:$0 sm:$0xff] }
 0x5f7   :  { %6468 = vtanh.f32 %v1097_v61 }
 0x604   :  { %v6469_v5 = vpop.eup %6468 }
 0x605   :  { %1101 = vrot.lane.b32.xlu0 %v6469_v5, %s6587_s0 }
 0x609   :  { %1105 = vrot.lane.b32.xlu0 %v6794_v30, %s6588_s4 }
 0x677   :  { %v1102_v8 = vpop.permute.xlu0 %1101 }
 0x678   :  { %v1104_v24 = vmul.f32 %v1102_v8, %v1099_v10  ;;  %v1382_v10 = vld [vmem:[%s7859_s7 + $0x10] sm:$0x3] }
 0x679   :  { %6047 = vmatpush3.msk.msra.mxu0 %vm315_vm4, %v1382_v10 }
 0x67a   :  { %6048 = vmatprep.subr.mxu0 %v6582_v2 }
 0x67b   :  { %v1106_v23 = vpop.permute.xlu0 %1105  ;;  %6049 = vmatpush3.msra.mxu0 %v6808_v35 }
 0x67c   :  { %v1108_v26 = vmul.f32 %v6467_v42, %v1106_v23  ;;  %6050 = vmatprep.subr.mxu0 %v6582_v2 }
 0x67d   :  { %6051 = vmatpush3.msra.mxu0 %v6818_v39 }
 0x67e   :  { %v7077_v27 = vadd.f32 %v1108_v26, %v1104_v24  ;;  %6066 = vmatprep.subr.mxu0 %v6582_v2  ;;  %v1371_v24 = vstv %s1370_s9  ;;  %s3480_s9 = scalar_select %p3477_p8, 1, 0 }
 0x67f   :  { %vm1372_vm3 = vcmp.eq.s32.totalorder %v1371_v24, 1 }
 0x680   :  { %1189 = vrot.lane.b32.xlu0 %v7077_v27, %s6587_s0 }
 0x6f2   :  { %v7081_v29 = vpop.permute.xlu0 %1189 }
 0x6f3   :  { %6037 = vmatmul.mubr.msk.f32.vlgmr.msra.gmra.mxu1 %vm85_vm2, %v7081_v29 }
 0x6f4   :  { %6056 = vmatpush3.msra.mxu1 %v6761_v17  ;;  %6063 = vmatprep.mubr.msk.f32.mxu1 %vm6583_vm0, %v6582_v2 }
 0x6f5   :  { %6057 = vmatprep.subr.mxu1 %v6582_v2 }
 0x6f6   :  { %6058 = vmatpush3.msra.mxu1 %v6769_v18 }
 0x6f7   :  { %6059 = vmatprep.subr.mxu1 %v6582_v2 }
 0x6f8   :  { %6060 = vmatpush3.msra.mxu1 %v6778_v19 }
 0x6f9   :  { %6061 = vmatprep.subr.mxu1 %v6582_v2 }
 0x6fa   :  { %6062 = vmatpush3.msra.mxu1 %v6785_v20 }
 0x6fb   :  { %6064 = vmatmul.mubr.msk.f32.vlgmr.msra.gmra.mxu1 %vm85_vm2, %v7081_v29  ;;  %6076 = vmatprep.subr.mxu1 %v6582_v2 }
 0x6fc   :  { %6077 = vmatpush3.msra.mxu1 %v6749_v15  ;;  %6078 = vmatprep.mubr.msk.f32.mxu1 %vm6583_vm0, %v6582_v2 }
 0x6fd   :  { %6086 = vmatprep.subr.mxu1 %v6582_v2 }
 0x7b3   :  { %v1259_v30 = vpop.f32.mrf.mxu1 }
 0x7b4   :  { %v1260_v31 = vadd.f32 %v1259_v30, %v1184_v36 }
 0x7b5   :  { %v6038_v33 = vpop.f32.mrf.mxu1 }
 0x7b6   :  { %v1335_v34 = vadd.f32 %v1331_v37, %v1260_v31  ;;  %v5609_v33 = vld [vmem:[%s7890_s2 + $0x2] sm:$0x3] }
 0x7b8   :  { %v1343_v6 = vadd.f32 %v7104_v32, %v1335_v34 }
 0x7ba   :  { %1345 = vst.msk [vmem:[#allocation4 + $0x2] sm:$0x3] %vm276_vm13, %v1343_v6  ;;  %v1346_v38 = vsel %vm276_vm13, %v1343_v6, -inf }
 0x7bb   :  { %v1529_v40 = vpop.f32.mrf.mxu1  ;;  %1347 = vmax.xlane.f32.xlu0 %v1346_v38 }
 0x7bc   :  { %v1540_v38 = vrot.slane %v1529_v40, %v6825_v47 }
 0x7bd   :  { %v6065_v41 = vpop.f32.mrf.mxu1 }
 0x7be   :  { %v1541_v41 = vcombine.high %v1540_v38, %v1540_v38 }
 0x844   :  { %v1348_v42 = vpop.xlane.xlu0 %1347 }
 0x845   :  { %vm1349_vm14 = vcmp.eq.f32.partialorder %v1343_v6, %v1348_v42  ;;  %v1548_v42 = vrot.slane %v1540_v38, %v6825_v47 }
 0x846   :  { %v1350_v36 = vsel %vm1349_vm14, %v6714_v4, 18 }
 0x847   :  { %v1351_v43 = vsel %vm276_vm13, %v1350_v36, 2147483647  ;;  %v1555_v36 = vrot.slane %v1541_v41, %v6825_v47 }
 0x848   :  { %v1353_v49 = vshra.s32 %v1351_v43, 16  ;;  %v1352_v61 = vand.u32 65535, %v1351_v43  ;;  %v1559_v43 = vrot.slane %v1548_v42, %v6830_v51 }
 0x84a   :  { %v1355_v50 = vcvt.s32.f32 %v1353_v49  ;;  %v1354_v5 = vcvt.s32.f32 %v1352_v61  ;;  %v1563_v49 = vrot.slane %v1555_v36, %v6830_v51 }
 0x84c   :  { %1356 = vmin.xlane.f32.xlu1 %v1355_v50  ;;  %v1567_v61 = vadd.f32 %v6823_v46, %v1563_v49 }
 0x8d5   :  { %v1357_v37 = vpop.xlane.xlu1 %1356 }
 0x8d6   :  { %vm1358_vm15 = vcmp.eq.f32.partialorder %v1355_v50, %v1357_v37  ;;  %v1363_v23 = vcvt.f32.s32 %v1357_v37  ;;  %v1566_v50 = vadd.f32 %v1559_v43, %v6827_v48 }
 0x8d7   :  { %v1359_v8 = vsel %vm1358_vm15, %v1354_v5, inf  ;;  %v1576_v5 = vadd.f32 %v6838_v58, %v1567_v61 }
 0x8d8   :  { %1360 = vmin.xlane.f32.xlu0 %v1359_v8  ;;  %v1364_v30 = vshll.u32 %v1363_v23, 16  ;;  %v1575_v37 = vadd.f32 %v6838_v58, %v1566_v50 }
 0x8da   :  { %6470 = vtanh.f32 %v1575_v37 }
 0x8db   :  { %6472 = vtanh.f32 %v1576_v5 }
 0x8e7   :  { %v6471_v10 = vpop.eup %6470 }
 0x8e8   :  { %v6473_v23 = vpop.eup %6472 }
 0x961   :  { %v1361_v26 = vpop.xlane.xlu0 %1360 }
 0x962   :  { %v1362_v31 = vcvt.f32.s32 %v1361_v26 }
 0x964   :  { %v1365_v34 = vadd.s32 %v1364_v30, %v1362_v31 }
 0x966   :  { %v1373_v6 = vsel %vm1372_vm3, %v5609_v33, %v1365_v34 }
 0x967   :  { %1375 = vperm.xlu0 %6449, %v1373_v6  }
 0x9e2   :  { %v1376_v40 = vpop.permute.xlu0 %1375 }
 0x9e3   :  { %vm1377_vm5 = vcmp.eq.s32.totalorder %v6714_v4, %v1376_v40 }
 0x9e4   :  { %v5610_v8 = vsel %vm1377_vm5, 1.0, %v6582_v2 }
 0x9e5   :  { %6053 = vmatmul.mubr.msk.f32.vlgmr.msra.gmra.mxu0 %vm280_vm1, %v5610_v8 }
 0x9e6   :  { %6067 = vmatpush3.xpose.msk.msra.mxu0 %vm85_vm2, %v6471_v10  ;;  %6068 = vmatprep.mubr.msk.f32.mxu0 %vm6583_vm0, %v6582_v2 }
 0x9e7   :  { %6071 = vmatprep.subr.mxu0 %v6582_v2 }
 0x9e9   :  { %6069 = vmatmul.mubr.msk.f32.vlgmr.msra.gmra.mxu0 %vm85_vm2, %v6854_v3 }
 0x9ea   :  { %6072 = vmatpush3.xpose.msk.msra.mxu0 %vm85_vm2, %v6473_v23  ;;  %6073 = vmatprep.mubr.msk.f32.mxu0 %vm6583_vm0, %v6582_v2 }
 0x9eb   :  { %6081 = vmatprep.subr.mxu0 %v6582_v2 }
 0x9ed   :  { %6074 = vmatmul.mubr.msk.f32.vlgmr.msra.gmra.mxu0 %vm85_vm2, %v6854_v3 }
 0x9ee   :  { %6082 = vmatpush3.msra.mxu0 %v6756_v16  ;;  %6083 = vmatprep.mubr.msk.f32.mxu0 %vm6583_vm0, %v6582_v2 }
 0x9ef   :  { %6097 = vmatprep.subr.mxu0 %v6582_v2 }
 0xaa5   :  { %v7151_v24 = vpop.f32.mrf.mxu0 }
 0xaa7   :  { %v6054_v26 = vpop.f32.mrf.mxu0 }
 0xaa9   :  { %v1648_v30 = vpop.f32.mrf.mxu0 }
 0xaaa   :  { %v1725_v16 = vsel %vm6880_vm7, %v1648_v30, -1e+10 }
 0xaab   :  { %v6070_v31 = vpop.f32.mrf.mxu0  ;;  %v1727_v41 = vsel %vm665_vm8, %v1725_v16, -inf }
 0xaad   :  { %v1721_v33 = vpop.f32.mrf.mxu0 }
 0xaae   :  { %v1726_v34 = vsel %vm662_vm9, %v1721_v33, -1e+10 }
 0xaaf   :  { %v6075_v6 = vpop.f32.mrf.mxu0  ;;  %v1730_v38 = vsel %vm665_vm8, %v1726_v34, -inf }
 0xab0   :  { %1731 = vmax.xlane.f32.xlu1 %v1730_v38 }
 0xab4   :  { %1728 = vmax.xlane.f32.xlu1 %v1727_v41 }
 0xb39   :  { %v1732_v42 = vpop.xlane.xlu1 %1731 }
 0xb3a   :  { %v1734_v36 = vsub.f32 %v1726_v34, %v1732_v42 }
 0xb3c   :  { %v1737_v43 = vmul.f32 1.442695, %v1734_v36 }
 0xb3d   :  { %v1729_v49 = vpop.xlane.xlu1 %1728 }
 0xb3e   :  { %6474 = vpow2.f32 %v1737_v43  ;;  %v1733_v50 = vsub.f32 %v1725_v16, %v1729_v49 }
 0xb40   :  { %v1735_v61 = vmul.f32 1.442695, %v1733_v50 }
 0xb42   :  { %6476 = vpow2.f32 %v1735_v61 }
 0xb4b   :  { %v6475_v37 = vpop.eup %6474 }
 0xb4c   :  { %v1742_v5 = vsel %vm665_vm8, %v6475_v37, 0.0 }
 0xb4d   :  { %1743 = vadd.xlane.f32.xlu1 %v1742_v5 }
 0xb4f   :  { %v6477_v40 = vpop.eup %6476 }
 0xb50   :  { %v1739_v8 = vsel %vm665_vm8, %v6477_v40, 0.0 }
 0xb51   :  { %1740 = vadd.xlane.f32.xlu1 %v1739_v8 }
 0xbd6   :  { %v1744_v10 = vpop.xlane.xlu1 %1743 }
 0xbd7   :  { %6478 = vrcp.f32 %v1744_v10 }
 0xbda   :  { %v1741_v23 = vpop.xlane.xlu1 %1740 }
 0xbdb   :  { %6480 = vrcp.f32 %v1741_v23 }
 0xbe4   :  { %v6479_v26 = vpop.eup %6478 }
 0xbe5   :  { %v1748_v30 = vmul.f32 %v6479_v26, %v6475_v37 }
 0xbe7   :  { %6084 = vmatmul.mubr.msk.f32.vlgmr.msra.gmra.mxu0 %vm688_vm10, %v1748_v30 }
 0xbe8   :  { %v6481_v31 = vpop.eup %6480  ;;  %6098 = vmatpush3.msra.mxu0 %v6896_v44  ;;  %6101 = vmatprep.mubr.msk.f32.mxu0 %vm6583_vm0, %v6582_v2 }
 0xbe9   :  { %6099 = vmatprep.subr.mxu0 %v6582_v2  ;;  %v1746_v33 = vmul.f32 %v6481_v31, %v6477_v40 }
 0xbea   :  { %6100 = vmatpush3.msra.mxu0 %v6902_v45 }
 0xbeb   :  { %6104 = vmatprep.subr.mxu0 %v6582_v2  ;;  %6079 = vmatmul.mubr.msk.f32.vlgmr.msra.gmra.mxu1 %vm688_vm10, %v1746_v33 }
 0xbec   :  { %6102 = vmatmul.mubr.msk.f32.vlgmr.msra.gmra.mxu0 %vm918_vm11, %v7151_v24  ;;  %6087 = vmatpush3.msra.mxu1 %v6911_v52 }
 0xbed   :  { %6105 = vmatpush3.msra.mxu0 %v6917_v53  ;;  %6112 = vmatprep.mubr.msk.f32.mxu0 %vm6583_vm0, %v6582_v2 }
 0xbee   :  { %6106 = vmatprep.subr.mxu0 %v6582_v2  ;;  %6088 = vmatprep.subr.mxu1 %v6582_v2 }
 0xbef   :  { %6107 = vmatpush3.msra.mxu0 %v6926_v54  ;;  %6089 = vmatpush3.msra.mxu1 %v6959_v57 }
 0xbf0   :  { %6108 = vmatprep.subr.mxu0 %v6582_v2  ;;  %6090 = vmatprep.subr.mxu1 %v6582_v2 }
 0xbf1   :  { %6109 = vmatpush3.msra.mxu0 %v6936_v55  ;;  %6091 = vmatpush3.msra.mxu1 %v6965_v59 }
 0xbf2   :  { %6110 = vmatprep.subr.mxu0 %v6582_v2  ;;  %6092 = vmatprep.subr.mxu1 %v6582_v2 }
 0xbf3   :  { %6111 = vmatpush3.msra.mxu0 %v6946_v56  ;;  %6093 = vmatpush3.msra.mxu1 %v6973_v60 }
 0xbf4   :  { %6113 = vmatmul.mubr.msk.f32.vlgmr.msra.gmra.mxu0 %vm85_vm2, %v7081_v29  ;;  %6094 = vmatprep.mubr.msk.f32.mxu1 %vm6583_vm0, %v6582_v2 }
 0xbf5   :  { %6115 = vmatprep.subr.mxu1 %v6582_v2  ;;  %6126 = vmatprep.subr.mxu0 %v6582_v2 }
 0xbf6   :  { %6127 = vmatpush3.msra.mxu0 %v7047_v62  ;;  %6134 = vmatprep.mubr.msk.f32.mxu0 %vm6583_vm0, %v6582_v2 }
 0xbf7   :  { %6128 = vmatprep.subr.mxu0 %v6582_v2 }
 0xbf8   :  { %6129 = vmatpush3.msra.mxu0 %v7052_v63 }
 0xbf9   :  { %6130 = vmatprep.subr.mxu0 %v6582_v2 }
 0xbfa   :  { %6131 = vmatpush3.msra.mxu0 %v7059_v0 }
 0xbfb   :  { %6132 = vmatprep.subr.mxu0 %v6582_v2 }
 0xbfc   :  { %6133 = vmatpush3.msra.mxu0 %v7066_v7 }
 0xbfd   :  { %6153 = vmatprep.subr.mxu0 %v6582_v2 }
 0xca7   :  { %v1891_v29 = vpop.f32.mrf.mxu0 }
 0xca8   :  { %v1903_v6 = vrot.slane %v1891_v29, 7 }
 0xca9   :  { %v6085_v34 = vpop.f32.mrf.mxu0 }
 0xcab   :  { %v1818_v38 = vpop.f32.mrf.mxu1 }
 0xcac   :  { %v1904_v16 = vsel %vm844_vm12, %v1903_v6, %v1818_v38  ;;  %v2046_v41 = vpop.f32.mrf.mxu0 }
 0xcad   :  { %v6080_v42 = vpop.f32.mrf.mxu1  ;;  %6095 = vmatmul.mubr.msk.f32.vlgmr.msra.gmra.mxu1 %vm85_vm2, %v1904_v16 }
 0xcae   :  { %v6103_v36 = vpop.f32.mrf.mxu0  ;;  %6116 = vmatpush3.msra.mxu1 %v6980_v1  ;;  %6123 = vmatprep.mubr.msk.f32.mxu1 %vm6583_vm0, %v6582_v2 }
 0xcaf   :  { %6117 = vmatprep.subr.mxu1 %v6582_v2 }
 0xcb0   :  { %6118 = vmatpush3.msra.mxu1 %v6987_v9 }
 0xcb1   :  { %6119 = vmatprep.subr.mxu1 %v6582_v2 }
 0xcb2   :  { %6120 = vmatpush3.msra.mxu1 %v6996_v13 }
 0xcb3   :  { %6121 = vmatprep.subr.mxu1 %v6582_v2 }
 0xcb4   :  { %v2135_v43 = vpop.f32.mrf.mxu0  ;;  %6122 = vmatpush3.msra.mxu1 %v7003_v14 }
 0xcb5   :  { %v2136_v49 = vadd.f32 %v7009_v21, %v2135_v43  ;;  %6124 = vmatmul.mubr.msk.f32.vlgmr.msra.gmra.mxu1 %vm85_vm2, %v1904_v16  ;;  %6137 = vmatprep.subr.mxu1 %v6582_v2 }
 0xcb6   :  { %v6114_v50 = vpop.f32.mrf.mxu0  ;;  %6138 = vmatpush3.msra.mxu1 %v7015_v22  ;;  %6141 = vmatprep.mubr.msk.f32.mxu1 %vm6583_vm0, %v6582_v2 }
 0xcb7   :  { %2147 = vrot.lane.b32.xlu1 %v2136_v49, %s6586_s15  ;;  %6139 = vmatprep.subr.mxu1 %v6582_v2 }
 0xcb8   :  { %6140 = vmatpush3.msra.mxu1 %v7024_v25 }
 0xcb9   :  { %6142 = vmatmul.mubr.msk.f32.vlgmr.msra.gmra.mxu1 %vm918_vm11, %v7151_v24  ;;  %6144 = vmatprep.subr.mxu1 %v6582_v2 }
 0xcba   :  { %6150 = vmatprep.mubr.msk.f32.mxu1 %vm6583_vm0, %v6582_v2 }
 0xd29   :  { %v2148_v34 = vpop.permute.xlu1 %2147 }
 0xd6d   :  { %v1973_v61 = vpop.f32.mrf.mxu1 }
 0xd6e   :  { %v2047_v37 = vadd.f32 %v2046_v41, %v1973_v61 }
 0xd6f   :  { %v6096_v5 = vpop.f32.mrf.mxu1 }
 0xd70   :  { %v2057_v40 = vadd.f32 %v7040_v28, %v2047_v37 }
 0xd72   :  { %v2139_v8 = vadd.f32 %v2136_v49, %v2057_v40 }
 0xd74   :  { %v5626_v10 = vmul.f32 -1.442695, %v2139_v8 }
 0xd75   :  { %v2239_v23 = vpop.f32.mrf.mxu1 }
 0xd76   :  { %6482 = vpow2.f32 %v5626_v10 }
 0xd77   :  { %v6125_v26 = vpop.f32.mrf.mxu1 }
 0xd79   :  { %v2386_v30 = vpop.f32.mrf.mxu1 }
 0xd7b   :  { %v6143_v31 = vpop.f32.mrf.mxu1 }
 0xd83   :  { %v6483_v33 = vpop.eup %6482 }
 0xd84   :  { %v2143_v29 = vadd.f32 1.0, %v6483_v33 }
 0xd86   :  { %6484 = vrcp.f32 %v2143_v29 }
 0xd93   :  { %v6485_v24 = vpop.eup %6484 }
 0xd94   :  { %v2150_v6 = vmul.f32 %v6485_v24, %v2148_v34  ;;  %v2157_v42 = vsub.f32 1.0, %v6485_v24  ;;  %v2163_v43 = vmul.f32 %v6485_v24, %v7077_v27  ;;  %v2437_v24 = vld [vmem:[%s7859_s7 + $0x10] sm:$0x3] }
 0xd95   :  { %6145 = vmatpush3.msk.msra.mxu1 %vm315_vm4, %v2437_v24 }
 0xd96   :  { %2152 = vrot.lane.b32.xlu1 %v2150_v6, %s6586_s15  ;;  %6146 = vmatprep.subr.mxu1 %v6582_v2  ;;  %v2426_v6 = vstv %s2425_s29 }
 0xd97   :  { %6147 = vmatpush3.msra.mxu1 %v6808_v35  ;;  %vm2427_vm15 = vcmp.eq.s32.totalorder %v2426_v6, 1 }
 0xd98   :  { %6148 = vmatprep.subr.mxu1 %v6582_v2 }
 0xd99   :  { %6149 = vmatpush3.msra.mxu1 %v6818_v39 }
 0xd9a   :  { %6164 = vmatprep.subr.mxu1 %v6582_v2 }
 0xe08   :  { %v2153_v38 = vpop.permute.xlu1 %2152 }
 0xe09   :  { %v2155_v16 = vadd.f32 %v2153_v38, %v2057_v40 }
 0xe0b   :  { %6486 = vtanh.f32 %v2155_v16 }
 0xe18   :  { %v6487_v41 = vpop.eup %6486 }
 0xe19   :  { %2159 = vrot.lane.b32.xlu1 %v6487_v41, %s6587_s0 }
 0xe8b   :  { %v2160_v36 = vpop.permute.xlu1 %2159 }
 0xe8c   :  { %v2162_v49 = vmul.f32 %v2160_v36, %v2157_v42  ;;  %v5632_v42 = vld [vmem:[%s7890_s2 + $0x4] sm:$0x3] }
 0xe8e   :  { %v7232_v50 = vadd.f32 %v2163_v43, %v2162_v49 }
 0xe90   :  { %2244 = vrot.lane.b32.xlu0 %v7232_v50, %s6587_s0 }
 0xf02   :  { %v7236_v61 = vpop.permute.xlu0 %2244 }
 0xf03   :  { %6135 = vmatmul.mubr.msk.f32.vlgmr.msra.gmra.mxu0 %vm85_vm2, %v7236_v61 }
 0xf04   :  { %6154 = vmatpush3.msra.mxu0 %v6761_v17  ;;  %6161 = vmatprep.mubr.msk.f32.mxu0 %vm6583_vm0, %v6582_v2 }
 0xf05   :  { %6155 = vmatprep.subr.mxu0 %v6582_v2 }
 0xf06   :  { %6156 = vmatpush3.msra.mxu0 %v6769_v18 }
 0xf07   :  { %6157 = vmatprep.subr.mxu0 %v6582_v2 }
 0xf08   :  { %6158 = vmatpush3.msra.mxu0 %v6778_v19 }
 0xf09   :  { %6159 = vmatprep.subr.mxu0 %v6582_v2 }
 0xf0a   :  { %6160 = vmatpush3.msra.mxu0 %v6785_v20 }
 0xf0b   :  { %6162 = vmatmul.mubr.msk.f32.vlgmr.msra.gmra.mxu0 %vm85_vm2, %v7236_v61  ;;  %6174 = vmatprep.subr.mxu0 %v6582_v2 }
 0xf0c   :  { %6175 = vmatpush3.msra.mxu0 %v6749_v15  ;;  %6176 = vmatprep.mubr.msk.f32.mxu0 %vm6583_vm0, %v6582_v2 }
 0xf0d   :  { %6184 = vmatprep.subr.mxu0 %v6582_v2 }
 0xfc3   :  { %v2314_v17 = vpop.f32.mrf.mxu0 }
 0xfc4   :  { %v2315_v18 = vadd.f32 %v2314_v17, %v2239_v23 }
 0xfc5   :  { %v6136_v27 = vpop.f32.mrf.mxu0 }
 0xfc6   :  { %v2390_v19 = vadd.f32 %v2386_v30, %v2315_v18 }
 0xfc8   :  { %v2398_v37 = vadd.f32 %v7104_v32, %v2390_v19 }
 0xfca   :  { %2400 = vst.msk [vmem:[#allocation4 + $0x4] sm:$0x3] %vm276_vm13, %v2398_v37  ;;  %v2401_v20 = vsel %vm276_vm13, %v2398_v37, -inf }
 0xfcb   :  { %v2584_v5 = vpop.f32.mrf.mxu0  ;;  %2402 = vmax.xlane.f32.xlu1 %v2401_v20 }
 0xfcc   :  { %v2595_v39 = vrot.slane %v2584_v5, %v6825_v47 }
 0xfcd   :  { %v6163_v40 = vpop.f32.mrf.mxu0 }
 0xfce   :  { %v2596_v43 = vcombine.high %v2595_v39, %v2595_v39  ;;  %v2603_v49 = vrot.slane %v2595_v39, %v6825_v47 }
 0xfd0   :  { %v2610_v17 = vrot.slane %v2596_v43, %v6825_v47  ;;  %v2614_v18 = vrot.slane %v2603_v49, %v6830_v51 }
 0xfd2   :  { %v2618_v27 = vrot.slane %v2610_v17, %v6830_v51  ;;  %v2621_v19 = vadd.f32 %v2614_v18, %v6827_v48 }
 0xfd4   :  { %v2630_v20 = vadd.f32 %v6838_v58, %v2621_v19 }
 0xfd6   :  { %6488 = vtanh.f32 %v2630_v20 }
0x1054   :  { %v2403_v8 = vpop.xlane.xlu1 %2402 }
0x1055   :  { %vm2404_vm6 = vcmp.eq.f32.partialorder %v2398_v37, %v2403_v8  ;;  %v2622_v37 = vadd.f32 %v6823_v46, %v2618_v27 }
0x1056   :  { %v2405_v15 = vsel %vm2404_vm6, %v6714_v4, 18 }
0x1057   :  { %v2406_v10 = vsel %vm276_vm13, %v2405_v15, 2147483647  ;;  %v2631_v40 = vadd.f32 %v6838_v58, %v2622_v37  ;;  %v6489_v15 = vpop.eup %6488  ;;  %v7300_v58 = vld [vmem:[%s7888_s5 + $0x8] sm:$0xff] }
0x1058   :  { %v2408_v26 = vshra.s32 %v2406_v10, 16  ;;  %v2407_v23 = vand.u32 65535, %v2406_v10 }
0x1059   :  { %6490 = vtanh.f32 %v2631_v40 }
0x105a   :  { %v2410_v31 = vcvt.s32.f32 %v2408_v26  ;;  %v2409_v33 = vcvt.s32.f32 %v2407_v23 }
0x105c   :  { %2411 = vmin.xlane.f32.xlu0 %v2410_v31 }
0x1066   :  { %v6491_v10 = vpop.eup %6490 }
0x10e5   :  { %v2412_v30 = vpop.xlane.xlu0 %2411 }
0x10e6   :  { %vm2413_vm14 = vcmp.eq.f32.partialorder %v2410_v31, %v2412_v30  ;;  %v2418_v34 = vcvt.f32.s32 %v2412_v30 }
0x10e7   :  { %v2414_v29 = vsel %vm2413_vm14, %v2409_v33, inf }
0x10e8   :  { %2415 = vmin.xlane.f32.xlu0 %v2414_v29  ;;  %v2419_v16 = vshll.u32 %v2418_v34, 16 }
0x1171   :  { %v2416_v38 = vpop.xlane.xlu0 %2415 }
0x1172   :  { %v2417_v41 = vcvt.f32.s32 %v2416_v38 }
0x1174   :  { %v2420_v35 = vadd.s32 %v2419_v16, %v2417_v41 }
0x1176   :  { %v2428_v36 = vsel %vm2427_vm15, %v5632_v42, %v2420_v35 }
0x1177   :  { %2430 = vperm.xlu1 %6448, %v2428_v36  }
0x11f2   :  { %v2431_v5 = vpop.permute.xlu1 %2430 }
0x11f3   :  { %vm2432_vm3 = vcmp.eq.s32.totalorder %v6714_v4, %v2431_v5 }
0x11f4   :  { %v5633_v8 = vsel %vm2432_vm3, 1.0, %v6582_v2 }
0x11f5   :  { %6151 = vmatmul.mubr.msk.f32.vlgmr.msra.gmra.mxu1 %vm280_vm1, %v5633_v8 }
0x11f6   :  { %6165 = vmatpush3.xpose.msk.msra.mxu1 %vm85_vm2, %v6489_v15  ;;  %6166 = vmatprep.mubr.msk.f32.mxu1 %vm6583_vm0, %v6582_v2 }
0x11f7   :  { %6169 = vmatprep.subr.mxu1 %v6582_v2 }
0x11f9   :  { %6167 = vmatmul.mubr.msk.f32.vlgmr.msra.gmra.mxu1 %vm85_vm2, %v6854_v3 }
0x11fa   :  { %6170 = vmatpush3.xpose.msk.msra.mxu1 %vm85_vm2, %v6491_v10  ;;  %6171 = vmatprep.mubr.msk.f32.mxu1 %vm6583_vm0, %v6582_v2 }
0x11fb   :  { %6179 = vmatprep.subr.mxu1 %v6582_v2 }
0x11fd   :  { %6172 = vmatmul.mubr.msk.f32.vlgmr.msra.gmra.mxu1 %vm85_vm2, %v6854_v3 }
0x11fe   :  { %6180 = vmatpush3.msra.mxu1 %v7300_v58  ;;  %6181 = vmatprep.mubr.msk.f32.mxu1 %vm6583_vm0, %v6582_v2 }
0x11ff   :  { %6195 = vmatprep.subr.mxu1 %v6582_v2 }
0x12b5   :  { %v7306_v26 = vpop.f32.mrf.mxu1 }
0x12b7   :  { %v6152_v31 = vpop.f32.mrf.mxu1 }
0x12b9   :  { %v2703_v23 = vpop.f32.mrf.mxu1 }
0x12ba   :  { %v2780_v34 = vsel %vm6880_vm7, %v2703_v23, -1e+10 }
0x12bb   :  { %v6168_v30 = vpop.f32.mrf.mxu1  ;;  %v2782_v6 = vsel %vm665_vm8, %v2780_v34, -inf }
0x12bd   :  { %v2776_v33 = vpop.f32.mrf.mxu1 }
0x12be   :  { %v2781_v3 = vsel %vm662_vm9, %v2776_v33, -1e+10 }
0x12bf   :  { %v6173_v29 = vpop.f32.mrf.mxu1  ;;  %v2785_v24 = vsel %vm665_vm8, %v2781_v3, -inf }
0x12c0   :  { %2786 = vmax.xlane.f32.xlu0 %v2785_v24  ;;  %v7394_v24 = vld [vmem:[%s7860_s8 + $0x18] sm:$0xff] }
0x12c4   :  { %2783 = vmax.xlane.f32.xlu0 %v2782_v6  ;;  %v7412_v6 = vld [vmem:[%s7860_s8 + $0x8] sm:$0xff] }
0x1349   :  { %v2787_v38 = vpop.xlane.xlu0 %2786 }
0x134a   :  { %v2789_v16 = vsub.f32 %v2781_v3, %v2787_v38  ;;  %v7419_v38 = vld [vmem:[%s7860_s8] sm:$0xff] }
0x134c   :  { %v2792_v41 = vmul.f32 1.442695, %v2789_v16  ;;  %v7430_v16 = vld [vmem:[%s7888_s5] sm:$0xff] }
0x134d   :  { %v2784_v42 = vpop.xlane.xlu0 %2783 }
0x134e   :  { %6492 = vpow2.f32 %v2792_v41  ;;  %v2788_v35 = vsub.f32 %v2780_v34, %v2784_v42 }
0x1350   :  { %v2790_v36 = vmul.f32 1.442695, %v2788_v35 }
0x1352   :  { %6494 = vpow2.f32 %v2790_v36 }
0x135b   :  { %v6493_v39 = vpop.eup %6492 }
0x135c   :  { %v2797_v43 = vsel %vm665_vm8, %v6493_v39, 0.0 }
0x135d   :  { %2798 = vadd.xlane.f32.xlu0 %v2797_v43 }
0x135f   :  { %v6495_v49 = vpop.eup %6494 }
0x1360   :  { %v2794_v17 = vsel %vm665_vm8, %v6495_v49, 0.0 }
0x1361   :  { %2795 = vadd.xlane.f32.xlu0 %v2794_v17 }
0x13e6   :  { %v2799_v18 = vpop.xlane.xlu0 %2798 }
0x13e7   :  { %6496 = vrcp.f32 %v2799_v18 }
0x13ea   :  { %v2796_v27 = vpop.xlane.xlu0 %2795 }
0x13eb   :  { %6498 = vrcp.f32 %v2796_v27 }
0x13f4   :  { %v6497_v19 = vpop.eup %6496 }
0x13f5   :  { %v2803_v37 = vmul.f32 %v6497_v19, %v6493_v39 }
0x13f7   :  { %6182 = vmatmul.mubr.msk.f32.vlgmr.msra.gmra.mxu1 %vm688_vm10, %v2803_v37 }
0x13f8   :  { %v6499_v20 = vpop.eup %6498  ;;  %6196 = vmatpush3.msra.mxu1 %v6896_v44  ;;  %6199 = vmatprep.mubr.msk.f32.mxu1 %vm6583_vm0, %v6582_v2 }
0x13f9   :  { %6197 = vmatprep.subr.mxu1 %v6582_v2  ;;  %v2801_v40 = vmul.f32 %v6499_v20, %v6495_v49 }
0x13fa   :  { %6198 = vmatpush3.msra.mxu1 %v6902_v45 }
0x13fb   :  { %6202 = vmatprep.subr.mxu1 %v6582_v2  ;;  %6177 = vmatmul.mubr.msk.f32.vlgmr.msra.gmra.mxu0 %vm688_vm10, %v2801_v40 }
0x13fc   :  { %6200 = vmatmul.mubr.msk.f32.vlgmr.msra.gmra.mxu1 %vm918_vm11, %v7306_v26  ;;  %6185 = vmatpush3.msra.mxu0 %v6911_v52 }
0x13fd   :  { %6203 = vmatpush3.msra.mxu1 %v6917_v53  ;;  %6210 = vmatprep.mubr.msk.f32.mxu1 %vm6583_vm0, %v6582_v2 }
0x13fe   :  { %6204 = vmatprep.subr.mxu1 %v6582_v2  ;;  %6186 = vmatprep.subr.mxu0 %v6582_v2 }
0x13ff   :  { %6205 = vmatpush3.msra.mxu1 %v6926_v54  ;;  %6187 = vmatpush3.msra.mxu0 %v6959_v57 }
0x1400   :  { %6206 = vmatprep.subr.mxu1 %v6582_v2  ;;  %6188 = vmatprep.subr.mxu0 %v6582_v2 }
0x1401   :  { %6207 = vmatpush3.msra.mxu1 %v6936_v55  ;;  %6189 = vmatpush3.msra.mxu0 %v6965_v59 }
0x1402   :  { %6208 = vmatprep.subr.mxu1 %v6582_v2  ;;  %6190 = vmatprep.subr.mxu0 %v6582_v2 }
0x1403   :  { %6209 = vmatpush3.msra.mxu1 %v6946_v56  ;;  %6191 = vmatpush3.msra.mxu0 %v6973_v60 }
0x1404   :  { %6211 = vmatmul.mubr.msk.f32.vlgmr.msra.gmra.mxu1 %vm85_vm2, %v7236_v61  ;;  %6192 = vmatprep.mubr.msk.f32.mxu0 %vm6583_vm0, %v6582_v2 }
0x1405   :  { %6213 = vmatprep.subr.mxu0 %v6582_v2  ;;  %6224 = vmatprep.subr.mxu1 %v6582_v2 }
0x1406   :  { %6225 = vmatpush3.msra.mxu1 %v7047_v62  ;;  %6232 = vmatprep.mubr.msk.f32.mxu1 %vm6583_vm0, %v6582_v2 }
0x1407   :  { %6226 = vmatprep.subr.mxu1 %v6582_v2 }
0x1408   :  { %6227 = vmatpush3.msra.mxu1 %v7052_v63 }
0x1409   :  { %6228 = vmatprep.subr.mxu1 %v6582_v2 }
0x140a   :  { %6229 = vmatpush3.msra.mxu1 %v7059_v0 }
0x140b   :  { %6230 = vmatprep.subr.mxu1 %v6582_v2 }
0x140c   :  { %6231 = vmatpush3.msra.mxu1 %v7066_v7 }
0x140d   :  { %6251 = vmatprep.subr.mxu1 %v6582_v2 }
0x14b7   :  { %v2946_v44 = vpop.f32.mrf.mxu1 }
0x14b8   :  { %v2958_v52 = vrot.slane %v2946_v44, 7 }
0x14b9   :  { %v6183_v45 = vpop.f32.mrf.mxu1 }
0x14bb   :  { %v2873_v53 = vpop.f32.mrf.mxu0 }
0x14bc   :  { %v2959_v54 = vsel %vm844_vm12, %v2958_v52, %v2873_v53  ;;  %v3101_v55 = vpop.f32.mrf.mxu1  ;;  %v3492_v52 = vld [vmem:[%s7859_s7 + $0x10] sm:$0x3]  ;;  %v7447_v53 = vld [vmem:[%s7859_s7 + $0x8] sm:$0xff] }
0x14bd   :  { %v6178_v56 = vpop.f32.mrf.mxu0  ;;  %6193 = vmatmul.mubr.msk.f32.vlgmr.msra.gmra.mxu0 %vm85_vm2, %v2959_v54 }
0x14be   :  { %v6201_v57 = vpop.f32.mrf.mxu1  ;;  %6214 = vmatpush3.msra.mxu0 %v6980_v1  ;;  %6221 = vmatprep.mubr.msk.f32.mxu0 %vm6583_vm0, %v6582_v2 }
0x14bf   :  { %6215 = vmatprep.subr.mxu0 %v6582_v2 }
0x14c0   :  { %6216 = vmatpush3.msra.mxu0 %v6987_v9 }
0x14c1   :  { %6217 = vmatprep.subr.mxu0 %v6582_v2 }
0x14c2   :  { %6218 = vmatpush3.msra.mxu0 %v6996_v13 }
0x14c3   :  { %6219 = vmatprep.subr.mxu0 %v6582_v2 }
0x14c4   :  { %v3190_v59 = vpop.f32.mrf.mxu1  ;;  %6220 = vmatpush3.msra.mxu0 %v7003_v14 }
0x14c5   :  { %v3191_v60 = vadd.f32 %v7009_v21, %v3190_v59  ;;  %6222 = vmatmul.mubr.msk.f32.vlgmr.msra.gmra.mxu0 %vm85_vm2, %v2959_v54  ;;  %6235 = vmatprep.subr.mxu0 %v6582_v2 }
0x14c6   :  { %v6212_v1 = vpop.f32.mrf.mxu1  ;;  %6236 = vmatpush3.msra.mxu0 %v7015_v22  ;;  %6239 = vmatprep.mubr.msk.f32.mxu0 %vm6583_vm0, %v6582_v2 }
0x14c7   :  { %3202 = vrot.lane.b32.xlu1 %v3191_v60, %s6586_s15  ;;  %6237 = vmatprep.subr.mxu0 %v6582_v2 }
0x14c8   :  { %6238 = vmatpush3.msra.mxu0 %v7024_v25 }
0x14c9   :  { %6240 = vmatmul.mubr.msk.f32.vlgmr.msra.gmra.mxu0 %vm918_vm11, %v7306_v26  ;;  %6242 = vmatprep.subr.mxu0 %v6582_v2 }
0x14ca   :  { %6248 = vmatprep.mubr.msk.f32.mxu0 %vm6583_vm0, %v6582_v2  ;;  %6243 = vmatpush3.msk.msra.mxu0 %vm315_vm4, %v3492_v52 }
0x14cb   :  { %6244 = vmatprep.subr.mxu0 %v6582_v2 }
0x14cc   :  { %6245 = vmatpush3.msra.mxu0 %v7447_v53 }
0x14cd   :  { %6246 = vmatprep.subr.mxu0 %v6582_v2 }
0x1539   :  { %v3203_v15 = vpop.permute.xlu1 %3202 }
0x157d   :  { %v3028_v9 = vpop.f32.mrf.mxu0 }
0x157e   :  { %v3102_v13 = vadd.f32 %v3101_v55, %v3028_v9  ;;  %v3481_v55 = vstv %s3480_s9  ;;  %v7459_v9 = vld [vmem:[%s7859_s7] sm:$0xff] }
0x157f   :  { %v6194_v14 = vpop.f32.mrf.mxu0  ;;  %vm3482_vm14 = vcmp.eq.s32.totalorder %v3481_v55, 1  ;;  %6247 = vmatpush3.msra.mxu0 %v7459_v9 }
0x1580   :  { %v3112_v21 = vadd.f32 %v7040_v28, %v3102_v13  ;;  %6262 = vmatprep.subr.mxu0 %v6582_v2 }
0x1582   :  { %v3194_v22 = vadd.f32 %v3191_v60, %v3112_v21  ;;  %v5655_v60 = vld [vmem:[%s7890_s2 + $0x6] sm:$0x3] }
0x1584   :  { %v5649_v62 = vmul.f32 -1.442695, %v3194_v22 }
0x1585   :  { %v3294_v63 = vpop.f32.mrf.mxu0 }
0x1586   :  { %6500 = vpow2.f32 %v5649_v62 }
0x1587   :  { %v6223_v0 = vpop.f32.mrf.mxu0 }
0x1589   :  { %v3441_v7 = vpop.f32.mrf.mxu0 }
0x158b   :  { %v6241_v25 = vpop.f32.mrf.mxu0 }
0x158c   :  { %v7472_v25 = vld [vmem:[%s7862_s10] ss:$0 sm:$0xff] }
0x1593   :  { %v6501_v61 = vpop.eup %6500 }
0x1594   :  { %v3198_v5 = vadd.f32 1.0, %v6501_v61 }
0x1596   :  { %6502 = vrcp.f32 %v3198_v5 }
0x15a3   :  { %v6503_v8 = vpop.eup %6502 }
0x15a4   :  { %v3205_v10 = vmul.f32 %v6503_v8, %v3203_v15  ;;  %v3212_v28 = vsub.f32 1.0, %v6503_v8  ;;  %v3218_v33 = vmul.f32 %v6503_v8, %v7232_v50  ;;  %v7403_v50 = vld [vmem:[%s7860_s8 + $0x10] sm:$0xff] }
0x15a6   :  { %3207 = vrot.lane.b32.xlu0 %v3205_v10, %s6586_s15 }
0x1618   :  { %v3208_v26 = vpop.permute.xlu0 %3207 }
0x1619   :  { %v3210_v31 = vadd.f32 %v3208_v26, %v3112_v21 }
0x161b   :  { %6504 = vtanh.f32 %v3210_v31 }
0x1628   :  { %v6505_v23 = vpop.eup %6504 }
0x1629   :  { %3214 = vrot.lane.b32.xlu1 %v6505_v23, %s6587_s0  ;;  %v7487_v23 = vld [vmem:[%s7863_s11] sm:$0x1] }
0x169b   :  { %v3215_v30 = vpop.permute.xlu1 %3214 }
0x169c   :  { %v3217_v3 = vmul.f32 %v3215_v30, %v3212_v28 }
0x169e   :  { %v7387_v29 = vadd.f32 %v3218_v33, %v3217_v3 }
0x16a0   :  { %3299 = vrot.lane.b32.xlu1 %v7387_v29, %s6587_s0 }
0x1712   :  { %v7396_v34 = vpop.permute.xlu1 %3299 }
0x1713   :  { %6233 = vmatmul.mubr.msk.f32.vlgmr.msra.gmra.mxu1 %vm85_vm2, %v7396_v34 }
0x1714   :  { %6252 = vmatpush3.msra.mxu1 %v7394_v24  ;;  %6259 = vmatprep.mubr.msk.f32.mxu1 %vm6583_vm0, %v6582_v2 }
0x1715   :  { %6253 = vmatprep.subr.mxu1 %v6582_v2 }
0x1716   :  { %6254 = vmatpush3.msra.mxu1 %v7403_v50 }
0x1717   :  { %6255 = vmatprep.subr.mxu1 %v6582_v2 }
0x1718   :  { %6256 = vmatpush3.msra.mxu1 %v7412_v6 }
0x1719   :  { %6257 = vmatprep.subr.mxu1 %v6582_v2 }
0x171a   :  { %6258 = vmatpush3.msra.mxu1 %v7419_v38 }
0x171b   :  { %6260 = vmatmul.mubr.msk.f32.vlgmr.msra.gmra.mxu1 %vm85_vm2, %v7396_v34  ;;  %6272 = vmatprep.subr.mxu1 %v6582_v2 }
0x171c   :  { %6273 = vmatpush3.msra.mxu1 %v7430_v16  ;;  %6274 = vmatprep.mubr.msk.f32.mxu1 %vm6583_vm0, %v6582_v2 }
0x171d   :  { %6282 = vmatprep.subr.mxu1 %v6582_v2 }
0x17d3   :  { %v3369_v41 = vpop.f32.mrf.mxu1 }
0x17d4   :  { %v3370_v42 = vadd.f32 %v3369_v41, %v3294_v63 }
0x17d5   :  { %v6234_v35 = vpop.f32.mrf.mxu1 }
0x17d6   :  { %v3445_v36 = vadd.f32 %v3441_v7, %v3370_v42 }
0x17d8   :  { %v3453_v39 = vadd.f32 %v7104_v32, %v3445_v36 }
0x17da   :  { %3455 = vst.msk [vmem:[#allocation4 + $0x6] sm:$0x3] %vm276_vm13, %v3453_v39  ;;  %v3456_v43 = vsel %vm276_vm13, %v3453_v39, -inf }
0x17db   :  { %v3639_v49 = vpop.f32.mrf.mxu1  ;;  %3457 = vmax.xlane.f32.xlu1 %v3456_v43 }
0x17dc   :  { %v3650_v14 = vrot.slane %v3639_v49, %v6825_v47 }
0x17dd   :  { %v6261_v17 = vpop.f32.mrf.mxu1 }
0x17de   :  { %v3651_v21 = vcombine.high %v3650_v14, %v3650_v14  ;;  %v3658_v22 = vrot.slane %v3650_v14, %v6825_v47  ;;  %v7544_v14 = vld [vmem:[%s7866_s14 + $0x10] sm:$0xff] }
0x17e0   :  { %v3665_v62 = vrot.slane %v3651_v21, %v6825_v47  ;;  %v3669_v63 = vrot.slane %v3658_v22, %v6830_v51  ;;  %v7554_v21 = vld [vmem:[%s7866_s14 + $0x8] sm:$0xff]  ;;  %v7564_v22 = vld [vmem:[%s7866_s14] sm:$0xff] }
0x17e2   :  { %v3673_v0 = vrot.slane %v3665_v62, %v6830_v51  ;;  %v3676_v7 = vadd.f32 %v3669_v63, %v6827_v48  ;;  %v7577_v62 = vld [vmem:[%s7865_s13 + $0x10] sm:$0xff]  ;;  %v7583_v63 = vld [vmem:[%s7865_s13 + $0x8] sm:$0xff] }
0x17e4   :  { %v3677_v61 = vadd.f32 %v6823_v46, %v3673_v0  ;;  %v3685_v5 = vadd.f32 %v7472_v25, %v3676_v7 }
0x17e6   :  { %v3686_v8 = vadd.f32 %v7472_v25, %v3677_v61  ;;  %6506 = vtanh.f32 %v3685_v5 }
0x17e8   :  { %6508 = vtanh.f32 %v3686_v8  ;;  %v7598_v8 = vld [vmem:[%s7870_s18 + $0x18] sm:$0xff] }
0x17f3   :  { %v6507_v26 = vpop.eup %6506 }
0x17f5   :  { %v6509_v31 = vpop.eup %6508 }
0x1864   :  { %v3458_v18 = vpop.xlane.xlu1 %3457 }
0x1865   :  { %vm3459_vm5 = vcmp.eq.f32.partialorder %v3453_v39, %v3458_v18 }
0x1866   :  { %v3460_v27 = vsel %vm3459_vm5, %v6714_v4, 18 }
0x1867   :  { %v3461_v19 = vsel %vm276_vm13, %v3460_v27, 2147483647 }
0x1868   :  { %v3463_v37 = vshra.s32 %v3461_v19, 16  ;;  %v3462_v40 = vand.u32 65535, %v3461_v19 }
0x186a   :  { %v3465_v20 = vcvt.s32.f32 %v3463_v37  ;;  %v3464_v45 = vcvt.s32.f32 %v3462_v40 }
0x186c   :  { %3466 = vmin.xlane.f32.xlu0 %v3465_v20 }
0x18f5   :  { %v3467_v44 = vpop.xlane.xlu0 %3466 }
0x18f6   :  { %vm3468_vm6 = vcmp.eq.f32.partialorder %v3465_v20, %v3467_v44  ;;  %v3473_v54 = vcvt.f32.s32 %v3467_v44 }
0x18f7   :  { %v3469_v32 = vsel %vm3468_vm6, %v3464_v45, inf }
0x18f8   :  { %3470 = vmin.xlane.f32.xlu1 %v3469_v32  ;;  %v3474_v57 = vshll.u32 %v3473_v54, 16 }
0x1981   :  { %v3471_v56 = vpop.xlane.xlu1 %3470 }
0x1982   :  { %v3472_v59 = vcvt.f32.s32 %v3471_v56  ;;  %v7514_v56 = vld [vmem:[%s7864_s12 + $0x8] sm:$0xff] }
0x1984   :  { %v3475_v1 = vadd.s32 %v3474_v57, %v3472_v59  ;;  %v7520_v57 = vld [vmem:[%s7864_s12] sm:$0xff] }
0x1986   :  { %v3483_v13 = vsel %vm3482_vm14, %v5655_v60, %v3475_v1  ;;  %v7529_v1 = vld [vmem:[%s7865_s13 + $0x18] sm:$0xff] }
0x1987   :  { %3485 = vperm.xlu1 %6448, %v3483_v13   ;;  %v7535_v13 = vld [vmem:[%s7866_s14 + $0x18] sm:$0xff] }
0x1a02   :  { %v3486_v15 = vpop.permute.xlu1 %3485 }
0x1a03   :  { %vm3487_vm15 = vcmp.eq.s32.totalorder %v6714_v4, %v3486_v15 }
0x1a04   :  { %v5656_v10 = vsel %vm3487_vm15, 1.0, %v6582_v2 }
0x1a05   :  { %6249 = vmatmul.mubr.msk.f32.vlgmr.msra.gmra.mxu0 %vm280_vm1, %v5656_v10 }
0x1a06   :  { %6263 = vmatpush3.xpose.msk.msra.mxu0 %vm85_vm2, %v6507_v26  ;;  %6264 = vmatprep.mubr.msk.f32.mxu0 %vm6583_vm0, %v6582_v2 }
0x1a07   :  { %6267 = vmatprep.subr.mxu0 %v6582_v2 }
0x1a09   :  { %6265 = vmatmul.mubr.msk.f32.vlgmr.msra.gmra.mxu0 %vm85_vm2, %v7487_v23 }
0x1a0a   :  { %6268 = vmatpush3.xpose.msk.msra.mxu0 %vm85_vm2, %v6509_v31  ;;  %6269 = vmatprep.mubr.msk.f32.mxu0 %vm6583_vm0, %v6582_v2  ;;  %v7605_v31 = vld [vmem:[%s7870_s18 + $0x10] sm:$0xff] }
0x1a0b   :  { %6277 = vmatprep.subr.mxu0 %v6582_v2 }
0x1a0d   :  { %6270 = vmatmul.mubr.msk.f32.vlgmr.msra.gmra.mxu0 %vm85_vm2, %v7487_v23 }
0x1a0e   :  { %6278 = vmatpush3.msra.mxu0 %v7300_v58  ;;  %6279 = vmatprep.mubr.msk.f32.mxu0 %vm6583_vm0, %v6582_v2 }
0x1a0f   :  { %6293 = vmatprep.subr.mxu0 %v6582_v2 }
0x1ac5   :  { %v7501_v28 = vpop.f32.mrf.mxu0 }
0x1ac7   :  { %v6250_v30 = vpop.f32.mrf.mxu0 }
0x1ac9   :  { %v3758_v33 = vpop.f32.mrf.mxu0 }
0x1aca   :  { %v3835_v39 = vsel %vm6880_vm7, %v3758_v33, -1e+10  ;;  %v7614_v33 = vld [vmem:[%s7870_s18 + $0x8] sm:$0xff] }
0x1acb   :  { %v6266_v3 = vpop.f32.mrf.mxu0  ;;  %v3837_v43 = vsel %vm665_vm8, %v3835_v39, -inf }
0x1acc   :  { %v7621_v3 = vld [vmem:[%s7870_s18] sm:$0xff] }
0x1acd   :  { %v3831_v41 = vpop.f32.mrf.mxu0 }
0x1ace   :  { %v3836_v42 = vsel %vm662_vm9, %v3831_v41, -1e+10  ;;  %v7627_v41 = vld [vmem:[%s7868_s16] ss:$0 sm:$0xff] }
0x1acf   :  { %v6271_v35 = vpop.f32.mrf.mxu0  ;;  %v3840_v36 = vsel %vm665_vm8, %v3836_v42, -inf }
0x1ad0   :  { %3841 = vmax.xlane.f32.xlu0 %v3840_v36 }
0x1ad4   :  { %3838 = vmax.xlane.f32.xlu0 %v3837_v43 }
0x1b59   :  { %v3842_v49 = vpop.xlane.xlu0 %3841 }
0x1b5a   :  { %v3844_v17 = vsub.f32 %v3836_v42, %v3842_v49  ;;  %v7633_v42 = vld [vmem:[%s7871_s19 + $0x8] sm:$0xff] }
0x1b5c   :  { %v3847_v18 = vmul.f32 1.442695, %v3844_v17  ;;  %v7658_v17 = vld [vmem:[%s7893_s1] ss:$0 sm:$0xff] }
0x1b5d   :  { %v3839_v27 = vpop.xlane.xlu0 %3838 }
0x1b5e   :  { %6510 = vpow2.f32 %v3847_v18  ;;  %v3843_v19 = vsub.f32 %v3835_v39, %v3839_v27  ;;  %v7642_v39 = vld [vmem:[%s7871_s19] sm:$0xff] }
0x1b60   :  { %v3845_v37 = vmul.f32 1.442695, %v3843_v19 }
0x1b62   :  { %6512 = vpow2.f32 %v3845_v37 }
0x1b6b   :  { %v6511_v20 = vpop.eup %6510 }
0x1b6c   :  { %v3852_v40 = vsel %vm665_vm8, %v6511_v20, 0.0 }
0x1b6d   :  { %3853 = vadd.xlane.f32.xlu0 %v3852_v40 }
0x1b6f   :  { %v6513_v44 = vpop.eup %6512 }
0x1b70   :  { %v3849_v45 = vsel %vm665_vm8, %v6513_v44, 0.0 }
0x1b71   :  { %3850 = vadd.xlane.f32.xlu0 %v3849_v45 }
0x1bf6   :  { %v3854_v32 = vpop.xlane.xlu0 %3853 }
0x1bf7   :  { %6514 = vrcp.f32 %v3854_v32 }
0x1bfa   :  { %v3851_v52 = vpop.xlane.xlu0 %3850 }
0x1bfb   :  { %6516 = vrcp.f32 %v3851_v52 }
0x1c04   :  { %v6515_v54 = vpop.eup %6514 }
0x1c05   :  { %v3858_v55 = vmul.f32 %v6515_v54, %v6511_v20 }
0x1c07   :  { %6280 = vmatmul.mubr.msk.f32.vlgmr.msra.gmra.mxu0 %vm688_vm10, %v3858_v55 }
0x1c08   :  { %v6517_v59 = vpop.eup %6516  ;;  %6294 = vmatpush3.msra.mxu0 %v7514_v56  ;;  %6297 = vmatprep.mubr.msk.f32.mxu0 %vm6583_vm0, %v6582_v2 }
0x1c09   :  { %6295 = vmatprep.subr.mxu0 %v6582_v2  ;;  %v3856_v60 = vmul.f32 %v6517_v59, %v6513_v44 }
0x1c0a   :  { %6296 = vmatpush3.msra.mxu0 %v7520_v57 }
0x1c0b   :  { %6300 = vmatprep.subr.mxu0 %v6582_v2  ;;  %6275 = vmatmul.mubr.msk.f32.vlgmr.msra.gmra.mxu1 %vm688_vm10, %v3856_v60 }
0x1c0c   :  { %6298 = vmatmul.mubr.msk.f32.vlgmr.msra.gmra.mxu0 %vm918_vm11, %v7501_v28  ;;  %6283 = vmatpush3.msra.mxu1 %v7529_v1 }
0x1c0d   :  { %6301 = vmatpush3.msra.mxu0 %v7535_v13  ;;  %6308 = vmatprep.mubr.msk.f32.mxu0 %vm6583_vm0, %v6582_v2 }
0x1c0e   :  { %6302 = vmatprep.subr.mxu0 %v6582_v2  ;;  %6284 = vmatprep.subr.mxu1 %v6582_v2 }
0x1c0f   :  { %6303 = vmatpush3.msra.mxu0 %v7544_v14  ;;  %6290 = vmatprep.mubr.msk.f32.mxu1 %vm6583_vm0, %v6582_v2 }
0x1c10   :  { %6304 = vmatprep.subr.mxu0 %v6582_v2  ;;  %6285 = vmatpush3.msra.mxu1 %v7577_v62 }
0x1c11   :  { %6305 = vmatpush3.msra.mxu0 %v7554_v21  ;;  %6286 = vmatprep.subr.mxu1 %v6582_v2 }
0x1c12   :  { %6306 = vmatprep.subr.mxu0 %v6582_v2  ;;  %6287 = vmatpush3.msra.mxu1 %v7583_v63 }
0x1c13   :  { %6307 = vmatpush3.msra.mxu0 %v7564_v22  ;;  %6288 = vmatprep.subr.mxu1 %v6582_v2 }
0x1c14   :  { %6309 = vmatmul.mubr.msk.f32.vlgmr.msra.gmra.mxu0 %vm85_vm2, %v7396_v34  ;;  %6322 = vmatprep.subr.mxu0 %v6582_v2  ;;  %v7591_v34 = vld [vmem:[%s7865_s13] sm:$0xff] }
0x1c15   :  { %6330 = vmatprep.mubr.msk.f32.mxu0 %vm6583_vm0, %v6582_v2  ;;  %6289 = vmatpush3.msra.mxu1 %v7591_v34 }
0x1c16   :  { %6311 = vmatprep.subr.mxu1 %v6582_v2 }
0x1cc7   :  { %v4001_v0 = vpop.f32.mrf.mxu0 }
0x1cc8   :  { %v4013_v61 = vrot.slane %v4001_v0, 7 }
0x1cc9   :  { %v6281_v7 = vpop.f32.mrf.mxu0 }
0x1cca   :  { %v7665_v7 = vld [vmem:[%s7869_s17 + $0x18] sm:$0xff] }
0x1ccb   :  { %v3928_v5 = vpop.f32.mrf.mxu1  ;;  %6323 = vmatpush3.msra.mxu0 %v7665_v7 }
0x1ccc   :  { %v4014_v15 = vsel %vm844_vm12, %v4013_v61, %v3928_v5  ;;  %v4156_v10 = vpop.f32.mrf.mxu0  ;;  %v7670_v61 = vld [vmem:[%s7869_s17 + $0x10] sm:$0xff]  ;;  %6324 = vmatprep.subr.mxu0 %v6582_v2  ;;  %v7677_v5 = vld [vmem:[%s7869_s17 + $0x8] sm:$0xff] }
0x1ccd   :  { %v6276_v26 = vpop.f32.mrf.mxu1  ;;  %6291 = vmatmul.mubr.msk.f32.vlgmr.msra.gmra.mxu1 %vm85_vm2, %v4014_v15  ;;  %6325 = vmatpush3.msra.mxu0 %v7670_v61 }
0x1cce   :  { %v6299_v30 = vpop.f32.mrf.mxu0  ;;  %6312 = vmatpush3.msra.mxu1 %v7598_v8  ;;  %6319 = vmatprep.mubr.msk.f32.mxu1 %vm6583_vm0, %v6582_v2 }
0x1ccf   :  { %6313 = vmatprep.subr.mxu1 %v6582_v2  ;;  %6326 = vmatprep.subr.mxu0 %v6582_v2 }
0x1cd0   :  { %6314 = vmatpush3.msra.mxu1 %v7605_v31  ;;  %6327 = vmatpush3.msra.mxu0 %v7677_v5 }
0x1cd1   :  { %6315 = vmatprep.subr.mxu1 %v6582_v2  ;;  %6328 = vmatprep.subr.mxu0 %v6582_v2 }
0x1cd2   :  { %6316 = vmatpush3.msra.mxu1 %v7614_v33 }
0x1cd3   :  { %6317 = vmatprep.subr.mxu1 %v6582_v2 }
0x1cd4   :  { %v4245_v35 = vpop.f32.mrf.mxu0  ;;  %6318 = vmatpush3.msra.mxu1 %v7621_v3 }
0x1cd5   :  { %v4246_v36 = vadd.f32 %v7627_v41, %v4245_v35  ;;  %6320 = vmatmul.mubr.msk.f32.vlgmr.msra.gmra.mxu1 %vm85_vm2, %v4014_v15  ;;  %6333 = vmatprep.subr.mxu1 %v6582_v2  ;;  %v7684_v15 = vld [vmem:[%s7869_s17] sm:$0xff] }
0x1cd6   :  { %v6310_v43 = vpop.f32.mrf.mxu0  ;;  %6334 = vmatpush3.msra.mxu1 %v7633_v42  ;;  %6337 = vmatprep.mubr.msk.f32.mxu1 %vm6583_vm0, %v6582_v2 }
0x1cd7   :  { %4257 = vrot.lane.b32.xlu1 %v4246_v36, %s6586_s15  ;;  %6335 = vmatprep.subr.mxu1 %v6582_v2 }
0x1cd8   :  { %6336 = vmatpush3.msra.mxu1 %v7642_v39  ;;  %6329 = vmatpush3.msra.mxu0 %v7684_v15 }
0x1cd9   :  { %6338 = vmatmul.mubr.msk.f32.vlgmr.msra.gmra.mxu1 %vm918_vm11, %v7501_v28  ;;  %6340 = vmatprep.subr.mxu1 %v6582_v2 }
0x1cda   :  { %6346 = vmatprep.mubr.msk.f32.mxu1 %vm6583_vm0, %v6582_v2  ;;  %6349 = vmatprep.subr.mxu0 %v6582_v2 }
0x1d49   :  { %v4258_v55 = vpop.permute.xlu1 %4257 }
0x1d8d   :  { %v4083_v49 = vpop.f32.mrf.mxu1 }
0x1d8e   :  { %v4157_v18 = vadd.f32 %v4156_v10, %v4083_v49 }
0x1d8f   :  { %v6292_v27 = vpop.f32.mrf.mxu1 }
0x1d90   :  { %v4167_v19 = vadd.f32 %v7658_v17, %v4157_v18 }
0x1d92   :  { %v4249_v37 = vadd.f32 %v4246_v36, %v4167_v19 }
0x1d94   :  { %v5672_v20 = vmul.f32 -1.442695, %v4249_v37 }
0x1d95   :  { %v4349_v40 = vpop.f32.mrf.mxu1 }
0x1d96   :  { %6518 = vpow2.f32 %v5672_v20 }
0x1d97   :  { %v6321_v28 = vpop.f32.mrf.mxu1 }
0x1d99   :  { %v4496_v44 = vpop.f32.mrf.mxu1 }
0x1d9b   :  { %v6339_v45 = vpop.f32.mrf.mxu1 }
0x1da3   :  { %v6519_v32 = vpop.eup %6518 }
0x1da4   :  { %v4253_v52 = vadd.f32 1.0, %v6519_v32 }
0x1da6   :  { %6520 = vrcp.f32 %v4253_v52 }
0x1db3   :  { %v6521_v54 = vpop.eup %6520 }
0x1db4   :  { %v4260_v59 = vmul.f32 %v6521_v54, %v4258_v55  ;;  %v4267_v26 = vsub.f32 1.0, %v6521_v54  ;;  %v4273_v35 = vmul.f32 %v6521_v54, %v7387_v29  ;;  %v4547_v55 = vld [vmem:[%s7859_s7 + $0x10] sm:$0x3] }
0x1db5   :  { %6341 = vmatpush3.msk.msra.mxu1 %vm315_vm4, %v4547_v55 }
0x1db6   :  { %4262 = vrot.lane.b32.xlu0 %v4260_v59, %s6586_s15  ;;  %6342 = vmatprep.subr.mxu1 %v6582_v2 }
0x1db7   :  { %6343 = vmatpush3.msra.mxu1 %v7447_v53 }
0x1db8   :  { %6344 = vmatprep.subr.mxu1 %v6582_v2 }
0x1db9   :  { %6345 = vmatpush3.msra.mxu1 %v7459_v9 }
0x1dba   :  { %6360 = vmatprep.subr.mxu1 %v6582_v2 }
0x1e28   :  { %v4263_v60 = vpop.permute.xlu0 %4262 }
0x1e29   :  { %v4265_v0 = vadd.f32 %v4263_v60, %v4167_v19  ;;  %v4536_v60 = vstv %s4535_s23 }
0x1e2a   :  { %vm4537_vm4 = vcmp.eq.s32.totalorder %v4536_v60, 1 }
0x1e2b   :  { %6522 = vtanh.f32 %v4265_v0 }
0x1e38   :  { %v6523_v10 = vpop.eup %6522 }
0x1e39   :  { %4269 = vrot.lane.b32.xlu1 %v6523_v10, %s6587_s0 }
0x1eab   :  { %v4270_v30 = vpop.permute.xlu1 %4269 }
0x1eac   :  { %v4272_v36 = vmul.f32 %v4270_v30, %v4267_v26  ;;  %v5678_v30 = vld [vmem:[%s7890_s2 + $0x8] sm:$0x3]  ;;  %s6589_s2 = smov [#allocation4]  }
0x1eae   :  { %v7692_v43 = vadd.f32 %v4273_v35, %v4272_v36 }
0x1eb0   :  { %4354 = vrot.lane.b32.xlu1 %v7692_v43, %s6587_s0 }
0x1f22   :  { %v7696_v49 = vpop.permute.xlu1 %4354 }
0x1f23   :  { %6331 = vmatmul.mubr.msk.f32.vlgmr.msra.gmra.mxu0 %vm85_vm2, %v7696_v49 }
0x1f24   :  { %6350 = vmatpush3.msra.mxu0 %v7394_v24  ;;  %6357 = vmatprep.mubr.msk.f32.mxu0 %vm6583_vm0, %v6582_v2 }
0x1f25   :  { %6351 = vmatprep.subr.mxu0 %v6582_v2 }
0x1f26   :  { %6352 = vmatpush3.msra.mxu0 %v7403_v50  ;;  %v7719_v50 = vld [vmem:[%s7872_s20] ss:$0 sm:$0xff] }
0x1f27   :  { %6353 = vmatprep.subr.mxu0 %v6582_v2 }
0x1f28   :  { %6354 = vmatpush3.msra.mxu0 %v7412_v6 }
0x1f29   :  { %6355 = vmatprep.subr.mxu0 %v6582_v2 }
0x1f2a   :  { %6356 = vmatpush3.msra.mxu0 %v7419_v38 }
0x1f2b   :  { %6358 = vmatmul.mubr.msk.f32.vlgmr.msra.gmra.mxu0 %vm85_vm2, %v7696_v49  ;;  %6370 = vmatprep.subr.mxu0 %v6582_v2 }
0x1f2c   :  { %6371 = vmatpush3.msra.mxu0 %v7430_v16  ;;  %6372 = vmatprep.mubr.msk.f32.mxu0 %vm6583_vm0, %v6582_v2 }
0x1f2d   :  { %6380 = vmatprep.subr.mxu0 %v6582_v2 }
0x1fe3   :  { %v4424_v29 = vpop.f32.mrf.mxu0 }
0x1fe4   :  { %v4425_v24 = vadd.f32 %v4424_v29, %v4349_v40 }
0x1fe5   :  { %v6332_v6 = vpop.f32.mrf.mxu0 }
0x1fe6   :  { %v4500_v38 = vadd.f32 %v4496_v44, %v4425_v24 }
0x1fe8   :  { %v4508_v18 = vadd.f32 %v7719_v50, %v4500_v38 }
0x1fea   :  { %4510 = vst.msk [vmem:[#allocation4 + $0x8] sm:$0x3] %vm276_vm13, %v4508_v18  ;;  %v4511_v16 = vsel %vm276_vm13, %v4508_v18, -inf }
0x1feb   :  { %v4694_v27 = vpop.f32.mrf.mxu0  ;;  %4512 = vmax.xlane.f32.xlu1 %v4511_v16 }
0x1fec   :  { %v4705_v9 = vrot.slane %v4694_v27, %v6825_v47 }
0x1fed   :  { %v6359_v19 = vpop.f32.mrf.mxu0 }
0x1fee   :  { %v4706_v36 = vcombine.high %v4705_v9, %v4705_v9  ;;  %v4713_v29 = vrot.slane %v4705_v9, %v6825_v47 }
0x1ff0   :  { %v4720_v24 = vrot.slane %v4706_v36, %v6825_v47  ;;  %v4724_v6 = vrot.slane %v4713_v29, %v6830_v51 }
0x1ff2   :  { %v4728_v38 = vrot.slane %v4720_v24, %v6830_v51 }
0x1ff4   :  { %v4732_v16 = vadd.f32 %v6823_v46, %v4728_v38 }
0x2074   :  { %v4513_v37 = vpop.xlane.xlu1 %4512 }
0x2075   :  { %vm4514_vm3 = vcmp.eq.f32.partialorder %v4508_v18, %v4513_v37  ;;  %v4731_v18 = vadd.f32 %v4724_v6, %v6827_v48  ;;  %v4741_v37 = vadd.f32 %v7472_v25, %v4732_v16 }
0x2076   :  { %v4515_v20 = vsel %vm4514_vm3, %v6714_v4, 18 }
0x2077   :  { %v4516_v40 = vsel %vm276_vm13, %v4515_v20, 2147483647  ;;  %v4740_v19 = vadd.f32 %v7472_v25, %v4731_v18 }
0x2078   :  { %v4518_v28 = vshra.s32 %v4516_v40, 16  ;;  %v4517_v32 = vand.u32 65535, %v4516_v40 }
0x2079   :  { %6524 = vtanh.f32 %v4740_v19 }
0x207a   :  { %v4520_v45 = vcvt.s32.f32 %v4518_v28  ;;  %v4519_v52 = vcvt.s32.f32 %v4517_v32  ;;  %6526 = vtanh.f32 %v4741_v37 }
0x207c   :  { %4521 = vmin.xlane.f32.xlu0 %v4520_v45 }
0x2086   :  { %v6525_v47 = vpop.eup %6524 }
0x2087   :  { %v6527_v46 = vpop.eup %6526 }
0x2105   :  { %v4522_v44 = vpop.xlane.xlu0 %4521 }
0x2106   :  { %vm4523_vm5 = vcmp.eq.f32.partialorder %v4520_v45, %v4522_v44  ;;  %v4528_v59 = vcvt.f32.s32 %v4522_v44 }
0x2107   :  { %v4524_v54 = vsel %vm4523_vm5, %v4519_v52, inf }
0x2108   :  { %4525 = vmin.xlane.f32.xlu1 %v4524_v54  ;;  %v4529_v10 = vshll.u32 %v4528_v59, 16 }
0x2191   :  { %v4526_v0 = vpop.xlane.xlu1 %4525 }
0x2192   :  { %v4527_v26 = vcvt.f32.s32 %v4526_v0 }
0x2194   :  { %v4530_v53 = vadd.s32 %v4529_v10, %v4527_v26 }
0x2196   :  { %v4538_v35 = vsel %vm4537_vm4, %v5678_v30, %v4530_v53 }
0x2197   :  { %4540 = vperm.xlu1 %6448, %v4538_v35  }
0x2212   :  { %v4541_v27 = vpop.permute.xlu1 %4540 }
0x2213   :  { %vm4542_vm6 = vcmp.eq.s32.totalorder %v6714_v4, %v4541_v27 }
0x2214   :  { %v5679_v20 = vsel %vm4542_vm6, 1.0, %v6582_v2 }
0x2215   :  { %6347 = vmatmul.mubr.msk.f32.vlgmr.msra.gmra.mxu1 %vm280_vm1, %v5679_v20 }
0x2216   :  { %6361 = vmatpush3.xpose.msk.msra.mxu1 %vm85_vm2, %v6525_v47  ;;  %6362 = vmatprep.mubr.msk.f32.mxu1 %vm6583_vm0, %v6582_v2 }
0x2217   :  { %6365 = vmatprep.subr.mxu1 %v6582_v2 }
0x2219   :  { %6363 = vmatmul.mubr.msk.f32.vlgmr.msra.gmra.mxu1 %vm85_vm2, %v7487_v23 }
0x221a   :  { %6366 = vmatpush3.xpose.msk.msra.mxu1 %vm85_vm2, %v6527_v46  ;;  %6367 = vmatprep.mubr.msk.f32.mxu1 %vm6583_vm0, %v6582_v2 }
0x221b   :  { %6375 = vmatprep.subr.mxu1 %v6582_v2 }
0x221d   :  { %6368 = vmatmul.mubr.msk.f32.vlgmr.msra.gmra.mxu1 %vm85_vm2, %v7487_v23 }
0x221e   :  { %6376 = vmatpush3.msra.mxu1 %v7300_v58  ;;  %6377 = vmatprep.mubr.msk.f32.mxu1 %vm6583_vm0, %v6582_v2 }
0x221f   :  { %6391 = vmatprep.subr.mxu1 %v6582_v2 }
0x22d5   :  { %v7766_v4 = vpop.f32.mrf.mxu1 }
0x22d7   :  { %v6348_v48 = vpop.f32.mrf.mxu1 }
0x22d9   :  { %v4813_v51 = vpop.f32.mrf.mxu1 }
0x22da   :  { %v4890_v58 = vsel %vm6880_vm7, %v4813_v51, -1e+10 }
0x22db   :  { %v6364_v25 = vpop.f32.mrf.mxu1  ;;  %v4892_v23 = vsel %vm665_vm8, %v4890_v58, -inf }
0x22dd   :  { %v4886_v40 = vpop.f32.mrf.mxu1 }
0x22de   :  { %v4891_v28 = vsel %vm662_vm9, %v4886_v40, -1e+10 }
0x22df   :  { %v6369_v45 = vpop.f32.mrf.mxu1  ;;  %v4895_v32 = vsel %vm665_vm8, %v4891_v28, -inf }
0x22e0   :  { %4896 = vmax.xlane.f32.xlu0 %v4895_v32 }
0x22e4   :  { %4893 = vmax.xlane.f32.xlu0 %v4892_v23 }
0x2369   :  { %v4897_v44 = vpop.xlane.xlu0 %4896 }
0x236a   :  { %v4899_v52 = vsub.f32 %v4891_v28, %v4897_v44 }
0x236c   :  { %v4902_v54 = vmul.f32 1.442695, %v4899_v52 }
0x236d   :  { %v4894_v55 = vpop.xlane.xlu0 %4893 }
0x236e   :  { %6528 = vpow2.f32 %v4902_v54  ;;  %v4898_v59 = vsub.f32 %v4890_v58, %v4894_v55 }
0x2370   :  { %v4900_v60 = vmul.f32 1.442695, %v4898_v59 }
0x2372   :  { %6530 = vpow2.f32 %v4900_v60 }
0x237b   :  { %v6529_v11 = vpop.eup %6528 }
0x237c   :  { %v4907_v0 = vsel %vm665_vm8, %v6529_v11, 0.0 }
0x237d   :  { %4908 = vadd.xlane.f32.xlu0 %v4907_v0 }
0x237f   :  { %v6531_v10 = vpop.eup %6530 }
0x2380   :  { %v4904_v12 = vsel %vm665_vm8, %v6531_v10, 0.0 }
0x2381   :  { %4905 = vadd.xlane.f32.xlu0 %v4904_v12 }
0x2406   :  { %v4909_v26 = vpop.xlane.xlu0 %4908 }
0x2407   :  { %6532 = vrcp.f32 %v4909_v26 }
0x240a   :  { %v4906_v30 = vpop.xlane.xlu0 %4905 }
0x240b   :  { %6534 = vrcp.f32 %v4906_v30 }
0x2414   :  { %v6533_v53 = vpop.eup %6532 }
0x2415   :  { %v4913_v35 = vmul.f32 %v6533_v53, %v6529_v11 }
0x2417   :  { %6378 = vmatmul.mubr.msk.f32.vlgmr.msra.gmra.mxu1 %vm688_vm10, %v4913_v35 }
0x2418   :  { %v6535_v9 = vpop.eup %6534  ;;  %6392 = vmatpush3.msra.mxu1 %v7514_v56  ;;  %6395 = vmatprep.mubr.msk.f32.mxu1 %vm6583_vm0, %v6582_v2 }
0x2419   :  { %6393 = vmatprep.subr.mxu1 %v6582_v2  ;;  %v4911_v36 = vmul.f32 %v6535_v9, %v6531_v10 }
0x241a   :  { %6394 = vmatpush3.msra.mxu1 %v7520_v57 }
0x241b   :  { %6398 = vmatprep.subr.mxu1 %v6582_v2  ;;  %6373 = vmatmul.mubr.msk.f32.vlgmr.msra.gmra.mxu0 %vm688_vm10, %v4911_v36 }
0x241c   :  { %6396 = vmatmul.mubr.msk.f32.vlgmr.msra.gmra.mxu1 %vm918_vm11, %v7766_v4  ;;  %6381 = vmatpush3.msra.mxu0 %v7529_v1 }
0x241d   :  { %6399 = vmatpush3.msra.mxu1 %v7535_v13  ;;  %6406 = vmatprep.mubr.msk.f32.mxu1 %vm6583_vm0, %v6582_v2 }
0x241e   :  { %6400 = vmatprep.subr.mxu1 %v6582_v2  ;;  %6382 = vmatprep.subr.mxu0 %v6582_v2 }
0x241f   :  { %6401 = vmatpush3.msra.mxu1 %v7544_v14  ;;  %6383 = vmatpush3.msra.mxu0 %v7577_v62 }
0x2420   :  { %6402 = vmatprep.subr.mxu1 %v6582_v2  ;;  %6384 = vmatprep.subr.mxu0 %v6582_v2 }
0x2421   :  { %6403 = vmatpush3.msra.mxu1 %v7554_v21  ;;  %6385 = vmatpush3.msra.mxu0 %v7583_v63 }
0x2422   :  { %6404 = vmatprep.subr.mxu1 %v6582_v2  ;;  %6386 = vmatprep.subr.mxu0 %v6582_v2 }
0x2423   :  { %6405 = vmatpush3.msra.mxu1 %v7564_v22  ;;  %6387 = vmatpush3.msra.mxu0 %v7591_v34 }
0x2424   :  { %6407 = vmatmul.mubr.msk.f32.vlgmr.msra.gmra.mxu1 %vm85_vm2, %v7696_v49  ;;  %6388 = vmatprep.mubr.msk.f32.mxu0 %vm6583_vm0, %v6582_v2 }
0x2425   :  { %6409 = vmatprep.subr.mxu0 %v6582_v2  ;;  %6420 = vmatprep.subr.mxu1 %v6582_v2 }
0x2426   :  { %6421 = vmatpush3.msra.mxu1 %v7665_v7  ;;  %6428 = vmatprep.mubr.msk.f32.mxu1 %vm6583_vm0, %v6582_v2 }
0x2427   :  { %6422 = vmatprep.subr.mxu1 %v6582_v2 }
0x2428   :  { %6423 = vmatpush3.msra.mxu1 %v7670_v61 }
0x2429   :  { %6424 = vmatprep.subr.mxu1 %v6582_v2 }
0x242a   :  { %6425 = vmatpush3.msra.mxu1 %v7677_v5 }
0x242b   :  { %6426 = vmatprep.subr.mxu1 %v6582_v2 }
0x242c   :  { %6427 = vmatpush3.msra.mxu1 %v7684_v15 }
0x24d7   :  { %v5056_v56 = vpop.f32.mrf.mxu1 }
0x24d8   :  { %v5068_v1 = vrot.slane %v5056_v56, 7 }
0x24d9   :  { %v6379_v57 = vpop.f32.mrf.mxu1 }
0x24db   :  { %v4983_v13 = vpop.f32.mrf.mxu0 }
0x24dc   :  { %v5069_v14 = vsel %vm844_vm12, %v5068_v1, %v4983_v13  ;;  %v5211_v21 = vpop.f32.mrf.mxu1 }
0x24dd   :  { %v6374_v22 = vpop.f32.mrf.mxu0  ;;  %6389 = vmatmul.mubr.msk.f32.vlgmr.msra.gmra.mxu0 %vm85_vm2, %v5069_v14 }
0x24de   :  { %v6397_v62 = vpop.f32.mrf.mxu1  ;;  %6410 = vmatpush3.msra.mxu0 %v7598_v8  ;;  %6417 = vmatprep.mubr.msk.f32.mxu0 %vm6583_vm0, %v6582_v2 }
0x24df   :  { %6411 = vmatprep.subr.mxu0 %v6582_v2 }
0x24e0   :  { %6412 = vmatpush3.msra.mxu0 %v7605_v31 }
0x24e1   :  { %6413 = vmatprep.subr.mxu0 %v6582_v2 }
0x24e2   :  { %6414 = vmatpush3.msra.mxu0 %v7614_v33 }
0x24e3   :  { %6415 = vmatprep.subr.mxu0 %v6582_v2 }
0x24e4   :  { %v5300_v63 = vpop.f32.mrf.mxu1  ;;  %6416 = vmatpush3.msra.mxu0 %v7621_v3 }
0x24e5   :  { %v5301_v34 = vadd.f32 %v7627_v41, %v5300_v63  ;;  %6418 = vmatmul.mubr.msk.f32.vlgmr.msra.gmra.mxu0 %vm85_vm2, %v5069_v14  ;;  %6431 = vmatprep.subr.mxu0 %v6582_v2 }
0x24e6   :  { %v6408_v8 = vpop.f32.mrf.mxu1  ;;  %6432 = vmatpush3.msra.mxu0 %v7633_v42  ;;  %6435 = vmatprep.mubr.msk.f32.mxu0 %vm6583_vm0, %v6582_v2 }
0x24e7   :  { %5312 = vrot.lane.b32.xlu1 %v5301_v34, %s6586_s15  ;;  %6433 = vmatprep.subr.mxu0 %v6582_v2 }
0x24e8   :  { %6434 = vmatpush3.msra.mxu0 %v7642_v39 }
0x24e9   :  { %6436 = vmatmul.mubr.msk.f32.vlgmr.msra.gmra.mxu0 %vm918_vm11, %v7766_v4 }
0x2559   :  { %v5313_v39 = vpop.permute.xlu1 %5312 }
0x259d   :  { %v5138_v31 = vpop.f32.mrf.mxu0 }
0x259e   :  { %v5212_v33 = vadd.f32 %v5211_v21, %v5138_v31 }
0x259f   :  { %v6390_v3 = vpop.f32.mrf.mxu0 }
0x25a0   :  { %v5222_v41 = vadd.f32 %v7658_v17, %v5212_v33 }
0x25a2   :  { %v5304_v7 = vadd.f32 %v5301_v34, %v5222_v41 }
0x25a4   :  { %v5695_v61 = vmul.f32 -1.442695, %v5304_v7 }
0x25a5   :  { %v5404_v42 = vpop.f32.mrf.mxu0 }
0x25a6   :  { %6536 = vpow2.f32 %v5695_v61 }
0x25a7   :  { %v6419_v5 = vpop.f32.mrf.mxu0 }
0x25a9   :  { %v5551_v15 = vpop.f32.mrf.mxu0 }
0x25ab   :  { %v6437_v49 = vpop.f32.mrf.mxu0 }
0x25b3   :  { %v6537_v29 = vpop.eup %6536 }
0x25b4   :  { %v5308_v24 = vadd.f32 1.0, %v6537_v29 }
0x25b6   :  { %6538 = vrcp.f32 %v5308_v24 }
0x25c3   :  { %v6539_v2 = vpop.eup %6538 }
0x25c4   :  { %v5315_v6 = vmul.f32 %v6539_v2, %v5313_v39  ;;  %v5322_v17 = vsub.f32 1.0, %v6539_v2  ;;  %v5328_v37 = vmul.f32 %v6539_v2, %v7692_v43 }
0x25c6   :  { %5317 = vrot.lane.b32.xlu0 %v5315_v6, %s6586_s15  ;;  %s5571_s15 = sshll.u32 %s6589_s2, 4  ;;  %s5572_s15 = int_to_ptr.vmem [resolvable:$true] %s5571_s15 }
0x25c7   :  { %s6557_s9 = scalar_lea.vmem %s5572_s15, 192  ;;  %p6562_p11 = scmp.lt.s32.totalorder %s5572_s15, %s5572_s15 }
0x25c8   :  { %p6558_p10 = scmp.ne.s32.totalorder %s5572_s15, %s6557_s9  ;;  %p6563_p12 = scmp.lt.s32.totalorder %s6557_s9, %s6557_s9 }
0x25ca   :  { %p6564_p13 = por %p6563_p12, %p6562_p11 }
0x25cc   :  { %p6565_p0 = pnand %p6564_p13, %p6558_p10 }
0x2638   :  { %v5318_v38 = vpop.permute.xlu0 %5317 }
0x2639   :  { %v5320_v18 = vadd.f32 %v5318_v38, %v5222_v41 }
0x263b   :  { %6540 = vtanh.f32 %v5320_v18 }
0x2648   :  { %v6541_v16 = vpop.eup %6540 }
0x2649   :  { %5324 = vrot.lane.b32.xlu1 %v6541_v16, %s6587_s0 }
0x26bb   :  { %v5325_v19 = vpop.permute.xlu1 %5324 }
0x26bc   :  { %v5327_v27 = vmul.f32 %v5325_v19, %v5322_v17 }
0x26be   :  { %v5329_v20 = vadd.f32 %v5328_v37, %v5327_v27 }
0x26c0   :  { %5409 = vrot.lane.b32.xlu1 %v5329_v20, %s6587_s0 }
0x2732   :  { %v5410_v47 = vpop.permute.xlu1 %5409 }
0x2733   :  { %6429 = vmatmul.mubr.msk.f32.vlgmr.msra.gmra.mxu1 %vm85_vm2, %v5410_v47 }
0x27f3   :  { %v5479_v46 = vpop.f32.mrf.mxu1 }
0x27f4   :  { %v5480_v4 = vadd.f32 %v5479_v46, %v5404_v42 }
0x27f5   :  { %v6430_v48 = vpop.f32.mrf.mxu1 }
0x27f6   :  { %v5555_v51 = vadd.f32 %v5551_v15, %v5480_v4 }
0x27f8   :  { %v5563_v25 = vadd.f32 %v7719_v50, %v5555_v51 }
0x27fa   :  { %5565 = vst.msk [vmem:[#allocation4 + $0xa] sm:$0x3] %vm276_vm13, %v5563_v25 }
0x27fb   :  { %6568 = shalt.err (!%p6565_p0)
}
0x27fc   :  { %s6590_s0 = smov 2  }
0x27fd   :  { %5577 = dma.vmem_to_hbm [thread:$0]  %s5572_s15, 192, %s7873_s21, [#allocation5], %s6588_s4, %s6588_s4, %s6590_s0  }
0x27fe   :  { %6579 = dma.done.wait [#allocation5], 192  }
0x27ff   :  { %6580 = vsyncadd [#allocation5], 4294967104 }
0x2800   :  { %5581 = vsyncpa [#allocation5], 1 }

</bundles_post_ra>
